<compile_context>
chip_gen: v7x
topology: tpu7x:2x2x1
jax: 0.10.0
libtpu: 0.0.40
codegen_flags: <defaults>
</compile_context>

<pallas_src>
import functools

import jax
import jax.numpy as jnp
from jax.experimental import pallas as pl
from jax.experimental.pallas import tpu as pltpu


def ordonator_kernel(x_ref,
                     wih0_ref, whh0_ref, b0_ref,
                     wihr_ref, whhr_ref, br_ref,
                     fw0a_ref, fw0b_ref, fb0_ref,
                     fwm_ref, fbm_ref, fwl_ref, fbl_ref,
                     out_ref, *, T, B, BP, H, L, NF):
    """x_ref: (T*BP, D) fused bf16 sequence (x1 in rows 0:B, x2 in rows B:2B of
    each timestep block, zero padding in rows 2B:BP). LSTM weights/biases have
    gate columns repacked to (i, f, o, g) with a 0.5 pre-scale folded into the
    i/f/o columns (sigmoid(x) == 0.5*(tanh(x/2)+1))."""
    f32 = jnp.float32
    bf16 = jnp.bfloat16

    # ---- Hoisted layer-0 input projection (+ folded bias): one big matmul. --
    pre0 = jnp.dot(x_ref[...], wih0_ref[...],
                   preferred_element_type=f32) + b0_ref[...]       # (T*BP, 4H)

    # ---- Load small recurrent / inter-layer weights once (off the chain). ---
    whh0 = whh0_ref[...]
    wihr = [wihr_ref[k] for k in range(L - 1)]
    whhr = [whhr_ref[k] for k in range(L - 1)]
    br = [br_ref[k] for k in range(L - 1)]

    # Lane mask selecting the i/f/o gate columns (first 3H of the 4H lanes).
    sig_lanes = jax.lax.broadcasted_iota(jnp.int32, (BP, 4 * H), 1) < 3 * H

    def cell(gates, c_prev):
        # Single full-vreg tanh; sigmoid lanes recovered as 0.5*(t+1).
        t_all = jnp.tanh(gates)                                    # (BP, 4H)
        act = jnp.where(sig_lanes, 0.5 * (t_all + 1.0), t_all)
        i = act[:, 0 * H:1 * H]
        f = act[:, 1 * H:2 * H]
        o = act[:, 2 * H:3 * H]
        g = act[:, 3 * H:4 * H]
        c_new = f * c_prev + i * g
        h_new = o * jnp.tanh(c_new)
        return h_new, c_new

    h = [jnp.zeros((BP, H), f32) for _ in range(L)]
    c = [jnp.zeros((BP, H), f32) for _ in range(L)]

    # ---- Wavefront over (layer, time): cells with l + t == w are independent,
    # so the dependent chain is T+L-1 waves instead of T*L serial steps. ------
    for w in range(T + L - 1):
        h_in = list(h)                         # snapshot from the previous wave
        for l in range(max(0, w - T + 1), min(L, w + 1)):
            t = w - l
            if l == 0:
                gates = pre0[t * BP:(t + 1) * BP, :] + jnp.dot(
                    h_in[0].astype(bf16), whh0, preferred_element_type=f32)
            else:
                gates = (jnp.dot(h_in[l - 1].astype(bf16), wihr[l - 1],
                                 preferred_element_type=f32)
                         + jnp.dot(h_in[l].astype(bf16), whhr[l - 1],
                                   preferred_element_type=f32)
                         + br[l - 1])
            h[l], c[l] = cell(gates, c[l])

    # Split the fused batch back into the two sequences' final hidden states.
    h_last = h[L - 1]                                              # (BP, H)
    h1 = h_last[:B, :]
    h2 = h_last[B:2 * B, :]

    # FNN head (f32, tiny epilogue). 'concatenation' combine realized as two
    # half-dots summed: [h1 h2] @ fw0 == h1 @ fw0a + h2 @ fw0b (no lane concat).
    hf = jnp.maximum(
        jnp.dot(h1, fw0a_ref[...], preferred_element_type=f32)
        + jnp.dot(h2, fw0b_ref[...], preferred_element_type=f32)
        + fb0_ref[...], 0.0)
    for k in range(NF):
        hf = jnp.maximum(
            jnp.dot(hf, fwm_ref[k], preferred_element_type=f32)
            + fbm_ref[k], 0.0)
    y = jax.nn.sigmoid(
        jnp.dot(hf, fwl_ref[...], preferred_element_type=f32)
        + fbl_ref[...])                                            # (B, 1)
    # Lane-dense output tile: broadcast across 128 lanes; wrapper reads col 0.
    out_ref[...] = jnp.broadcast_to(y, (B, 128))


# -------------------- one-time parameter preparation --------------------

def _reorder_gate_cols(w):
    """PyTorch LSTM gate column order (i, f, g, o) -> kernel order (i, f, o, g)."""
    i, f, g, o = jnp.split(w, 4, axis=-1)
    return jnp.concatenate([i, f, o, g], axis=-1)


def _fold_sigmoid_half(w):
    """Fold the 0.5 pre-scale into the i/f/o (first 3H) gate columns so the
    kernel can use a single tanh: sigmoid(x) = 0.5*(tanh(0.5*x)+1)."""
    hh = w.shape[-1] // 4
    scale = jnp.concatenate([jnp.full((3 * hh,), 0.5, w.dtype),
                             jnp.ones((hh,), w.dtype)])
    return w * scale


def prepare_params(p):
    """Hoisted out of the per-call forward: gate reorder, 0.5 fold, bf16 cast
    of MXU operands, and split of fw0 at row H (two half-dots in the kernel)."""
    def prep_w(w):
        return _fold_sigmoid_half(_reorder_gate_cols(w)).astype(jnp.bfloat16)

    def prep_b(b):
        return _fold_sigmoid_half(_reorder_gate_cols(b))   # bias stays f32

    H = p["whh0_t"].shape[0]
    return dict(
        wih0=prep_w(p["wih0_t"]), whh0=prep_w(p["whh0_t"]), b0=prep_b(p["b0"]),
        wihr=prep_w(p["wihr_t"]), whhr=prep_w(p["whhr_t"]), br=prep_b(p["br"]),
        fw0a=p["fw0_t"][:H], fw0b=p["fw0_t"][H:], fb0=p["fb0"],
        fwm=p["fwm_t"], fbm=p["fbm"], fwl=p["fwl_t"], fbl=p["fbl"])


@jax.jit
def rnn_ordonator_forward(x1, x2, pp):
    T, B, D = x1.shape
    H = pp["whh0"].shape[0]
    L = 1 + pp["wihr"].shape[0]
    NF = pp["fwm"].shape[0]

    # Fuse the two shared-weight LSTM runs into one batch; pad to 8 sublanes.
    BP = max(8, ((2 * B + 7) // 8) * 8)
    x = jnp.concatenate([x1, x2], axis=1)                      # (T, 2B, D)
    x = jnp.pad(x, ((0, 0), (0, BP - 2 * B), (0, 0)))          # (T, BP, D)
    x = x.reshape(T * BP, D).astype(jnp.bfloat16)

    inputs = (x, pp["wih0"], pp["whh0"], pp["b0"],
              pp["wihr"], pp["whhr"], pp["br"],
              pp["fw0a"], pp["fw0b"], pp["fb0"],
              pp["fwm"], pp["fbm"], pp["fwl"], pp["fbl"])

    kernel = functools.partial(ordonator_kernel,
                               T=T, B=B, BP=BP, H=H, L=L, NF=NF)
    vmem = pl.BlockSpec(memory_space=pltpu.MemorySpace.VMEM)
    y = pl.pallas_call(
        kernel,
        out_shape=jax.ShapeDtypeStruct((B, 128), jnp.float32),
        in_specs=[vmem] * len(inputs),
        out_specs=vmem,
    )(*inputs)
    return y[:, 0]


# -------------------- synthetic params & pure-JAX reference --------------------

def init_params(key, D, H, L, NF):
    """Deterministic synthetic parameters (PyTorch-style uniform init),
    stored in the native PyTorch gate order (i, f, g, o), f32."""
    keys = iter(jax.random.split(key, 16))

    def u(shape, bound):
        return jax.random.uniform(next(keys), shape, jnp.float32, -bound, bound)

    kh = 1.0 / float(jnp.sqrt(float(H)))
    k0 = 1.0 / float(jnp.sqrt(float(2 * H)))

    wih0_t = u((D, 4 * H), kh)
    whh0_t = u((H, 4 * H), kh)
    b0 = u((1, 4 * H), kh) + u((1, 4 * H), kh)            # b_ih + b_hh
    wihr_t = u((L - 1, H, 4 * H), kh)
    whhr_t = u((L - 1, H, 4 * H), kh)
    br = u((L - 1, 1, 4 * H), kh) + u((L - 1, 1, 4 * H), kh)

    fw0_t = u((2 * H, H), k0)
    fb0 = u((1, H), k0)
    fwm_t = u((NF, H, H), kh)
    fbm = u((NF, 1, H), kh)
    fwl_t = u((H, 1), kh)
    fbl = u((1, 1), kh)

    return dict(wih0_t=wih0_t, whh0_t=whh0_t, b0=b0,
                wihr_t=wihr_t, whhr_t=whhr_t, br=br,
                fw0_t=fw0_t, fb0=fb0, fwm_t=fwm_t, fbm=fbm,
                fwl_t=fwl_t, fbl=fbl)


def reference_forward(x1, x2, p):
    """Pure-JAX f32 reference mirroring the PyTorch eval-mode forward
    (two separate LSTM runs, gate order i, f, g, o)."""
    H = p["whh0_t"].shape[0]
    L = 1 + p["wihr_t"].shape[0]

    def lstm_stack(x):
        T, B, _ = x.shape
        seq = x
        for l in range(L):
            wih_t = p["wih0_t"] if l == 0 else p["wihr_t"][l - 1]
            whh_t = p["whh0_t"] if l == 0 else p["whhr_t"][l - 1]
            b = p["b0"] if l == 0 else p["br"][l - 1]
            h = jnp.zeros((B, H), jnp.float32)
            c = jnp.zeros((B, H), jnp.float32)
            outs = []
            for t in range(T):
                gates = seq[t] @ wih_t + h @ whh_t + b
                i = jax.nn.sigmoid(gates[:, :H])
                f = jax.nn.sigmoid(gates[:, H:2 * H])
                g = jnp.tanh(gates[:, 2 * H:3 * H])
                o = jax.nn.sigmoid(gates[:, 3 * H:])
                c = f * c + i * g
                h = o * jnp.tanh(c)
                outs.append(h)
            seq = jnp.stack(outs)
        return seq[-1]

    z = jnp.concatenate([lstm_stack(x1), lstm_stack(x2)], axis=1)
    h = jnp.maximum(z @ p["fw0_t"] + p["fb0"], 0.0)
    for k in range(p["fwm_t"].shape[0]):
        h = jnp.maximum(h @ p["fwm_t"][k] + p["fbm"][k], 0.0)
    return jax.nn.sigmoid(h @ p["fwl_t"] + p["fbl"]).reshape(-1)


if __name__ == "__main__":
    # Small shapes: seq=8, batch=2, input_dim=16, hidden=32,
    # nb_rnn_layers=4, nb_fnn_layers=4 (module defaults).
    T, B, D, H, L, NF = 8, 2, 16, 32, 4, 4

    key = jax.random.PRNGKey(0)
    k_x1, k_x2, k_p = jax.random.split(key, 3)
    x1 = jax.random.normal(k_x1, (T, B, D), jnp.float32)
    x2 = jax.random.normal(k_x2, (T, B, D), jnp.float32)
    params = init_params(k_p, D, H, L, NF)

    prepared = prepare_params(params)        # one-time weight prep (hoisted)
    y = rnn_ordonator_forward(x1, x2, prepared)
    y = jax.block_until_ready(y)

    y_ref = reference_forward(x1, x2, params)
    assert y.shape == (B,), y.shape
    # bf16 MXU operands (f32 accumulation): tolerance loosened vs the f32 ref.
    assert jnp.allclose(y, y_ref, atol=2e-2, rtol=2e-2), (y, y_ref)

    print("KERNEL_OK")
</pallas_src>

<mosaic_0001>
module attributes {stable_mosaic.version = 11 : i64} {
  func.func @ordonator_kernel(%arg0: memref<64x16xbf16, #tpu.memory_space<vmem>>, %arg1: memref<16x128xbf16, #tpu.memory_space<vmem>>, %arg2: memref<32x128xbf16, #tpu.memory_space<vmem>>, %arg3: memref<1x128xf32, #tpu.memory_space<vmem>>, %arg4: memref<3x32x128xbf16, #tpu.memory_space<vmem>>, %arg5: memref<3x32x128xbf16, #tpu.memory_space<vmem>>, %arg6: memref<3x1x128xf32, #tpu.memory_space<vmem>>, %arg7: memref<32x32xf32, #tpu.memory_space<vmem>>, %arg8: memref<32x32xf32, #tpu.memory_space<vmem>>, %arg9: memref<1x32xf32, #tpu.memory_space<vmem>>, %arg10: memref<4x32x32xf32, #tpu.memory_space<vmem>>, %arg11: memref<4x1x32xf32, #tpu.memory_space<vmem>>, %arg12: memref<32x1xf32, #tpu.memory_space<vmem>>, %arg13: memref<1x1xf32, #tpu.memory_space<vmem>>, %arg14: memref<2x128xf32, #tpu.memory_space<vmem>>) attributes {dimension_semantics = [], scalar_prefetch = 0 : i64, scratch_operands = 0 : i64, tpu.core_type = #tpu.core_type<tc>} {
    %c0 = arith.constant 0 : index
    %c0_0 = arith.constant 0 : index
    %0 = vector.load %arg0[%c0, %c0_0] : memref<64x16xbf16, #tpu.memory_space<vmem>>, vector<64x16xbf16>
    %c0_1 = arith.constant 0 : index
    %c0_2 = arith.constant 0 : index
    %1 = vector.load %arg1[%c0_1, %c0_2] : memref<16x128xbf16, #tpu.memory_space<vmem>>, vector<16x128xbf16>
    %cst = arith.constant dense<0.000000e+00> : vector<64x128xf32>
    %2 = tpu.matmul %0, %1, %cst {dimension_numbers = #tpu.dot_dimension_numbers<[1], [0], [0], [1], [0, 0, 1, 1], [], []>} : vector<64x16xbf16>, vector<16x128xbf16>, vector<64x128xf32> -> vector<64x128xf32>
    %c0_3 = arith.constant 0 : index
    %c0_4 = arith.constant 0 : index
    %3 = vector.load %arg3[%c0_3, %c0_4] : memref<1x128xf32, #tpu.memory_space<vmem>>, vector<1x128xf32>
    %4 = vector.broadcast %3 : vector<1x128xf32> to vector<64x128xf32>
    %5 = arith.addf %2, %4 : vector<64x128xf32>
    %c0_5 = arith.constant 0 : index
    %c0_6 = arith.constant 0 : index
    %6 = vector.load %arg2[%c0_5, %c0_6] : memref<32x128xbf16, #tpu.memory_space<vmem>>, vector<32x128xbf16>
    %c0_7 = arith.constant 0 : index
    %c0_8 = arith.constant 0 : index
    %c0_9 = arith.constant 0 : index
    %7 = vector.load %arg4[%c0_7, %c0_8, %c0_9] : memref<3x32x128xbf16, #tpu.memory_space<vmem>>, vector<1x32x128xbf16>
    %8 = vector.shape_cast %7 : vector<1x32x128xbf16> to vector<32x128xbf16>
    %c1 = arith.constant 1 : index
    %c0_10 = arith.constant 0 : index
    %c0_11 = arith.constant 0 : index
    %9 = vector.load %arg4[%c1, %c0_10, %c0_11] : memref<3x32x128xbf16, #tpu.memory_space<vmem>>, vector<1x32x128xbf16>
    %10 = vector.shape_cast %9 : vector<1x32x128xbf16> to vector<32x128xbf16>
    %c2 = arith.constant 2 : index
    %c0_12 = arith.constant 0 : index
    %c0_13 = arith.constant 0 : index
    %11 = vector.load %arg4[%c2, %c0_12, %c0_13] : memref<3x32x128xbf16, #tpu.memory_space<vmem>>, vector<1x32x128xbf16>
    %12 = vector.shape_cast %11 : vector<1x32x128xbf16> to vector<32x128xbf16>
    %c0_14 = arith.constant 0 : index
    %c0_15 = arith.constant 0 : index
    %c0_16 = arith.constant 0 : index
    %13 = vector.load %arg5[%c0_14, %c0_15, %c0_16] : memref<3x32x128xbf16, #tpu.memory_space<vmem>>, vector<1x32x128xbf16>
    %14 = vector.shape_cast %13 : vector<1x32x128xbf16> to vector<32x128xbf16>
    %c1_17 = arith.constant 1 : index
    %c0_18 = arith.constant 0 : index
    %c0_19 = arith.constant 0 : index
    %15 = vector.load %arg5[%c1_17, %c0_18, %c0_19] : memref<3x32x128xbf16, #tpu.memory_space<vmem>>, vector<1x32x128xbf16>
    %16 = vector.shape_cast %15 : vector<1x32x128xbf16> to vector<32x128xbf16>
    %c2_20 = arith.constant 2 : index
    %c0_21 = arith.constant 0 : index
    %c0_22 = arith.constant 0 : index
    %17 = vector.load %arg5[%c2_20, %c0_21, %c0_22] : memref<3x32x128xbf16, #tpu.memory_space<vmem>>, vector<1x32x128xbf16>
    %18 = vector.shape_cast %17 : vector<1x32x128xbf16> to vector<32x128xbf16>
    %c0_23 = arith.constant 0 : index
    %c0_24 = arith.constant 0 : index
    %c0_25 = arith.constant 0 : index
    %19 = vector.load %arg6[%c0_23, %c0_24, %c0_25] : memref<3x1x128xf32, #tpu.memory_space<vmem>>, vector<1x1x128xf32>
    %20 = vector.shape_cast %19 : vector<1x1x128xf32> to vector<1x128xf32>
    %c1_26 = arith.constant 1 : index
    %c0_27 = arith.constant 0 : index
    %c0_28 = arith.constant 0 : index
    %21 = vector.load %arg6[%c1_26, %c0_27, %c0_28] : memref<3x1x128xf32, #tpu.memory_space<vmem>>, vector<1x1x128xf32>
    %22 = vector.shape_cast %21 : vector<1x1x128xf32> to vector<1x128xf32>
    %c2_29 = arith.constant 2 : index
    %c0_30 = arith.constant 0 : index
    %c0_31 = arith.constant 0 : index
    %23 = vector.load %arg6[%c2_29, %c0_30, %c0_31] : memref<3x1x128xf32, #tpu.memory_space<vmem>>, vector<1x1x128xf32>
    %24 = vector.shape_cast %23 : vector<1x1x128xf32> to vector<1x128xf32>
    %25 = tpu.iota {dimensions = array<i32: 1>} : vector<8x128xi32>
    %c96_i32 = arith.constant 96 : i32
    %26 = vector.broadcast %c96_i32 : i32 to vector<8x128xi32>
    %27 = arith.cmpi slt, %25, %26 : vector<8x128xi32>
    %cst_32 = arith.constant 0.000000e+00 : f32
    %28 = vector.broadcast %cst_32 : f32 to vector<8x32xf32>
    %cst_33 = arith.constant 0.000000e+00 : f32
    %29 = vector.broadcast %cst_33 : f32 to vector<8x32xf32>
    %cst_34 = arith.constant 0.000000e+00 : f32
    %30 = vector.broadcast %cst_34 : f32 to vector<8x32xf32>
    %cst_35 = arith.constant 0.000000e+00 : f32
    %31 = vector.broadcast %cst_35 : f32 to vector<8x32xf32>
    %cst_36 = arith.constant 0.000000e+00 : f32
    %32 = vector.broadcast %cst_36 : f32 to vector<8x32xf32>
    %cst_37 = arith.constant 0.000000e+00 : f32
    %33 = vector.broadcast %cst_37 : f32 to vector<8x32xf32>
    %cst_38 = arith.constant 0.000000e+00 : f32
    %34 = vector.broadcast %cst_38 : f32 to vector<8x32xf32>
    %cst_39 = arith.constant 0.000000e+00 : f32
    %35 = vector.broadcast %cst_39 : f32 to vector<8x32xf32>
    %36 = vector.extract_strided_slice %5 {offsets = [0, 0], sizes = [8, 128], strides = [1, 1]} : vector<64x128xf32> to vector<8x128xf32>
    %37 = arith.truncf %28 : vector<8x32xf32> to vector<8x32xbf16>
    %cst_40 = arith.constant dense<0.000000e+00> : vector<8x128xf32>
    %38 = tpu.matmul %37, %6, %cst_40 {dimension_numbers = #tpu.dot_dimension_numbers<[1], [0], [0], [1], [0, 0, 1, 1], [], []>} : vector<8x32xbf16>, vector<32x128xbf16>, vector<8x128xf32> -> vector<8x128xf32>
    %39 = arith.addf %36, %38 : vector<8x128xf32>
    %40 = math.tanh %39 : vector<8x128xf32>
    %cst_41 = arith.constant 1.000000e+00 : f32
    %41 = vector.broadcast %cst_41 : f32 to vector<8x128xf32>
    %42 = arith.addf %40, %41 : vector<8x128xf32>
    %cst_42 = arith.constant 5.000000e-01 : f32
    %43 = vector.broadcast %cst_42 : f32 to vector<8x128xf32>
    %44 = arith.mulf %43, %42 : vector<8x128xf32>
    %45 = arith.select %27, %44, %40 : vector<8x128xi1>, vector<8x128xf32>
    %46 = vector.extract_strided_slice %45 {offsets = [0, 0], sizes = [8, 32], strides = [1, 1]} : vector<8x128xf32> to vector<8x32xf32>
    %47 = vector.extract_strided_slice %45 {offsets = [0, 32], sizes = [8, 32], strides = [1, 1]} : vector<8x128xf32> to vector<8x32xf32>
    %48 = vector.extract_strided_slice %45 {offsets = [0, 64], sizes = [8, 32], strides = [1, 1]} : vector<8x128xf32> to vector<8x32xf32>
    %49 = vector.extract_strided_slice %45 {offsets = [0, 96], sizes = [8, 32], strides = [1, 1]} : vector<8x128xf32> to vector<8x32xf32>
    %50 = arith.mulf %47, %32 : vector<8x32xf32>
    %51 = arith.mulf %46, %49 : vector<8x32xf32>
    %52 = arith.addf %50, %51 : vector<8x32xf32>
    %53 = math.tanh %52 : vector<8x32xf32>
    %54 = arith.mulf %48, %53 : vector<8x32xf32>
    %55 = vector.extract_strided_slice %5 {offsets = [8, 0], sizes = [8, 128], strides = [1, 1]} : vector<64x128xf32> to vector<8x128xf32>
    %56 = arith.truncf %54 : vector<8x32xf32> to vector<8x32xbf16>
    %cst_43 = arith.constant dense<0.000000e+00> : vector<8x128xf32>
    %57 = tpu.matmul %56, %6, %cst_43 {dimension_numbers = #tpu.dot_dimension_numbers<[1], [0], [0], [1], [0, 0, 1, 1], [], []>} : vector<8x32xbf16>, vector<32x128xbf16>, vector<8x128xf32> -> vector<8x128xf32>
    %58 = arith.addf %55, %57 : vector<8x128xf32>
    %59 = math.tanh %58 : vector<8x128xf32>
    %cst_44 = arith.constant 1.000000e+00 : f32
    %60 = vector.broadcast %cst_44 : f32 to vector<8x128xf32>
    %61 = arith.addf %59, %60 : vector<8x128xf32>
    %cst_45 = arith.constant 5.000000e-01 : f32
    %62 = vector.broadcast %cst_45 : f32 to vector<8x128xf32>
    %63 = arith.mulf %62, %61 : vector<8x128xf32>
    %64 = arith.select %27, %63, %59 : vector<8x128xi1>, vector<8x128xf32>
    %65 = vector.extract_strided_slice %64 {offsets = [0, 0], sizes = [8, 32], strides = [1, 1]} : vector<8x128xf32> to vector<8x32xf32>
    %66 = vector.extract_strided_slice %64 {offsets = [0, 32], sizes = [8, 32], strides = [1, 1]} : vector<8x128xf32> to vector<8x32xf32>
    %67 = vector.extract_strided_slice %64 {offsets = [0, 64], sizes = [8, 32], strides = [1, 1]} : vector<8x128xf32> to vector<8x32xf32>
    %68 = vector.extract_strided_slice %64 {offsets = [0, 96], sizes = [8, 32], strides = [1, 1]} : vector<8x128xf32> to vector<8x32xf32>
    %69 = arith.mulf %66, %52 : vector<8x32xf32>
    %70 = arith.mulf %65, %68 : vector<8x32xf32>
    %71 = arith.addf %69, %70 : vector<8x32xf32>
    %72 = math.tanh %71 : vector<8x32xf32>
    %73 = arith.mulf %67, %72 : vector<8x32xf32>
    %74 = arith.truncf %54 : vector<8x32xf32> to vector<8x32xbf16>
    %cst_46 = arith.constant dense<0.000000e+00> : vector<8x128xf32>
    %75 = tpu.matmul %74, %8, %cst_46 {dimension_numbers = #tpu.dot_dimension_numbers<[1], [0], [0], [1], [0, 0, 1, 1], [], []>} : vector<8x32xbf16>, vector<32x128xbf16>, vector<8x128xf32> -> vector<8x128xf32>
    %76 = arith.truncf %29 : vector<8x32xf32> to vector<8x32xbf16>
    %cst_47 = arith.constant dense<0.000000e+00> : vector<8x128xf32>
    %77 = tpu.matmul %76, %14, %cst_47 {dimension_numbers = #tpu.dot_dimension_numbers<[1], [0], [0], [1], [0, 0, 1, 1], [], []>} : vector<8x32xbf16>, vector<32x128xbf16>, vector<8x128xf32> -> vector<8x128xf32>
    %78 = arith.addf %75, %77 : vector<8x128xf32>
    %79 = vector.broadcast %20 : vector<1x128xf32> to vector<8x128xf32>
    %80 = arith.addf %78, %79 : vector<8x128xf32>
    %81 = math.tanh %80 : vector<8x128xf32>
    %cst_48 = arith.constant 1.000000e+00 : f32
    %82 = vector.broadcast %cst_48 : f32 to vector<8x128xf32>
    %83 = arith.addf %81, %82 : vector<8x128xf32>
    %cst_49 = arith.constant 5.000000e-01 : f32
    %84 = vector.broadcast %cst_49 : f32 to vector<8x128xf32>
    %85 = arith.mulf %84, %83 : vector<8x128xf32>
    %86 = arith.select %27, %85, %81 : vector<8x128xi1>, vector<8x128xf32>
    %87 = vector.extract_strided_slice %86 {offsets = [0, 0], sizes = [8, 32], strides = [1, 1]} : vector<8x128xf32> to vector<8x32xf32>
    %88 = vector.extract_strided_slice %86 {offsets = [0, 32], sizes = [8, 32], strides = [1, 1]} : vector<8x128xf32> to vector<8x32xf32>
    %89 = vector.extract_strided_slice %86 {offsets = [0, 64], sizes = [8, 32], strides = [1, 1]} : vector<8x128xf32> to vector<8x32xf32>
    %90 = vector.extract_strided_slice %86 {offsets = [0, 96], sizes = [8, 32], strides = [1, 1]} : vector<8x128xf32> to vector<8x32xf32>
    %91 = arith.mulf %88, %33 : vector<8x32xf32>
    %92 = arith.mulf %87, %90 : vector<8x32xf32>
    %93 = arith.addf %91, %92 : vector<8x32xf32>
    %94 = math.tanh %93 : vector<8x32xf32>
    %95 = arith.mulf %89, %94 : vector<8x32xf32>
    %96 = vector.extract_strided_slice %5 {offsets = [16, 0], sizes = [8, 128], strides = [1, 1]} : vector<64x128xf32> to vector<8x128xf32>
    %97 = arith.truncf %73 : vector<8x32xf32> to vector<8x32xbf16>
    %cst_50 = arith.constant dense<0.000000e+00> : vector<8x128xf32>
    %98 = tpu.matmul %97, %6, %cst_50 {dimension_numbers = #tpu.dot_dimension_numbers<[1], [0], [0], [1], [0, 0, 1, 1], [], []>} : vector<8x32xbf16>, vector<32x128xbf16>, vector<8x128xf32> -> vector<8x128xf32>
    %99 = arith.addf %96, %98 : vector<8x128xf32>
    %100 = math.tanh %99 : vector<8x128xf32>
    %cst_51 = arith.constant 1.000000e+00 : f32
    %101 = vector.broadcast %cst_51 : f32 to vector<8x128xf32>
    %102 = arith.addf %100, %101 : vector<8x128xf32>
    %cst_52 = arith.constant 5.000000e-01 : f32
    %103 = vector.broadcast %cst_52 : f32 to vector<8x128xf32>
    %104 = arith.mulf %103, %102 : vector<8x128xf32>
    %105 = arith.select %27, %104, %100 : vector<8x128xi1>, vector<8x128xf32>
    %106 = vector.extract_strided_slice %105 {offsets = [0, 0], sizes = [8, 32], strides = [1, 1]} : vector<8x128xf32> to vector<8x32xf32>
    %107 = vector.extract_strided_slice %105 {offsets = [0, 32], sizes = [8, 32], strides = [1, 1]} : vector<8x128xf32> to vector<8x32xf32>
    %108 = vector.extract_strided_slice %105 {offsets = [0, 64], sizes = [8, 32], strides = [1, 1]} : vector<8x128xf32> to vector<8x32xf32>
    %109 = vector.extract_strided_slice %105 {offsets = [0, 96], sizes = [8, 32], strides = [1, 1]} : vector<8x128xf32> to vector<8x32xf32>
    %110 = arith.mulf %107, %71 : vector<8x32xf32>
    %111 = arith.mulf %106, %109 : vector<8x32xf32>
    %112 = arith.addf %110, %111 : vector<8x32xf32>
    %113 = math.tanh %112 : vector<8x32xf32>
    %114 = arith.mulf %108, %113 : vector<8x32xf32>
    %115 = arith.truncf %73 : vector<8x32xf32> to vector<8x32xbf16>
    %cst_53 = arith.constant dense<0.000000e+00> : vector<8x128xf32>
    %116 = tpu.matmul %115, %8, %cst_53 {dimension_numbers = #tpu.dot_dimension_numbers<[1], [0], [0], [1], [0, 0, 1, 1], [], []>} : vector<8x32xbf16>, vector<32x128xbf16>, vector<8x128xf32> -> vector<8x128xf32>
    %117 = arith.truncf %95 : vector<8x32xf32> to vector<8x32xbf16>
    %cst_54 = arith.constant dense<0.000000e+00> : vector<8x128xf32>
    %118 = tpu.matmul %117, %14, %cst_54 {dimension_numbers = #tpu.dot_dimension_numbers<[1], [0], [0], [1], [0, 0, 1, 1], [], []>} : vector<8x32xbf16>, vector<32x128xbf16>, vector<8x128xf32> -> vector<8x128xf32>
    %119 = arith.addf %116, %118 : vector<8x128xf32>
    %120 = vector.broadcast %20 : vector<1x128xf32> to vector<8x128xf32>
    %121 = arith.addf %119, %120 : vector<8x128xf32>
    %122 = math.tanh %121 : vector<8x128xf32>
    %cst_55 = arith.constant 1.000000e+00 : f32
    %123 = vector.broadcast %cst_55 : f32 to vector<8x128xf32>
    %124 = arith.addf %122, %123 : vector<8x128xf32>
    %cst_56 = arith.constant 5.000000e-01 : f32
    %125 = vector.broadcast %cst_56 : f32 to vector<8x128xf32>
    %126 = arith.mulf %125, %124 : vector<8x128xf32>
    %127 = arith.select %27, %126, %122 : vector<8x128xi1>, vector<8x128xf32>
    %128 = vector.extract_strided_slice %127 {offsets = [0, 0], sizes = [8, 32], strides = [1, 1]} : vector<8x128xf32> to vector<8x32xf32>
    %129 = vector.extract_strided_slice %127 {offsets = [0, 32], sizes = [8, 32], strides = [1, 1]} : vector<8x128xf32> to vector<8x32xf32>
    %130 = vector.extract_strided_slice %127 {offsets = [0, 64], sizes = [8, 32], strides = [1, 1]} : vector<8x128xf32> to vector<8x32xf32>
    %131 = vector.extract_strided_slice %127 {offsets = [0, 96], sizes = [8, 32], strides = [1, 1]} : vector<8x128xf32> to vector<8x32xf32>
    %132 = arith.mulf %129, %93 : vector<8x32xf32>
    %133 = arith.mulf %128, %131 : vector<8x32xf32>
    %134 = arith.addf %132, %133 : vector<8x32xf32>
    %135 = math.tanh %134 : vector<8x32xf32>
    %136 = arith.mulf %130, %135 : vector<8x32xf32>
    %137 = arith.truncf %95 : vector<8x32xf32> to vector<8x32xbf16>
    %cst_57 = arith.constant dense<0.000000e+00> : vector<8x128xf32>
    %138 = tpu.matmul %137, %10, %cst_57 {dimension_numbers = #tpu.dot_dimension_numbers<[1], [0], [0], [1], [0, 0, 1, 1], [], []>} : vector<8x32xbf16>, vector<32x128xbf16>, vector<8x128xf32> -> vector<8x128xf32>
    %139 = arith.truncf %30 : vector<8x32xf32> to vector<8x32xbf16>
    %cst_58 = arith.constant dense<0.000000e+00> : vector<8x128xf32>
    %140 = tpu.matmul %139, %16, %cst_58 {dimension_numbers = #tpu.dot_dimension_numbers<[1], [0], [0], [1], [0, 0, 1, 1], [], []>} : vector<8x32xbf16>, vector<32x128xbf16>, vector<8x128xf32> -> vector<8x128xf32>
    %141 = arith.addf %138, %140 : vector<8x128xf32>
    %142 = vector.broadcast %22 : vector<1x128xf32> to vector<8x128xf32>
    %143 = arith.addf %141, %142 : vector<8x128xf32>
    %144 = math.tanh %143 : vector<8x128xf32>
    %cst_59 = arith.constant 1.000000e+00 : f32
    %145 = vector.broadcast %cst_59 : f32 to vector<8x128xf32>
    %146 = arith.addf %144, %145 : vector<8x128xf32>
    %cst_60 = arith.constant 5.000000e-01 : f32
    %147 = vector.broadcast %cst_60 : f32 to vector<8x128xf32>
    %148 = arith.mulf %147, %146 : vector<8x128xf32>
    %149 = arith.select %27, %148, %144 : vector<8x128xi1>, vector<8x128xf32>
    %150 = vector.extract_strided_slice %149 {offsets = [0, 0], sizes = [8, 32], strides = [1, 1]} : vector<8x128xf32> to vector<8x32xf32>
    %151 = vector.extract_strided_slice %149 {offsets = [0, 32], sizes = [8, 32], strides = [1, 1]} : vector<8x128xf32> to vector<8x32xf32>
    %152 = vector.extract_strided_slice %149 {offsets = [0, 64], sizes = [8, 32], strides = [1, 1]} : vector<8x128xf32> to vector<8x32xf32>
    %153 = vector.extract_strided_slice %149 {offsets = [0, 96], sizes = [8, 32], strides = [1, 1]} : vector<8x128xf32> to vector<8x32xf32>
    %154 = arith.mulf %151, %34 : vector<8x32xf32>
    %155 = arith.mulf %150, %153 : vector<8x32xf32>
    %156 = arith.addf %154, %155 : vector<8x32xf32>
    %157 = math.tanh %156 : vector<8x32xf32>
    %158 = arith.mulf %152, %157 : vector<8x32xf32>
    %159 = vector.extract_strided_slice %5 {offsets = [24, 0], sizes = [8, 128], strides = [1, 1]} : vector<64x128xf32> to vector<8x128xf32>
    %160 = arith.truncf %114 : vector<8x32xf32> to vector<8x32xbf16>
    %cst_61 = arith.constant dense<0.000000e+00> : vector<8x128xf32>
    %161 = tpu.matmul %160, %6, %cst_61 {dimension_numbers = #tpu.dot_dimension_numbers<[1], [0], [0], [1], [0, 0, 1, 1], [], []>} : vector<8x32xbf16>, vector<32x128xbf16>, vector<8x128xf32> -> vector<8x128xf32>
    %162 = arith.addf %159, %161 : vector<8x128xf32>
    %163 = math.tanh %162 : vector<8x128xf32>
    %cst_62 = arith.constant 1.000000e+00 : f32
    %164 = vector.broadcast %cst_62 : f32 to vector<8x128xf32>
    %165 = arith.addf %163, %164 : vector<8x128xf32>
    %cst_63 = arith.constant 5.000000e-01 : f32
    %166 = vector.broadcast %cst_63 : f32 to vector<8x128xf32>
    %167 = arith.mulf %166, %165 : vector<8x128xf32>
    %168 = arith.select %27, %167, %163 : vector<8x128xi1>, vector<8x128xf32>
    %169 = vector.extract_strided_slice %168 {offsets = [0, 0], sizes = [8, 32], strides = [1, 1]} : vector<8x128xf32> to vector<8x32xf32>
    %170 = vector.extract_strided_slice %168 {offsets = [0, 32], sizes = [8, 32], strides = [1, 1]} : vector<8x128xf32> to vector<8x32xf32>
    %171 = vector.extract_strided_slice %168 {offsets = [0, 64], sizes = [8, 32], strides = [1, 1]} : vector<8x128xf32> to vector<8x32xf32>
    %172 = vector.extract_strided_slice %168 {offsets = [0, 96], sizes = [8, 32], strides = [1, 1]} : vector<8x128xf32> to vector<8x32xf32>
    %173 = arith.mulf %170, %112 : vector<8x32xf32>
    %174 = arith.mulf %169, %172 : vector<8x32xf32>
    %175 = arith.addf %173, %174 : vector<8x32xf32>
    %176 = math.tanh %175 : vector<8x32xf32>
    %177 = arith.mulf %171, %176 : vector<8x32xf32>
    %178 = arith.truncf %114 : vector<8x32xf32> to vector<8x32xbf16>
    %cst_64 = arith.constant dense<0.000000e+00> : vector<8x128xf32>
    %179 = tpu.matmul %178, %8, %cst_64 {dimension_numbers = #tpu.dot_dimension_numbers<[1], [0], [0], [1], [0, 0, 1, 1], [], []>} : vector<8x32xbf16>, vector<32x128xbf16>, vector<8x128xf32> -> vector<8x128xf32>
    %180 = arith.truncf %136 : vector<8x32xf32> to vector<8x32xbf16>
    %cst_65 = arith.constant dense<0.000000e+00> : vector<8x128xf32>
    %181 = tpu.matmul %180, %14, %cst_65 {dimension_numbers = #tpu.dot_dimension_numbers<[1], [0], [0], [1], [0, 0, 1, 1], [], []>} : vector<8x32xbf16>, vector<32x128xbf16>, vector<8x128xf32> -> vector<8x128xf32>
    %182 = arith.addf %179, %181 : vector<8x128xf32>
    %183 = vector.broadcast %20 : vector<1x128xf32> to vector<8x128xf32>
    %184 = arith.addf %182, %183 : vector<8x128xf32>
    %185 = math.tanh %184 : vector<8x128xf32>
    %cst_66 = arith.constant 1.000000e+00 : f32
    %186 = vector.broadcast %cst_66 : f32 to vector<8x128xf32>
    %187 = arith.addf %185, %186 : vector<8x128xf32>
    %cst_67 = arith.constant 5.000000e-01 : f32
    %188 = vector.broadcast %cst_67 : f32 to vector<8x128xf32>
    %189 = arith.mulf %188, %187 : vector<8x128xf32>
    %190 = arith.select %27, %189, %185 : vector<8x128xi1>, vector<8x128xf32>
    %191 = vector.extract_strided_slice %190 {offsets = [0, 0], sizes = [8, 32], strides = [1, 1]} : vector<8x128xf32> to vector<8x32xf32>
    %192 = vector.extract_strided_slice %190 {offsets = [0, 32], sizes = [8, 32], strides = [1, 1]} : vector<8x128xf32> to vector<8x32xf32>
    %193 = vector.extract_strided_slice %190 {offsets = [0, 64], sizes = [8, 32], strides = [1, 1]} : vector<8x128xf32> to vector<8x32xf32>
    %194 = vector.extract_strided_slice %190 {offsets = [0, 96], sizes = [8, 32], strides = [1, 1]} : vector<8x128xf32> to vector<8x32xf32>
    %195 = arith.mulf %192, %134 : vector<8x32xf32>
    %196 = arith.mulf %191, %194 : vector<8x32xf32>
    %197 = arith.addf %195, %196 : vector<8x32xf32>
    %198 = math.tanh %197 : vector<8x32xf32>
    %199 = arith.mulf %193, %198 : vector<8x32xf32>
    %200 = arith.truncf %136 : vector<8x32xf32> to vector<8x32xbf16>
    %cst_68 = arith.constant dense<0.000000e+00> : vector<8x128xf32>
    %201 = tpu.matmul %200, %10, %cst_68 {dimension_numbers = #tpu.dot_dimension_numbers<[1], [0], [0], [1], [0, 0, 1, 1], [], []>} : vector<8x32xbf16>, vector<32x128xbf16>, vector<8x128xf32> -> vector<8x128xf32>
    %202 = arith.truncf %158 : vector<8x32xf32> to vector<8x32xbf16>
    %cst_69 = arith.constant dense<0.000000e+00> : vector<8x128xf32>
    %203 = tpu.matmul %202, %16, %cst_69 {dimension_numbers = #tpu.dot_dimension_numbers<[1], [0], [0], [1], [0, 0, 1, 1], [], []>} : vector<8x32xbf16>, vector<32x128xbf16>, vector<8x128xf32> -> vector<8x128xf32>
    %204 = arith.addf %201, %203 : vector<8x128xf32>
    %205 = vector.broadcast %22 : vector<1x128xf32> to vector<8x128xf32>
    %206 = arith.addf %204, %205 : vector<8x128xf32>
    %207 = math.tanh %206 : vector<8x128xf32>
    %cst_70 = arith.constant 1.000000e+00 : f32
    %208 = vector.broadcast %cst_70 : f32 to vector<8x128xf32>
    %209 = arith.addf %207, %208 : vector<8x128xf32>
    %cst_71 = arith.constant 5.000000e-01 : f32
    %210 = vector.broadcast %cst_71 : f32 to vector<8x128xf32>
    %211 = arith.mulf %210, %209 : vector<8x128xf32>
    %212 = arith.select %27, %211, %207 : vector<8x128xi1>, vector<8x128xf32>
    %213 = vector.extract_strided_slice %212 {offsets = [0, 0], sizes = [8, 32], strides = [1, 1]} : vector<8x128xf32> to vector<8x32xf32>
    %214 = vector.extract_strided_slice %212 {offsets = [0, 32], sizes = [8, 32], strides = [1, 1]} : vector<8x128xf32> to vector<8x32xf32>
    %215 = vector.extract_strided_slice %212 {offsets = [0, 64], sizes = [8, 32], strides = [1, 1]} : vector<8x128xf32> to vector<8x32xf32>
    %216 = vector.extract_strided_slice %212 {offsets = [0, 96], sizes = [8, 32], strides = [1, 1]} : vector<8x128xf32> to vector<8x32xf32>
    %217 = arith.mulf %214, %156 : vector<8x32xf32>
    %218 = arith.mulf %213, %216 : vector<8x32xf32>
    %219 = arith.addf %217, %218 : vector<8x32xf32>
    %220 = math.tanh %219 : vector<8x32xf32>
    %221 = arith.mulf %215, %220 : vector<8x32xf32>
    %222 = arith.truncf %158 : vector<8x32xf32> to vector<8x32xbf16>
    %cst_72 = arith.constant dense<0.000000e+00> : vector<8x128xf32>
    %223 = tpu.matmul %222, %12, %cst_72 {dimension_numbers = #tpu.dot_dimension_numbers<[1], [0], [0], [1], [0, 0, 1, 1], [], []>} : vector<8x32xbf16>, vector<32x128xbf16>, vector<8x128xf32> -> vector<8x128xf32>
    %224 = arith.truncf %31 : vector<8x32xf32> to vector<8x32xbf16>
    %cst_73 = arith.constant dense<0.000000e+00> : vector<8x128xf32>
    %225 = tpu.matmul %224, %18, %cst_73 {dimension_numbers = #tpu.dot_dimension_numbers<[1], [0], [0], [1], [0, 0, 1, 1], [], []>} : vector<8x32xbf16>, vector<32x128xbf16>, vector<8x128xf32> -> vector<8x128xf32>
    %226 = arith.addf %223, %225 : vector<8x128xf32>
    %227 = vector.broadcast %24 : vector<1x128xf32> to vector<8x128xf32>
    %228 = arith.addf %226, %227 : vector<8x128xf32>
    %229 = math.tanh %228 : vector<8x128xf32>
    %cst_74 = arith.constant 1.000000e+00 : f32
    %230 = vector.broadcast %cst_74 : f32 to vector<8x128xf32>
    %231 = arith.addf %229, %230 : vector<8x128xf32>
    %cst_75 = arith.constant 5.000000e-01 : f32
    %232 = vector.broadcast %cst_75 : f32 to vector<8x128xf32>
    %233 = arith.mulf %232, %231 : vector<8x128xf32>
    %234 = arith.select %27, %233, %229 : vector<8x128xi1>, vector<8x128xf32>
    %235 = vector.extract_strided_slice %234 {offsets = [0, 0], sizes = [8, 32], strides = [1, 1]} : vector<8x128xf32> to vector<8x32xf32>
    %236 = vector.extract_strided_slice %234 {offsets = [0, 32], sizes = [8, 32], strides = [1, 1]} : vector<8x128xf32> to vector<8x32xf32>
    %237 = vector.extract_strided_slice %234 {offsets = [0, 64], sizes = [8, 32], strides = [1, 1]} : vector<8x128xf32> to vector<8x32xf32>
    %238 = vector.extract_strided_slice %234 {offsets = [0, 96], sizes = [8, 32], strides = [1, 1]} : vector<8x128xf32> to vector<8x32xf32>
    %239 = arith.mulf %236, %35 : vector<8x32xf32>
    %240 = arith.mulf %235, %238 : vector<8x32xf32>
    %241 = arith.addf %239, %240 : vector<8x32xf32>
    %242 = math.tanh %241 : vector<8x32xf32>
    %243 = arith.mulf %237, %242 : vector<8x32xf32>
    %244 = vector.extract_strided_slice %5 {offsets = [32, 0], sizes = [8, 128], strides = [1, 1]} : vector<64x128xf32> to vector<8x128xf32>
    %245 = arith.truncf %177 : vector<8x32xf32> to vector<8x32xbf16>
    %cst_76 = arith.constant dense<0.000000e+00> : vector<8x128xf32>
    %246 = tpu.matmul %245, %6, %cst_76 {dimension_numbers = #tpu.dot_dimension_numbers<[1], [0], [0], [1], [0, 0, 1, 1], [], []>} : vector<8x32xbf16>, vector<32x128xbf16>, vector<8x128xf32> -> vector<8x128xf32>
    %247 = arith.addf %244, %246 : vector<8x128xf32>
    %248 = math.tanh %247 : vector<8x128xf32>
    %cst_77 = arith.constant 1.000000e+00 : f32
    %249 = vector.broadcast %cst_77 : f32 to vector<8x128xf32>
    %250 = arith.addf %248, %249 : vector<8x128xf32>
    %cst_78 = arith.constant 5.000000e-01 : f32
    %251 = vector.broadcast %cst_78 : f32 to vector<8x128xf32>
    %252 = arith.mulf %251, %250 : vector<8x128xf32>
    %253 = arith.select %27, %252, %248 : vector<8x128xi1>, vector<8x128xf32>
    %254 = vector.extract_strided_slice %253 {offsets = [0, 0], sizes = [8, 32], strides = [1, 1]} : vector<8x128xf32> to vector<8x32xf32>
    %255 = vector.extract_strided_slice %253 {offsets = [0, 32], sizes = [8, 32], strides = [1, 1]} : vector<8x128xf32> to vector<8x32xf32>
    %256 = vector.extract_strided_slice %253 {offsets = [0, 64], sizes = [8, 32], strides = [1, 1]} : vector<8x128xf32> to vector<8x32xf32>
    %257 = vector.extract_strided_slice %253 {offsets = [0, 96], sizes = [8, 32], strides = [1, 1]} : vector<8x128xf32> to vector<8x32xf32>
    %258 = arith.mulf %255, %175 : vector<8x32xf32>
    %259 = arith.mulf %254, %257 : vector<8x32xf32>
    %260 = arith.addf %258, %259 : vector<8x32xf32>
    %261 = math.tanh %260 : vector<8x32xf32>
    %262 = arith.mulf %256, %261 : vector<8x32xf32>
    %263 = arith.truncf %177 : vector<8x32xf32> to vector<8x32xbf16>
    %cst_79 = arith.constant dense<0.000000e+00> : vector<8x128xf32>
    %264 = tpu.matmul %263, %8, %cst_79 {dimension_numbers = #tpu.dot_dimension_numbers<[1], [0], [0], [1], [0, 0, 1, 1], [], []>} : vector<8x32xbf16>, vector<32x128xbf16>, vector<8x128xf32> -> vector<8x128xf32>
    %265 = arith.truncf %199 : vector<8x32xf32> to vector<8x32xbf16>
    %cst_80 = arith.constant dense<0.000000e+00> : vector<8x128xf32>
    %266 = tpu.matmul %265, %14, %cst_80 {dimension_numbers = #tpu.dot_dimension_numbers<[1], [0], [0], [1], [0, 0, 1, 1], [], []>} : vector<8x32xbf16>, vector<32x128xbf16>, vector<8x128xf32> -> vector<8x128xf32>
    %267 = arith.addf %264, %266 : vector<8x128xf32>
    %268 = vector.broadcast %20 : vector<1x128xf32> to vector<8x128xf32>
    %269 = arith.addf %267, %268 : vector<8x128xf32>
    %270 = math.tanh %269 : vector<8x128xf32>
    %cst_81 = arith.constant 1.000000e+00 : f32
    %271 = vector.broadcast %cst_81 : f32 to vector<8x128xf32>
    %272 = arith.addf %270, %271 : vector<8x128xf32>
    %cst_82 = arith.constant 5.000000e-01 : f32
    %273 = vector.broadcast %cst_82 : f32 to vector<8x128xf32>
    %274 = arith.mulf %273, %272 : vector<8x128xf32>
    %275 = arith.select %27, %274, %270 : vector<8x128xi1>, vector<8x128xf32>
    %276 = vector.extract_strided_slice %275 {offsets = [0, 0], sizes = [8, 32], strides = [1, 1]} : vector<8x128xf32> to vector<8x32xf32>
    %277 = vector.extract_strided_slice %275 {offsets = [0, 32], sizes = [8, 32], strides = [1, 1]} : vector<8x128xf32> to vector<8x32xf32>
    %278 = vector.extract_strided_slice %275 {offsets = [0, 64], sizes = [8, 32], strides = [1, 1]} : vector<8x128xf32> to vector<8x32xf32>
    %279 = vector.extract_strided_slice %275 {offsets = [0, 96], sizes = [8, 32], strides = [1, 1]} : vector<8x128xf32> to vector<8x32xf32>
    %280 = arith.mulf %277, %197 : vector<8x32xf32>
    %281 = arith.mulf %276, %279 : vector<8x32xf32>
    %282 = arith.addf %280, %281 : vector<8x32xf32>
    %283 = math.tanh %282 : vector<8x32xf32>
    %284 = arith.mulf %278, %283 : vector<8x32xf32>
    %285 = arith.truncf %199 : vector<8x32xf32> to vector<8x32xbf16>
    %cst_83 = arith.constant dense<0.000000e+00> : vector<8x128xf32>
    %286 = tpu.matmul %285, %10, %cst_83 {dimension_numbers = #tpu.dot_dimension_numbers<[1], [0], [0], [1], [0, 0, 1, 1], [], []>} : vector<8x32xbf16>, vector<32x128xbf16>, vector<8x128xf32> -> vector<8x128xf32>
    %287 = arith.truncf %221 : vector<8x32xf32> to vector<8x32xbf16>
    %cst_84 = arith.constant dense<0.000000e+00> : vector<8x128xf32>
    %288 = tpu.matmul %287, %16, %cst_84 {dimension_numbers = #tpu.dot_dimension_numbers<[1], [0], [0], [1], [0, 0, 1, 1], [], []>} : vector<8x32xbf16>, vector<32x128xbf16>, vector<8x128xf32> -> vector<8x128xf32>
    %289 = arith.addf %286, %288 : vector<8x128xf32>
    %290 = vector.broadcast %22 : vector<1x128xf32> to vector<8x128xf32>
    %291 = arith.addf %289, %290 : vector<8x128xf32>
    %292 = math.tanh %291 : vector<8x128xf32>
    %cst_85 = arith.constant 1.000000e+00 : f32
    %293 = vector.broadcast %cst_85 : f32 to vector<8x128xf32>
    %294 = arith.addf %292, %293 : vector<8x128xf32>
    %cst_86 = arith.constant 5.000000e-01 : f32
    %295 = vector.broadcast %cst_86 : f32 to vector<8x128xf32>
    %296 = arith.mulf %295, %294 : vector<8x128xf32>
    %297 = arith.select %27, %296, %292 : vector<8x128xi1>, vector<8x128xf32>
    %298 = vector.extract_strided_slice %297 {offsets = [0, 0], sizes = [8, 32], strides = [1, 1]} : vector<8x128xf32> to vector<8x32xf32>
    %299 = vector.extract_strided_slice %297 {offsets = [0, 32], sizes = [8, 32], strides = [1, 1]} : vector<8x128xf32> to vector<8x32xf32>
    %300 = vector.extract_strided_slice %297 {offsets = [0, 64], sizes = [8, 32], strides = [1, 1]} : vector<8x128xf32> to vector<8x32xf32>
    %301 = vector.extract_strided_slice %297 {offsets = [0, 96], sizes = [8, 32], strides = [1, 1]} : vector<8x128xf32> to vector<8x32xf32>
    %302 = arith.mulf %299, %219 : vector<8x32xf32>
    %303 = arith.mulf %298, %301 : vector<8x32xf32>
    %304 = arith.addf %302, %303 : vector<8x32xf32>
    %305 = math.tanh %304 : vector<8x32xf32>
    %306 = arith.mulf %300, %305 : vector<8x32xf32>
    %307 = arith.truncf %221 : vector<8x32xf32> to vector<8x32xbf16>
    %cst_87 = arith.constant dense<0.000000e+00> : vector<8x128xf32>
    %308 = tpu.matmul %307, %12, %cst_87 {dimension_numbers = #tpu.dot_dimension_numbers<[1], [0], [0], [1], [0, 0, 1, 1], [], []>} : vector<8x32xbf16>, vector<32x128xbf16>, vector<8x128xf32> -> vector<8x128xf32>
    %309 = arith.truncf %243 : vector<8x32xf32> to vector<8x32xbf16>
    %cst_88 = arith.constant dense<0.000000e+00> : vector<8x128xf32>
    %310 = tpu.matmul %309, %18, %cst_88 {dimension_numbers = #tpu.dot_dimension_numbers<[1], [0], [0], [1], [0, 0, 1, 1], [], []>} : vector<8x32xbf16>, vector<32x128xbf16>, vector<8x128xf32> -> vector<8x128xf32>
    %311 = arith.addf %308, %310 : vector<8x128xf32>
    %312 = vector.broadcast %24 : vector<1x128xf32> to vector<8x128xf32>
    %313 = arith.addf %311, %312 : vector<8x128xf32>
    %314 = math.tanh %313 : vector<8x128xf32>
    %cst_89 = arith.constant 1.000000e+00 : f32
    %315 = vector.broadcast %cst_89 : f32 to vector<8x128xf32>
    %316 = arith.addf %314, %315 : vector<8x128xf32>
    %cst_90 = arith.constant 5.000000e-01 : f32
    %317 = vector.broadcast %cst_90 : f32 to vector<8x128xf32>
    %318 = arith.mulf %317, %316 : vector<8x128xf32>
    %319 = arith.select %27, %318, %314 : vector<8x128xi1>, vector<8x128xf32>
    %320 = vector.extract_strided_slice %319 {offsets = [0, 0], sizes = [8, 32], strides = [1, 1]} : vector<8x128xf32> to vector<8x32xf32>
    %321 = vector.extract_strided_slice %319 {offsets = [0, 32], sizes = [8, 32], strides = [1, 1]} : vector<8x128xf32> to vector<8x32xf32>
    %322 = vector.extract_strided_slice %319 {offsets = [0, 64], sizes = [8, 32], strides = [1, 1]} : vector<8x128xf32> to vector<8x32xf32>
    %323 = vector.extract_strided_slice %319 {offsets = [0, 96], sizes = [8, 32], strides = [1, 1]} : vector<8x128xf32> to vector<8x32xf32>
    %324 = arith.mulf %321, %241 : vector<8x32xf32>
    %325 = arith.mulf %320, %323 : vector<8x32xf32>
    %326 = arith.addf %324, %325 : vector<8x32xf32>
    %327 = math.tanh %326 : vector<8x32xf32>
    %328 = arith.mulf %322, %327 : vector<8x32xf32>
    %329 = vector.extract_strided_slice %5 {offsets = [40, 0], sizes = [8, 128], strides = [1, 1]} : vector<64x128xf32> to vector<8x128xf32>
    %330 = arith.truncf %262 : vector<8x32xf32> to vector<8x32xbf16>
    %cst_91 = arith.constant dense<0.000000e+00> : vector<8x128xf32>
    %331 = tpu.matmul %330, %6, %cst_91 {dimension_numbers = #tpu.dot_dimension_numbers<[1], [0], [0], [1], [0, 0, 1, 1], [], []>} : vector<8x32xbf16>, vector<32x128xbf16>, vector<8x128xf32> -> vector<8x128xf32>
    %332 = arith.addf %329, %331 : vector<8x128xf32>
    %333 = math.tanh %332 : vector<8x128xf32>
    %cst_92 = arith.constant 1.000000e+00 : f32
    %334 = vector.broadcast %cst_92 : f32 to vector<8x128xf32>
    %335 = arith.addf %333, %334 : vector<8x128xf32>
    %cst_93 = arith.constant 5.000000e-01 : f32
    %336 = vector.broadcast %cst_93 : f32 to vector<8x128xf32>
    %337 = arith.mulf %336, %335 : vector<8x128xf32>
    %338 = arith.select %27, %337, %333 : vector<8x128xi1>, vector<8x128xf32>
    %339 = vector.extract_strided_slice %338 {offsets = [0, 0], sizes = [8, 32], strides = [1, 1]} : vector<8x128xf32> to vector<8x32xf32>
    %340 = vector.extract_strided_slice %338 {offsets = [0, 32], sizes = [8, 32], strides = [1, 1]} : vector<8x128xf32> to vector<8x32xf32>
    %341 = vector.extract_strided_slice %338 {offsets = [0, 64], sizes = [8, 32], strides = [1, 1]} : vector<8x128xf32> to vector<8x32xf32>
    %342 = vector.extract_strided_slice %338 {offsets = [0, 96], sizes = [8, 32], strides = [1, 1]} : vector<8x128xf32> to vector<8x32xf32>
    %343 = arith.mulf %340, %260 : vector<8x32xf32>
    %344 = arith.mulf %339, %342 : vector<8x32xf32>
    %345 = arith.addf %343, %344 : vector<8x32xf32>
    %346 = math.tanh %345 : vector<8x32xf32>
    %347 = arith.mulf %341, %346 : vector<8x32xf32>
    %348 = arith.truncf %262 : vector<8x32xf32> to vector<8x32xbf16>
    %cst_94 = arith.constant dense<0.000000e+00> : vector<8x128xf32>
    %349 = tpu.matmul %348, %8, %cst_94 {dimension_numbers = #tpu.dot_dimension_numbers<[1], [0], [0], [1], [0, 0, 1, 1], [], []>} : vector<8x32xbf16>, vector<32x128xbf16>, vector<8x128xf32> -> vector<8x128xf32>
    %350 = arith.truncf %284 : vector<8x32xf32> to vector<8x32xbf16>
    %cst_95 = arith.constant dense<0.000000e+00> : vector<8x128xf32>
    %351 = tpu.matmul %350, %14, %cst_95 {dimension_numbers = #tpu.dot_dimension_numbers<[1], [0], [0], [1], [0, 0, 1, 1], [], []>} : vector<8x32xbf16>, vector<32x128xbf16>, vector<8x128xf32> -> vector<8x128xf32>
    %352 = arith.addf %349, %351 : vector<8x128xf32>
    %353 = vector.broadcast %20 : vector<1x128xf32> to vector<8x128xf32>
    %354 = arith.addf %352, %353 : vector<8x128xf32>
    %355 = math.tanh %354 : vector<8x128xf32>
    %cst_96 = arith.constant 1.000000e+00 : f32
    %356 = vector.broadcast %cst_96 : f32 to vector<8x128xf32>
    %357 = arith.addf %355, %356 : vector<8x128xf32>
    %cst_97 = arith.constant 5.000000e-01 : f32
    %358 = vector.broadcast %cst_97 : f32 to vector<8x128xf32>
    %359 = arith.mulf %358, %357 : vector<8x128xf32>
    %360 = arith.select %27, %359, %355 : vector<8x128xi1>, vector<8x128xf32>
    %361 = vector.extract_strided_slice %360 {offsets = [0, 0], sizes = [8, 32], strides = [1, 1]} : vector<8x128xf32> to vector<8x32xf32>
    %362 = vector.extract_strided_slice %360 {offsets = [0, 32], sizes = [8, 32], strides = [1, 1]} : vector<8x128xf32> to vector<8x32xf32>
    %363 = vector.extract_strided_slice %360 {offsets = [0, 64], sizes = [8, 32], strides = [1, 1]} : vector<8x128xf32> to vector<8x32xf32>
    %364 = vector.extract_strided_slice %360 {offsets = [0, 96], sizes = [8, 32], strides = [1, 1]} : vector<8x128xf32> to vector<8x32xf32>
    %365 = arith.mulf %362, %282 : vector<8x32xf32>
    %366 = arith.mulf %361, %364 : vector<8x32xf32>
    %367 = arith.addf %365, %366 : vector<8x32xf32>
    %368 = math.tanh %367 : vector<8x32xf32>
    %369 = arith.mulf %363, %368 : vector<8x32xf32>
    %370 = arith.truncf %284 : vector<8x32xf32> to vector<8x32xbf16>
    %cst_98 = arith.constant dense<0.000000e+00> : vector<8x128xf32>
    %371 = tpu.matmul %370, %10, %cst_98 {dimension_numbers = #tpu.dot_dimension_numbers<[1], [0], [0], [1], [0, 0, 1, 1], [], []>} : vector<8x32xbf16>, vector<32x128xbf16>, vector<8x128xf32> -> vector<8x128xf32>
    %372 = arith.truncf %306 : vector<8x32xf32> to vector<8x32xbf16>
    %cst_99 = arith.constant dense<0.000000e+00> : vector<8x128xf32>
    %373 = tpu.matmul %372, %16, %cst_99 {dimension_numbers = #tpu.dot_dimension_numbers<[1], [0], [0], [1], [0, 0, 1, 1], [], []>} : vector<8x32xbf16>, vector<32x128xbf16>, vector<8x128xf32> -> vector<8x128xf32>
    %374 = arith.addf %371, %373 : vector<8x128xf32>
    %375 = vector.broadcast %22 : vector<1x128xf32> to vector<8x128xf32>
    %376 = arith.addf %374, %375 : vector<8x128xf32>
    %377 = math.tanh %376 : vector<8x128xf32>
    %cst_100 = arith.constant 1.000000e+00 : f32
    %378 = vector.broadcast %cst_100 : f32 to vector<8x128xf32>
    %379 = arith.addf %377, %378 : vector<8x128xf32>
    %cst_101 = arith.constant 5.000000e-01 : f32
    %380 = vector.broadcast %cst_101 : f32 to vector<8x128xf32>
    %381 = arith.mulf %380, %379 : vector<8x128xf32>
    %382 = arith.select %27, %381, %377 : vector<8x128xi1>, vector<8x128xf32>
    %383 = vector.extract_strided_slice %382 {offsets = [0, 0], sizes = [8, 32], strides = [1, 1]} : vector<8x128xf32> to vector<8x32xf32>
    %384 = vector.extract_strided_slice %382 {offsets = [0, 32], sizes = [8, 32], strides = [1, 1]} : vector<8x128xf32> to vector<8x32xf32>
    %385 = vector.extract_strided_slice %382 {offsets = [0, 64], sizes = [8, 32], strides = [1, 1]} : vector<8x128xf32> to vector<8x32xf32>
    %386 = vector.extract_strided_slice %382 {offsets = [0, 96], sizes = [8, 32], strides = [1, 1]} : vector<8x128xf32> to vector<8x32xf32>
    %387 = arith.mulf %384, %304 : vector<8x32xf32>
    %388 = arith.mulf %383, %386 : vector<8x32xf32>
    %389 = arith.addf %387, %388 : vector<8x32xf32>
    %390 = math.tanh %389 : vector<8x32xf32>
    %391 = arith.mulf %385, %390 : vector<8x32xf32>
    %392 = arith.truncf %306 : vector<8x32xf32> to vector<8x32xbf16>
    %cst_102 = arith.constant dense<0.000000e+00> : vector<8x128xf32>
    %393 = tpu.matmul %392, %12, %cst_102 {dimension_numbers = #tpu.dot_dimension_numbers<[1], [0], [0], [1], [0, 0, 1, 1], [], []>} : vector<8x32xbf16>, vector<32x128xbf16>, vector<8x128xf32> -> vector<8x128xf32>
    %394 = arith.truncf %328 : vector<8x32xf32> to vector<8x32xbf16>
    %cst_103 = arith.constant dense<0.000000e+00> : vector<8x128xf32>
    %395 = tpu.matmul %394, %18, %cst_103 {dimension_numbers = #tpu.dot_dimension_numbers<[1], [0], [0], [1], [0, 0, 1, 1], [], []>} : vector<8x32xbf16>, vector<32x128xbf16>, vector<8x128xf32> -> vector<8x128xf32>
    %396 = arith.addf %393, %395 : vector<8x128xf32>
    %397 = vector.broadcast %24 : vector<1x128xf32> to vector<8x128xf32>
    %398 = arith.addf %396, %397 : vector<8x128xf32>
    %399 = math.tanh %398 : vector<8x128xf32>
    %cst_104 = arith.constant 1.000000e+00 : f32
    %400 = vector.broadcast %cst_104 : f32 to vector<8x128xf32>
    %401 = arith.addf %399, %400 : vector<8x128xf32>
    %cst_105 = arith.constant 5.000000e-01 : f32
    %402 = vector.broadcast %cst_105 : f32 to vector<8x128xf32>
    %403 = arith.mulf %402, %401 : vector<8x128xf32>
    %404 = arith.select %27, %403, %399 : vector<8x128xi1>, vector<8x128xf32>
    %405 = vector.extract_strided_slice %404 {offsets = [0, 0], sizes = [8, 32], strides = [1, 1]} : vector<8x128xf32> to vector<8x32xf32>
    %406 = vector.extract_strided_slice %404 {offsets = [0, 32], sizes = [8, 32], strides = [1, 1]} : vector<8x128xf32> to vector<8x32xf32>
    %407 = vector.extract_strided_slice %404 {offsets = [0, 64], sizes = [8, 32], strides = [1, 1]} : vector<8x128xf32> to vector<8x32xf32>
    %408 = vector.extract_strided_slice %404 {offsets = [0, 96], sizes = [8, 32], strides = [1, 1]} : vector<8x128xf32> to vector<8x32xf32>
    %409 = arith.mulf %406, %326 : vector<8x32xf32>
    %410 = arith.mulf %405, %408 : vector<8x32xf32>
    %411 = arith.addf %409, %410 : vector<8x32xf32>
    %412 = math.tanh %411 : vector<8x32xf32>
    %413 = arith.mulf %407, %412 : vector<8x32xf32>
    %414 = vector.extract_strided_slice %5 {offsets = [48, 0], sizes = [8, 128], strides = [1, 1]} : vector<64x128xf32> to vector<8x128xf32>
    %415 = arith.truncf %347 : vector<8x32xf32> to vector<8x32xbf16>
    %cst_106 = arith.constant dense<0.000000e+00> : vector<8x128xf32>
    %416 = tpu.matmul %415, %6, %cst_106 {dimension_numbers = #tpu.dot_dimension_numbers<[1], [0], [0], [1], [0, 0, 1, 1], [], []>} : vector<8x32xbf16>, vector<32x128xbf16>, vector<8x128xf32> -> vector<8x128xf32>
    %417 = arith.addf %414, %416 : vector<8x128xf32>
    %418 = math.tanh %417 : vector<8x128xf32>
    %cst_107 = arith.constant 1.000000e+00 : f32
    %419 = vector.broadcast %cst_107 : f32 to vector<8x128xf32>
    %420 = arith.addf %418, %419 : vector<8x128xf32>
    %cst_108 = arith.constant 5.000000e-01 : f32
    %421 = vector.broadcast %cst_108 : f32 to vector<8x128xf32>
    %422 = arith.mulf %421, %420 : vector<8x128xf32>
    %423 = arith.select %27, %422, %418 : vector<8x128xi1>, vector<8x128xf32>
    %424 = vector.extract_strided_slice %423 {offsets = [0, 0], sizes = [8, 32], strides = [1, 1]} : vector<8x128xf32> to vector<8x32xf32>
    %425 = vector.extract_strided_slice %423 {offsets = [0, 32], sizes = [8, 32], strides = [1, 1]} : vector<8x128xf32> to vector<8x32xf32>
    %426 = vector.extract_strided_slice %423 {offsets = [0, 64], sizes = [8, 32], strides = [1, 1]} : vector<8x128xf32> to vector<8x32xf32>
    %427 = vector.extract_strided_slice %423 {offsets = [0, 96], sizes = [8, 32], strides = [1, 1]} : vector<8x128xf32> to vector<8x32xf32>
    %428 = arith.mulf %425, %345 : vector<8x32xf32>
    %429 = arith.mulf %424, %427 : vector<8x32xf32>
    %430 = arith.addf %428, %429 : vector<8x32xf32>
    %431 = math.tanh %430 : vector<8x32xf32>
    %432 = arith.mulf %426, %431 : vector<8x32xf32>
    %433 = arith.truncf %347 : vector<8x32xf32> to vector<8x32xbf16>
    %cst_109 = arith.constant dense<0.000000e+00> : vector<8x128xf32>
    %434 = tpu.matmul %433, %8, %cst_109 {dimension_numbers = #tpu.dot_dimension_numbers<[1], [0], [0], [1], [0, 0, 1, 1], [], []>} : vector<8x32xbf16>, vector<32x128xbf16>, vector<8x128xf32> -> vector<8x128xf32>
    %435 = arith.truncf %369 : vector<8x32xf32> to vector<8x32xbf16>
    %cst_110 = arith.constant dense<0.000000e+00> : vector<8x128xf32>
    %436 = tpu.matmul %435, %14, %cst_110 {dimension_numbers = #tpu.dot_dimension_numbers<[1], [0], [0], [1], [0, 0, 1, 1], [], []>} : vector<8x32xbf16>, vector<32x128xbf16>, vector<8x128xf32> -> vector<8x128xf32>
    %437 = arith.addf %434, %436 : vector<8x128xf32>
    %438 = vector.broadcast %20 : vector<1x128xf32> to vector<8x128xf32>
    %439 = arith.addf %437, %438 : vector<8x128xf32>
    %440 = math.tanh %439 : vector<8x128xf32>
    %cst_111 = arith.constant 1.000000e+00 : f32
    %441 = vector.broadcast %cst_111 : f32 to vector<8x128xf32>
    %442 = arith.addf %440, %441 : vector<8x128xf32>
    %cst_112 = arith.constant 5.000000e-01 : f32
    %443 = vector.broadcast %cst_112 : f32 to vector<8x128xf32>
    %444 = arith.mulf %443, %442 : vector<8x128xf32>
    %445 = arith.select %27, %444, %440 : vector<8x128xi1>, vector<8x128xf32>
    %446 = vector.extract_strided_slice %445 {offsets = [0, 0], sizes = [8, 32], strides = [1, 1]} : vector<8x128xf32> to vector<8x32xf32>
    %447 = vector.extract_strided_slice %445 {offsets = [0, 32], sizes = [8, 32], strides = [1, 1]} : vector<8x128xf32> to vector<8x32xf32>
    %448 = vector.extract_strided_slice %445 {offsets = [0, 64], sizes = [8, 32], strides = [1, 1]} : vector<8x128xf32> to vector<8x32xf32>
    %449 = vector.extract_strided_slice %445 {offsets = [0, 96], sizes = [8, 32], strides = [1, 1]} : vector<8x128xf32> to vector<8x32xf32>
    %450 = arith.mulf %447, %367 : vector<8x32xf32>
    %451 = arith.mulf %446, %449 : vector<8x32xf32>
    %452 = arith.addf %450, %451 : vector<8x32xf32>
    %453 = math.tanh %452 : vector<8x32xf32>
    %454 = arith.mulf %448, %453 : vector<8x32xf32>
    %455 = arith.truncf %369 : vector<8x32xf32> to vector<8x32xbf16>
    %cst_113 = arith.constant dense<0.000000e+00> : vector<8x128xf32>
    %456 = tpu.matmul %455, %10, %cst_113 {dimension_numbers = #tpu.dot_dimension_numbers<[1], [0], [0], [1], [0, 0, 1, 1], [], []>} : vector<8x32xbf16>, vector<32x128xbf16>, vector<8x128xf32> -> vector<8x128xf32>
    %457 = arith.truncf %391 : vector<8x32xf32> to vector<8x32xbf16>
    %cst_114 = arith.constant dense<0.000000e+00> : vector<8x128xf32>
    %458 = tpu.matmul %457, %16, %cst_114 {dimension_numbers = #tpu.dot_dimension_numbers<[1], [0], [0], [1], [0, 0, 1, 1], [], []>} : vector<8x32xbf16>, vector<32x128xbf16>, vector<8x128xf32> -> vector<8x128xf32>
    %459 = arith.addf %456, %458 : vector<8x128xf32>
    %460 = vector.broadcast %22 : vector<1x128xf32> to vector<8x128xf32>
    %461 = arith.addf %459, %460 : vector<8x128xf32>
    %462 = math.tanh %461 : vector<8x128xf32>
    %cst_115 = arith.constant 1.000000e+00 : f32
    %463 = vector.broadcast %cst_115 : f32 to vector<8x128xf32>
    %464 = arith.addf %462, %463 : vector<8x128xf32>
    %cst_116 = arith.constant 5.000000e-01 : f32
    %465 = vector.broadcast %cst_116 : f32 to vector<8x128xf32>
    %466 = arith.mulf %465, %464 : vector<8x128xf32>
    %467 = arith.select %27, %466, %462 : vector<8x128xi1>, vector<8x128xf32>
    %468 = vector.extract_strided_slice %467 {offsets = [0, 0], sizes = [8, 32], strides = [1, 1]} : vector<8x128xf32> to vector<8x32xf32>
    %469 = vector.extract_strided_slice %467 {offsets = [0, 32], sizes = [8, 32], strides = [1, 1]} : vector<8x128xf32> to vector<8x32xf32>
    %470 = vector.extract_strided_slice %467 {offsets = [0, 64], sizes = [8, 32], strides = [1, 1]} : vector<8x128xf32> to vector<8x32xf32>
    %471 = vector.extract_strided_slice %467 {offsets = [0, 96], sizes = [8, 32], strides = [1, 1]} : vector<8x128xf32> to vector<8x32xf32>
    %472 = arith.mulf %469, %389 : vector<8x32xf32>
    %473 = arith.mulf %468, %471 : vector<8x32xf32>
    %474 = arith.addf %472, %473 : vector<8x32xf32>
    %475 = math.tanh %474 : vector<8x32xf32>
    %476 = arith.mulf %470, %475 : vector<8x32xf32>
    %477 = arith.truncf %391 : vector<8x32xf32> to vector<8x32xbf16>
    %cst_117 = arith.constant dense<0.000000e+00> : vector<8x128xf32>
    %478 = tpu.matmul %477, %12, %cst_117 {dimension_numbers = #tpu.dot_dimension_numbers<[1], [0], [0], [1], [0, 0, 1, 1], [], []>} : vector<8x32xbf16>, vector<32x128xbf16>, vector<8x128xf32> -> vector<8x128xf32>
    %479 = arith.truncf %413 : vector<8x32xf32> to vector<8x32xbf16>
    %cst_118 = arith.constant dense<0.000000e+00> : vector<8x128xf32>
    %480 = tpu.matmul %479, %18, %cst_118 {dimension_numbers = #tpu.dot_dimension_numbers<[1], [0], [0], [1], [0, 0, 1, 1], [], []>} : vector<8x32xbf16>, vector<32x128xbf16>, vector<8x128xf32> -> vector<8x128xf32>
    %481 = arith.addf %478, %480 : vector<8x128xf32>
    %482 = vector.broadcast %24 : vector<1x128xf32> to vector<8x128xf32>
    %483 = arith.addf %481, %482 : vector<8x128xf32>
    %484 = math.tanh %483 : vector<8x128xf32>
    %cst_119 = arith.constant 1.000000e+00 : f32
    %485 = vector.broadcast %cst_119 : f32 to vector<8x128xf32>
    %486 = arith.addf %484, %485 : vector<8x128xf32>
    %cst_120 = arith.constant 5.000000e-01 : f32
    %487 = vector.broadcast %cst_120 : f32 to vector<8x128xf32>
    %488 = arith.mulf %487, %486 : vector<8x128xf32>
    %489 = arith.select %27, %488, %484 : vector<8x128xi1>, vector<8x128xf32>
    %490 = vector.extract_strided_slice %489 {offsets = [0, 0], sizes = [8, 32], strides = [1, 1]} : vector<8x128xf32> to vector<8x32xf32>
    %491 = vector.extract_strided_slice %489 {offsets = [0, 32], sizes = [8, 32], strides = [1, 1]} : vector<8x128xf32> to vector<8x32xf32>
    %492 = vector.extract_strided_slice %489 {offsets = [0, 64], sizes = [8, 32], strides = [1, 1]} : vector<8x128xf32> to vector<8x32xf32>
    %493 = vector.extract_strided_slice %489 {offsets = [0, 96], sizes = [8, 32], strides = [1, 1]} : vector<8x128xf32> to vector<8x32xf32>
    %494 = arith.mulf %491, %411 : vector<8x32xf32>
    %495 = arith.mulf %490, %493 : vector<8x32xf32>
    %496 = arith.addf %494, %495 : vector<8x32xf32>
    %497 = math.tanh %496 : vector<8x32xf32>
    %498 = arith.mulf %492, %497 : vector<8x32xf32>
    %499 = vector.extract_strided_slice %5 {offsets = [56, 0], sizes = [8, 128], strides = [1, 1]} : vector<64x128xf32> to vector<8x128xf32>
    %500 = arith.truncf %432 : vector<8x32xf32> to vector<8x32xbf16>
    %cst_121 = arith.constant dense<0.000000e+00> : vector<8x128xf32>
    %501 = tpu.matmul %500, %6, %cst_121 {dimension_numbers = #tpu.dot_dimension_numbers<[1], [0], [0], [1], [0, 0, 1, 1], [], []>} : vector<8x32xbf16>, vector<32x128xbf16>, vector<8x128xf32> -> vector<8x128xf32>
    %502 = arith.addf %499, %501 : vector<8x128xf32>
    %503 = math.tanh %502 : vector<8x128xf32>
    %cst_122 = arith.constant 1.000000e+00 : f32
    %504 = vector.broadcast %cst_122 : f32 to vector<8x128xf32>
    %505 = arith.addf %503, %504 : vector<8x128xf32>
    %cst_123 = arith.constant 5.000000e-01 : f32
    %506 = vector.broadcast %cst_123 : f32 to vector<8x128xf32>
    %507 = arith.mulf %506, %505 : vector<8x128xf32>
    %508 = arith.select %27, %507, %503 : vector<8x128xi1>, vector<8x128xf32>
    %509 = vector.extract_strided_slice %508 {offsets = [0, 0], sizes = [8, 32], strides = [1, 1]} : vector<8x128xf32> to vector<8x32xf32>
    %510 = vector.extract_strided_slice %508 {offsets = [0, 32], sizes = [8, 32], strides = [1, 1]} : vector<8x128xf32> to vector<8x32xf32>
    %511 = vector.extract_strided_slice %508 {offsets = [0, 64], sizes = [8, 32], strides = [1, 1]} : vector<8x128xf32> to vector<8x32xf32>
    %512 = vector.extract_strided_slice %508 {offsets = [0, 96], sizes = [8, 32], strides = [1, 1]} : vector<8x128xf32> to vector<8x32xf32>
    %513 = arith.mulf %510, %430 : vector<8x32xf32>
    %514 = arith.mulf %509, %512 : vector<8x32xf32>
    %515 = arith.addf %513, %514 : vector<8x32xf32>
    %516 = math.tanh %515 : vector<8x32xf32>
    %517 = arith.mulf %511, %516 : vector<8x32xf32>
    %518 = arith.truncf %432 : vector<8x32xf32> to vector<8x32xbf16>
    %cst_124 = arith.constant dense<0.000000e+00> : vector<8x128xf32>
    %519 = tpu.matmul %518, %8, %cst_124 {dimension_numbers = #tpu.dot_dimension_numbers<[1], [0], [0], [1], [0, 0, 1, 1], [], []>} : vector<8x32xbf16>, vector<32x128xbf16>, vector<8x128xf32> -> vector<8x128xf32>
    %520 = arith.truncf %454 : vector<8x32xf32> to vector<8x32xbf16>
    %cst_125 = arith.constant dense<0.000000e+00> : vector<8x128xf32>
    %521 = tpu.matmul %520, %14, %cst_125 {dimension_numbers = #tpu.dot_dimension_numbers<[1], [0], [0], [1], [0, 0, 1, 1], [], []>} : vector<8x32xbf16>, vector<32x128xbf16>, vector<8x128xf32> -> vector<8x128xf32>
    %522 = arith.addf %519, %521 : vector<8x128xf32>
    %523 = vector.broadcast %20 : vector<1x128xf32> to vector<8x128xf32>
    %524 = arith.addf %522, %523 : vector<8x128xf32>
    %525 = math.tanh %524 : vector<8x128xf32>
    %cst_126 = arith.constant 1.000000e+00 : f32
    %526 = vector.broadcast %cst_126 : f32 to vector<8x128xf32>
    %527 = arith.addf %525, %526 : vector<8x128xf32>
    %cst_127 = arith.constant 5.000000e-01 : f32
    %528 = vector.broadcast %cst_127 : f32 to vector<8x128xf32>
    %529 = arith.mulf %528, %527 : vector<8x128xf32>
    %530 = arith.select %27, %529, %525 : vector<8x128xi1>, vector<8x128xf32>
    %531 = vector.extract_strided_slice %530 {offsets = [0, 0], sizes = [8, 32], strides = [1, 1]} : vector<8x128xf32> to vector<8x32xf32>
    %532 = vector.extract_strided_slice %530 {offsets = [0, 32], sizes = [8, 32], strides = [1, 1]} : vector<8x128xf32> to vector<8x32xf32>
    %533 = vector.extract_strided_slice %530 {offsets = [0, 64], sizes = [8, 32], strides = [1, 1]} : vector<8x128xf32> to vector<8x32xf32>
    %534 = vector.extract_strided_slice %530 {offsets = [0, 96], sizes = [8, 32], strides = [1, 1]} : vector<8x128xf32> to vector<8x32xf32>
    %535 = arith.mulf %532, %452 : vector<8x32xf32>
    %536 = arith.mulf %531, %534 : vector<8x32xf32>
    %537 = arith.addf %535, %536 : vector<8x32xf32>
    %538 = math.tanh %537 : vector<8x32xf32>
    %539 = arith.mulf %533, %538 : vector<8x32xf32>
    %540 = arith.truncf %454 : vector<8x32xf32> to vector<8x32xbf16>
    %cst_128 = arith.constant dense<0.000000e+00> : vector<8x128xf32>
    %541 = tpu.matmul %540, %10, %cst_128 {dimension_numbers = #tpu.dot_dimension_numbers<[1], [0], [0], [1], [0, 0, 1, 1], [], []>} : vector<8x32xbf16>, vector<32x128xbf16>, vector<8x128xf32> -> vector<8x128xf32>
    %542 = arith.truncf %476 : vector<8x32xf32> to vector<8x32xbf16>
    %cst_129 = arith.constant dense<0.000000e+00> : vector<8x128xf32>
    %543 = tpu.matmul %542, %16, %cst_129 {dimension_numbers = #tpu.dot_dimension_numbers<[1], [0], [0], [1], [0, 0, 1, 1], [], []>} : vector<8x32xbf16>, vector<32x128xbf16>, vector<8x128xf32> -> vector<8x128xf32>
    %544 = arith.addf %541, %543 : vector<8x128xf32>
    %545 = vector.broadcast %22 : vector<1x128xf32> to vector<8x128xf32>
    %546 = arith.addf %544, %545 : vector<8x128xf32>
    %547 = math.tanh %546 : vector<8x128xf32>
    %cst_130 = arith.constant 1.000000e+00 : f32
    %548 = vector.broadcast %cst_130 : f32 to vector<8x128xf32>
    %549 = arith.addf %547, %548 : vector<8x128xf32>
    %cst_131 = arith.constant 5.000000e-01 : f32
    %550 = vector.broadcast %cst_131 : f32 to vector<8x128xf32>
    %551 = arith.mulf %550, %549 : vector<8x128xf32>
    %552 = arith.select %27, %551, %547 : vector<8x128xi1>, vector<8x128xf32>
    %553 = vector.extract_strided_slice %552 {offsets = [0, 0], sizes = [8, 32], strides = [1, 1]} : vector<8x128xf32> to vector<8x32xf32>
    %554 = vector.extract_strided_slice %552 {offsets = [0, 32], sizes = [8, 32], strides = [1, 1]} : vector<8x128xf32> to vector<8x32xf32>
    %555 = vector.extract_strided_slice %552 {offsets = [0, 64], sizes = [8, 32], strides = [1, 1]} : vector<8x128xf32> to vector<8x32xf32>
    %556 = vector.extract_strided_slice %552 {offsets = [0, 96], sizes = [8, 32], strides = [1, 1]} : vector<8x128xf32> to vector<8x32xf32>
    %557 = arith.mulf %554, %474 : vector<8x32xf32>
    %558 = arith.mulf %553, %556 : vector<8x32xf32>
    %559 = arith.addf %557, %558 : vector<8x32xf32>
    %560 = math.tanh %559 : vector<8x32xf32>
    %561 = arith.mulf %555, %560 : vector<8x32xf32>
    %562 = arith.truncf %476 : vector<8x32xf32> to vector<8x32xbf16>
    %cst_132 = arith.constant dense<0.000000e+00> : vector<8x128xf32>
    %563 = tpu.matmul %562, %12, %cst_132 {dimension_numbers = #tpu.dot_dimension_numbers<[1], [0], [0], [1], [0, 0, 1, 1], [], []>} : vector<8x32xbf16>, vector<32x128xbf16>, vector<8x128xf32> -> vector<8x128xf32>
    %564 = arith.truncf %498 : vector<8x32xf32> to vector<8x32xbf16>
    %cst_133 = arith.constant dense<0.000000e+00> : vector<8x128xf32>
    %565 = tpu.matmul %564, %18, %cst_133 {dimension_numbers = #tpu.dot_dimension_numbers<[1], [0], [0], [1], [0, 0, 1, 1], [], []>} : vector<8x32xbf16>, vector<32x128xbf16>, vector<8x128xf32> -> vector<8x128xf32>
    %566 = arith.addf %563, %565 : vector<8x128xf32>
    %567 = vector.broadcast %24 : vector<1x128xf32> to vector<8x128xf32>
    %568 = arith.addf %566, %567 : vector<8x128xf32>
    %569 = math.tanh %568 : vector<8x128xf32>
    %cst_134 = arith.constant 1.000000e+00 : f32
    %570 = vector.broadcast %cst_134 : f32 to vector<8x128xf32>
    %571 = arith.addf %569, %570 : vector<8x128xf32>
    %cst_135 = arith.constant 5.000000e-01 : f32
    %572 = vector.broadcast %cst_135 : f32 to vector<8x128xf32>
    %573 = arith.mulf %572, %571 : vector<8x128xf32>
    %574 = arith.select %27, %573, %569 : vector<8x128xi1>, vector<8x128xf32>
    %575 = vector.extract_strided_slice %574 {offsets = [0, 0], sizes = [8, 32], strides = [1, 1]} : vector<8x128xf32> to vector<8x32xf32>
    %576 = vector.extract_strided_slice %574 {offsets = [0, 32], sizes = [8, 32], strides = [1, 1]} : vector<8x128xf32> to vector<8x32xf32>
    %577 = vector.extract_strided_slice %574 {offsets = [0, 64], sizes = [8, 32], strides = [1, 1]} : vector<8x128xf32> to vector<8x32xf32>
    %578 = vector.extract_strided_slice %574 {offsets = [0, 96], sizes = [8, 32], strides = [1, 1]} : vector<8x128xf32> to vector<8x32xf32>
    %579 = arith.mulf %576, %496 : vector<8x32xf32>
    %580 = arith.mulf %575, %578 : vector<8x32xf32>
    %581 = arith.addf %579, %580 : vector<8x32xf32>
    %582 = math.tanh %581 : vector<8x32xf32>
    %583 = arith.mulf %577, %582 : vector<8x32xf32>
    %584 = arith.truncf %517 : vector<8x32xf32> to vector<8x32xbf16>
    %cst_136 = arith.constant dense<0.000000e+00> : vector<8x128xf32>
    %585 = tpu.matmul %584, %8, %cst_136 {dimension_numbers = #tpu.dot_dimension_numbers<[1], [0], [0], [1], [0, 0, 1, 1], [], []>} : vector<8x32xbf16>, vector<32x128xbf16>, vector<8x128xf32> -> vector<8x128xf32>
    %586 = arith.truncf %539 : vector<8x32xf32> to vector<8x32xbf16>
    %cst_137 = arith.constant dense<0.000000e+00> : vector<8x128xf32>
    %587 = tpu.matmul %586, %14, %cst_137 {dimension_numbers = #tpu.dot_dimension_numbers<[1], [0], [0], [1], [0, 0, 1, 1], [], []>} : vector<8x32xbf16>, vector<32x128xbf16>, vector<8x128xf32> -> vector<8x128xf32>
    %588 = arith.addf %585, %587 : vector<8x128xf32>
    %589 = vector.broadcast %20 : vector<1x128xf32> to vector<8x128xf32>
    %590 = arith.addf %588, %589 : vector<8x128xf32>
    %591 = math.tanh %590 : vector<8x128xf32>
    %cst_138 = arith.constant 1.000000e+00 : f32
    %592 = vector.broadcast %cst_138 : f32 to vector<8x128xf32>
    %593 = arith.addf %591, %592 : vector<8x128xf32>
    %cst_139 = arith.constant 5.000000e-01 : f32
    %594 = vector.broadcast %cst_139 : f32 to vector<8x128xf32>
    %595 = arith.mulf %594, %593 : vector<8x128xf32>
    %596 = arith.select %27, %595, %591 : vector<8x128xi1>, vector<8x128xf32>
    %597 = vector.extract_strided_slice %596 {offsets = [0, 0], sizes = [8, 32], strides = [1, 1]} : vector<8x128xf32> to vector<8x32xf32>
    %598 = vector.extract_strided_slice %596 {offsets = [0, 32], sizes = [8, 32], strides = [1, 1]} : vector<8x128xf32> to vector<8x32xf32>
    %599 = vector.extract_strided_slice %596 {offsets = [0, 64], sizes = [8, 32], strides = [1, 1]} : vector<8x128xf32> to vector<8x32xf32>
    %600 = vector.extract_strided_slice %596 {offsets = [0, 96], sizes = [8, 32], strides = [1, 1]} : vector<8x128xf32> to vector<8x32xf32>
    %601 = arith.mulf %598, %537 : vector<8x32xf32>
    %602 = arith.mulf %597, %600 : vector<8x32xf32>
    %603 = arith.addf %601, %602 : vector<8x32xf32>
    %604 = math.tanh %603 : vector<8x32xf32>
    %605 = arith.mulf %599, %604 : vector<8x32xf32>
    %606 = arith.truncf %539 : vector<8x32xf32> to vector<8x32xbf16>
    %cst_140 = arith.constant dense<0.000000e+00> : vector<8x128xf32>
    %607 = tpu.matmul %606, %10, %cst_140 {dimension_numbers = #tpu.dot_dimension_numbers<[1], [0], [0], [1], [0, 0, 1, 1], [], []>} : vector<8x32xbf16>, vector<32x128xbf16>, vector<8x128xf32> -> vector<8x128xf32>
    %608 = arith.truncf %561 : vector<8x32xf32> to vector<8x32xbf16>
    %cst_141 = arith.constant dense<0.000000e+00> : vector<8x128xf32>
    %609 = tpu.matmul %608, %16, %cst_141 {dimension_numbers = #tpu.dot_dimension_numbers<[1], [0], [0], [1], [0, 0, 1, 1], [], []>} : vector<8x32xbf16>, vector<32x128xbf16>, vector<8x128xf32> -> vector<8x128xf32>
    %610 = arith.addf %607, %609 : vector<8x128xf32>
    %611 = vector.broadcast %22 : vector<1x128xf32> to vector<8x128xf32>
    %612 = arith.addf %610, %611 : vector<8x128xf32>
    %613 = math.tanh %612 : vector<8x128xf32>
    %cst_142 = arith.constant 1.000000e+00 : f32
    %614 = vector.broadcast %cst_142 : f32 to vector<8x128xf32>
    %615 = arith.addf %613, %614 : vector<8x128xf32>
    %cst_143 = arith.constant 5.000000e-01 : f32
    %616 = vector.broadcast %cst_143 : f32 to vector<8x128xf32>
    %617 = arith.mulf %616, %615 : vector<8x128xf32>
    %618 = arith.select %27, %617, %613 : vector<8x128xi1>, vector<8x128xf32>
    %619 = vector.extract_strided_slice %618 {offsets = [0, 0], sizes = [8, 32], strides = [1, 1]} : vector<8x128xf32> to vector<8x32xf32>
    %620 = vector.extract_strided_slice %618 {offsets = [0, 32], sizes = [8, 32], strides = [1, 1]} : vector<8x128xf32> to vector<8x32xf32>
    %621 = vector.extract_strided_slice %618 {offsets = [0, 64], sizes = [8, 32], strides = [1, 1]} : vector<8x128xf32> to vector<8x32xf32>
    %622 = vector.extract_strided_slice %618 {offsets = [0, 96], sizes = [8, 32], strides = [1, 1]} : vector<8x128xf32> to vector<8x32xf32>
    %623 = arith.mulf %620, %559 : vector<8x32xf32>
    %624 = arith.mulf %619, %622 : vector<8x32xf32>
    %625 = arith.addf %623, %624 : vector<8x32xf32>
    %626 = math.tanh %625 : vector<8x32xf32>
    %627 = arith.mulf %621, %626 : vector<8x32xf32>
    %628 = arith.truncf %561 : vector<8x32xf32> to vector<8x32xbf16>
    %cst_144 = arith.constant dense<0.000000e+00> : vector<8x128xf32>
    %629 = tpu.matmul %628, %12, %cst_144 {dimension_numbers = #tpu.dot_dimension_numbers<[1], [0], [0], [1], [0, 0, 1, 1], [], []>} : vector<8x32xbf16>, vector<32x128xbf16>, vector<8x128xf32> -> vector<8x128xf32>
    %630 = arith.truncf %583 : vector<8x32xf32> to vector<8x32xbf16>
    %cst_145 = arith.constant dense<0.000000e+00> : vector<8x128xf32>
    %631 = tpu.matmul %630, %18, %cst_145 {dimension_numbers = #tpu.dot_dimension_numbers<[1], [0], [0], [1], [0, 0, 1, 1], [], []>} : vector<8x32xbf16>, vector<32x128xbf16>, vector<8x128xf32> -> vector<8x128xf32>
    %632 = arith.addf %629, %631 : vector<8x128xf32>
    %633 = vector.broadcast %24 : vector<1x128xf32> to vector<8x128xf32>
    %634 = arith.addf %632, %633 : vector<8x128xf32>
    %635 = math.tanh %634 : vector<8x128xf32>
    %cst_146 = arith.constant 1.000000e+00 : f32
    %636 = vector.broadcast %cst_146 : f32 to vector<8x128xf32>
    %637 = arith.addf %635, %636 : vector<8x128xf32>
    %cst_147 = arith.constant 5.000000e-01 : f32
    %638 = vector.broadcast %cst_147 : f32 to vector<8x128xf32>
    %639 = arith.mulf %638, %637 : vector<8x128xf32>
    %640 = arith.select %27, %639, %635 : vector<8x128xi1>, vector<8x128xf32>
    %641 = vector.extract_strided_slice %640 {offsets = [0, 0], sizes = [8, 32], strides = [1, 1]} : vector<8x128xf32> to vector<8x32xf32>
    %642 = vector.extract_strided_slice %640 {offsets = [0, 32], sizes = [8, 32], strides = [1, 1]} : vector<8x128xf32> to vector<8x32xf32>
    %643 = vector.extract_strided_slice %640 {offsets = [0, 64], sizes = [8, 32], strides = [1, 1]} : vector<8x128xf32> to vector<8x32xf32>
    %644 = vector.extract_strided_slice %640 {offsets = [0, 96], sizes = [8, 32], strides = [1, 1]} : vector<8x128xf32> to vector<8x32xf32>
    %645 = arith.mulf %642, %581 : vector<8x32xf32>
    %646 = arith.mulf %641, %644 : vector<8x32xf32>
    %647 = arith.addf %645, %646 : vector<8x32xf32>
    %648 = math.tanh %647 : vector<8x32xf32>
    %649 = arith.mulf %643, %648 : vector<8x32xf32>
    %650 = arith.truncf %605 : vector<8x32xf32> to vector<8x32xbf16>
    %cst_148 = arith.constant dense<0.000000e+00> : vector<8x128xf32>
    %651 = tpu.matmul %650, %10, %cst_148 {dimension_numbers = #tpu.dot_dimension_numbers<[1], [0], [0], [1], [0, 0, 1, 1], [], []>} : vector<8x32xbf16>, vector<32x128xbf16>, vector<8x128xf32> -> vector<8x128xf32>
    %652 = arith.truncf %627 : vector<8x32xf32> to vector<8x32xbf16>
    %cst_149 = arith.constant dense<0.000000e+00> : vector<8x128xf32>
    %653 = tpu.matmul %652, %16, %cst_149 {dimension_numbers = #tpu.dot_dimension_numbers<[1], [0], [0], [1], [0, 0, 1, 1], [], []>} : vector<8x32xbf16>, vector<32x128xbf16>, vector<8x128xf32> -> vector<8x128xf32>
    %654 = arith.addf %651, %653 : vector<8x128xf32>
    %655 = vector.broadcast %22 : vector<1x128xf32> to vector<8x128xf32>
    %656 = arith.addf %654, %655 : vector<8x128xf32>
    %657 = math.tanh %656 : vector<8x128xf32>
    %cst_150 = arith.constant 1.000000e+00 : f32
    %658 = vector.broadcast %cst_150 : f32 to vector<8x128xf32>
    %659 = arith.addf %657, %658 : vector<8x128xf32>
    %cst_151 = arith.constant 5.000000e-01 : f32
    %660 = vector.broadcast %cst_151 : f32 to vector<8x128xf32>
    %661 = arith.mulf %660, %659 : vector<8x128xf32>
    %662 = arith.select %27, %661, %657 : vector<8x128xi1>, vector<8x128xf32>
    %663 = vector.extract_strided_slice %662 {offsets = [0, 0], sizes = [8, 32], strides = [1, 1]} : vector<8x128xf32> to vector<8x32xf32>
    %664 = vector.extract_strided_slice %662 {offsets = [0, 32], sizes = [8, 32], strides = [1, 1]} : vector<8x128xf32> to vector<8x32xf32>
    %665 = vector.extract_strided_slice %662 {offsets = [0, 64], sizes = [8, 32], strides = [1, 1]} : vector<8x128xf32> to vector<8x32xf32>
    %666 = vector.extract_strided_slice %662 {offsets = [0, 96], sizes = [8, 32], strides = [1, 1]} : vector<8x128xf32> to vector<8x32xf32>
    %667 = arith.mulf %664, %625 : vector<8x32xf32>
    %668 = arith.mulf %663, %666 : vector<8x32xf32>
    %669 = arith.addf %667, %668 : vector<8x32xf32>
    %670 = math.tanh %669 : vector<8x32xf32>
    %671 = arith.mulf %665, %670 : vector<8x32xf32>
    %672 = arith.truncf %627 : vector<8x32xf32> to vector<8x32xbf16>
    %cst_152 = arith.constant dense<0.000000e+00> : vector<8x128xf32>
    %673 = tpu.matmul %672, %12, %cst_152 {dimension_numbers = #tpu.dot_dimension_numbers<[1], [0], [0], [1], [0, 0, 1, 1], [], []>} : vector<8x32xbf16>, vector<32x128xbf16>, vector<8x128xf32> -> vector<8x128xf32>
    %674 = arith.truncf %649 : vector<8x32xf32> to vector<8x32xbf16>
    %cst_153 = arith.constant dense<0.000000e+00> : vector<8x128xf32>
    %675 = tpu.matmul %674, %18, %cst_153 {dimension_numbers = #tpu.dot_dimension_numbers<[1], [0], [0], [1], [0, 0, 1, 1], [], []>} : vector<8x32xbf16>, vector<32x128xbf16>, vector<8x128xf32> -> vector<8x128xf32>
    %676 = arith.addf %673, %675 : vector<8x128xf32>
    %677 = vector.broadcast %24 : vector<1x128xf32> to vector<8x128xf32>
    %678 = arith.addf %676, %677 : vector<8x128xf32>
    %679 = math.tanh %678 : vector<8x128xf32>
    %cst_154 = arith.constant 1.000000e+00 : f32
    %680 = vector.broadcast %cst_154 : f32 to vector<8x128xf32>
    %681 = arith.addf %679, %680 : vector<8x128xf32>
    %cst_155 = arith.constant 5.000000e-01 : f32
    %682 = vector.broadcast %cst_155 : f32 to vector<8x128xf32>
    %683 = arith.mulf %682, %681 : vector<8x128xf32>
    %684 = arith.select %27, %683, %679 : vector<8x128xi1>, vector<8x128xf32>
    %685 = vector.extract_strided_slice %684 {offsets = [0, 0], sizes = [8, 32], strides = [1, 1]} : vector<8x128xf32> to vector<8x32xf32>
    %686 = vector.extract_strided_slice %684 {offsets = [0, 32], sizes = [8, 32], strides = [1, 1]} : vector<8x128xf32> to vector<8x32xf32>
    %687 = vector.extract_strided_slice %684 {offsets = [0, 64], sizes = [8, 32], strides = [1, 1]} : vector<8x128xf32> to vector<8x32xf32>
    %688 = vector.extract_strided_slice %684 {offsets = [0, 96], sizes = [8, 32], strides = [1, 1]} : vector<8x128xf32> to vector<8x32xf32>
    %689 = arith.mulf %686, %647 : vector<8x32xf32>
    %690 = arith.mulf %685, %688 : vector<8x32xf32>
    %691 = arith.addf %689, %690 : vector<8x32xf32>
    %692 = math.tanh %691 : vector<8x32xf32>
    %693 = arith.mulf %687, %692 : vector<8x32xf32>
    %694 = arith.truncf %671 : vector<8x32xf32> to vector<8x32xbf16>
    %cst_156 = arith.constant dense<0.000000e+00> : vector<8x128xf32>
    %695 = tpu.matmul %694, %12, %cst_156 {dimension_numbers = #tpu.dot_dimension_numbers<[1], [0], [0], [1], [0, 0, 1, 1], [], []>} : vector<8x32xbf16>, vector<32x128xbf16>, vector<8x128xf32> -> vector<8x128xf32>
    %696 = arith.truncf %693 : vector<8x32xf32> to vector<8x32xbf16>
    %cst_157 = arith.constant dense<0.000000e+00> : vector<8x128xf32>
    %697 = tpu.matmul %696, %18, %cst_157 {dimension_numbers = #tpu.dot_dimension_numbers<[1], [0], [0], [1], [0, 0, 1, 1], [], []>} : vector<8x32xbf16>, vector<32x128xbf16>, vector<8x128xf32> -> vector<8x128xf32>
    %698 = arith.addf %695, %697 : vector<8x128xf32>
    %699 = vector.broadcast %24 : vector<1x128xf32> to vector<8x128xf32>
    %700 = arith.addf %698, %699 : vector<8x128xf32>
    %701 = math.tanh %700 : vector<8x128xf32>
    %cst_158 = arith.constant 1.000000e+00 : f32
    %702 = vector.broadcast %cst_158 : f32 to vector<8x128xf32>
    %703 = arith.addf %701, %702 : vector<8x128xf32>
    %cst_159 = arith.constant 5.000000e-01 : f32
    %704 = vector.broadcast %cst_159 : f32 to vector<8x128xf32>
    %705 = arith.mulf %704, %703 : vector<8x128xf32>
    %706 = arith.select %27, %705, %701 : vector<8x128xi1>, vector<8x128xf32>
    %707 = vector.extract_strided_slice %706 {offsets = [0, 0], sizes = [8, 32], strides = [1, 1]} : vector<8x128xf32> to vector<8x32xf32>
    %708 = vector.extract_strided_slice %706 {offsets = [0, 32], sizes = [8, 32], strides = [1, 1]} : vector<8x128xf32> to vector<8x32xf32>
    %709 = vector.extract_strided_slice %706 {offsets = [0, 64], sizes = [8, 32], strides = [1, 1]} : vector<8x128xf32> to vector<8x32xf32>
    %710 = vector.extract_strided_slice %706 {offsets = [0, 96], sizes = [8, 32], strides = [1, 1]} : vector<8x128xf32> to vector<8x32xf32>
    %711 = arith.mulf %708, %691 : vector<8x32xf32>
    %712 = arith.mulf %707, %710 : vector<8x32xf32>
    %713 = arith.addf %711, %712 : vector<8x32xf32>
    %714 = math.tanh %713 : vector<8x32xf32>
    %715 = arith.mulf %709, %714 : vector<8x32xf32>
    %716 = vector.extract_strided_slice %715 {offsets = [0, 0], sizes = [2, 32], strides = [1, 1]} : vector<8x32xf32> to vector<2x32xf32>
    %717 = vector.extract_strided_slice %715 {offsets = [2, 0], sizes = [2, 32], strides = [1, 1]} : vector<8x32xf32> to vector<2x32xf32>
    %c0_160 = arith.constant 0 : index
    %c0_161 = arith.constant 0 : index
    %718 = vector.load %arg7[%c0_160, %c0_161] : memref<32x32xf32, #tpu.memory_space<vmem>>, vector<32x32xf32>
    %cst_162 = arith.constant dense<0.000000e+00> : vector<2x32xf32>
    %719 = tpu.matmul %716, %718, %cst_162 {dimension_numbers = #tpu.dot_dimension_numbers<[1], [0], [0], [1], [0, 0, 1, 1], [], []>} : vector<2x32xf32>, vector<32x32xf32>, vector<2x32xf32> -> vector<2x32xf32>
    %c0_163 = arith.constant 0 : index
    %c0_164 = arith.constant 0 : index
    %720 = vector.load %arg8[%c0_163, %c0_164] : memref<32x32xf32, #tpu.memory_space<vmem>>, vector<32x32xf32>
    %cst_165 = arith.constant dense<0.000000e+00> : vector<2x32xf32>
    %721 = tpu.matmul %717, %720, %cst_165 {dimension_numbers = #tpu.dot_dimension_numbers<[1], [0], [0], [1], [0, 0, 1, 1], [], []>} : vector<2x32xf32>, vector<32x32xf32>, vector<2x32xf32> -> vector<2x32xf32>
    %722 = arith.addf %719, %721 : vector<2x32xf32>
    %c0_166 = arith.constant 0 : index
    %c0_167 = arith.constant 0 : index
    %723 = vector.load %arg9[%c0_166, %c0_167] : memref<1x32xf32, #tpu.memory_space<vmem>>, vector<1x32xf32>
    %724 = vector.broadcast %723 : vector<1x32xf32> to vector<2x32xf32>
    %725 = arith.addf %722, %724 : vector<2x32xf32>
    %cst_168 = arith.constant 0.000000e+00 : f32
    %726 = vector.broadcast %cst_168 : f32 to vector<2x32xf32>
    %727 = arith.maximumf %725, %726 : vector<2x32xf32>
    %c0_169 = arith.constant 0 : index
    %c0_170 = arith.constant 0 : index
    %c0_171 = arith.constant 0 : index
    %728 = vector.load %arg10[%c0_169, %c0_170, %c0_171] : memref<4x32x32xf32, #tpu.memory_space<vmem>>, vector<1x32x32xf32>
    %729 = vector.shape_cast %728 : vector<1x32x32xf32> to vector<32x32xf32>
    %cst_172 = arith.constant dense<0.000000e+00> : vector<2x32xf32>
    %730 = tpu.matmul %727, %729, %cst_172 {dimension_numbers = #tpu.dot_dimension_numbers<[1], [0], [0], [1], [0, 0, 1, 1], [], []>} : vector<2x32xf32>, vector<32x32xf32>, vector<2x32xf32> -> vector<2x32xf32>
    %c0_173 = arith.constant 0 : index
    %c0_174 = arith.constant 0 : index
    %c0_175 = arith.constant 0 : index
    %731 = vector.load %arg11[%c0_173, %c0_174, %c0_175] : memref<4x1x32xf32, #tpu.memory_space<vmem>>, vector<1x1x32xf32>
    %732 = vector.shape_cast %731 : vector<1x1x32xf32> to vector<1x32xf32>
    %733 = vector.broadcast %732 : vector<1x32xf32> to vector<2x32xf32>
    %734 = arith.addf %730, %733 : vector<2x32xf32>
    %cst_176 = arith.constant 0.000000e+00 : f32
    %735 = vector.broadcast %cst_176 : f32 to vector<2x32xf32>
    %736 = arith.maximumf %734, %735 : vector<2x32xf32>
    %c1_177 = arith.constant 1 : index
    %c0_178 = arith.constant 0 : index
    %c0_179 = arith.constant 0 : index
    %737 = vector.load %arg10[%c1_177, %c0_178, %c0_179] : memref<4x32x32xf32, #tpu.memory_space<vmem>>, vector<1x32x32xf32>
    %738 = vector.shape_cast %737 : vector<1x32x32xf32> to vector<32x32xf32>
    %cst_180 = arith.constant dense<0.000000e+00> : vector<2x32xf32>
    %739 = tpu.matmul %736, %738, %cst_180 {dimension_numbers = #tpu.dot_dimension_numbers<[1], [0], [0], [1], [0, 0, 1, 1], [], []>} : vector<2x32xf32>, vector<32x32xf32>, vector<2x32xf32> -> vector<2x32xf32>
    %c1_181 = arith.constant 1 : index
    %c0_182 = arith.constant 0 : index
    %c0_183 = arith.constant 0 : index
    %740 = vector.load %arg11[%c1_181, %c0_182, %c0_183] : memref<4x1x32xf32, #tpu.memory_space<vmem>>, vector<1x1x32xf32>
    %741 = vector.shape_cast %740 : vector<1x1x32xf32> to vector<1x32xf32>
    %742 = vector.broadcast %741 : vector<1x32xf32> to vector<2x32xf32>
    %743 = arith.addf %739, %742 : vector<2x32xf32>
    %cst_184 = arith.constant 0.000000e+00 : f32
    %744 = vector.broadcast %cst_184 : f32 to vector<2x32xf32>
    %745 = arith.maximumf %743, %744 : vector<2x32xf32>
    %c2_185 = arith.constant 2 : index
    %c0_186 = arith.constant 0 : index
    %c0_187 = arith.constant 0 : index
    %746 = vector.load %arg10[%c2_185, %c0_186, %c0_187] : memref<4x32x32xf32, #tpu.memory_space<vmem>>, vector<1x32x32xf32>
    %747 = vector.shape_cast %746 : vector<1x32x32xf32> to vector<32x32xf32>
    %cst_188 = arith.constant dense<0.000000e+00> : vector<2x32xf32>
    %748 = tpu.matmul %745, %747, %cst_188 {dimension_numbers = #tpu.dot_dimension_numbers<[1], [0], [0], [1], [0, 0, 1, 1], [], []>} : vector<2x32xf32>, vector<32x32xf32>, vector<2x32xf32> -> vector<2x32xf32>
    %c2_189 = arith.constant 2 : index
    %c0_190 = arith.constant 0 : index
    %c0_191 = arith.constant 0 : index
    %749 = vector.load %arg11[%c2_189, %c0_190, %c0_191] : memref<4x1x32xf32, #tpu.memory_space<vmem>>, vector<1x1x32xf32>
    %750 = vector.shape_cast %749 : vector<1x1x32xf32> to vector<1x32xf32>
    %751 = vector.broadcast %750 : vector<1x32xf32> to vector<2x32xf32>
    %752 = arith.addf %748, %751 : vector<2x32xf32>
    %cst_192 = arith.constant 0.000000e+00 : f32
    %753 = vector.broadcast %cst_192 : f32 to vector<2x32xf32>
    %754 = arith.maximumf %752, %753 : vector<2x32xf32>
    %c3 = arith.constant 3 : index
    %c0_193 = arith.constant 0 : index
    %c0_194 = arith.constant 0 : index
    %755 = vector.load %arg10[%c3, %c0_193, %c0_194] : memref<4x32x32xf32, #tpu.memory_space<vmem>>, vector<1x32x32xf32>
    %756 = vector.shape_cast %755 : vector<1x32x32xf32> to vector<32x32xf32>
    %cst_195 = arith.constant dense<0.000000e+00> : vector<2x32xf32>
    %757 = tpu.matmul %754, %756, %cst_195 {dimension_numbers = #tpu.dot_dimension_numbers<[1], [0], [0], [1], [0, 0, 1, 1], [], []>} : vector<2x32xf32>, vector<32x32xf32>, vector<2x32xf32> -> vector<2x32xf32>
    %c3_196 = arith.constant 3 : index
    %c0_197 = arith.constant 0 : index
    %c0_198 = arith.constant 0 : index
    %758 = vector.load %arg11[%c3_196, %c0_197, %c0_198] : memref<4x1x32xf32, #tpu.memory_space<vmem>>, vector<1x1x32xf32>
    %759 = vector.shape_cast %758 : vector<1x1x32xf32> to vector<1x32xf32>
    %760 = vector.broadcast %759 : vector<1x32xf32> to vector<2x32xf32>
    %761 = arith.addf %757, %760 : vector<2x32xf32>
    %cst_199 = arith.constant 0.000000e+00 : f32
    %762 = vector.broadcast %cst_199 : f32 to vector<2x32xf32>
    %763 = arith.maximumf %761, %762 : vector<2x32xf32>
    %c0_200 = arith.constant 0 : index
    %c0_201 = arith.constant 0 : index
    %764 = vector.load %arg12[%c0_200, %c0_201] : memref<32x1xf32, #tpu.memory_space<vmem>>, vector<32x1xf32>
    %cst_202 = arith.constant dense<0.000000e+00> : vector<2x1xf32>
    %765 = tpu.matmul %763, %764, %cst_202 {dimension_numbers = #tpu.dot_dimension_numbers<[1], [0], [0], [1], [0, 0, 1, 1], [], []>} : vector<2x32xf32>, vector<32x1xf32>, vector<2x1xf32> -> vector<2x1xf32>
    %c0_203 = arith.constant 0 : index
    %c0_204 = arith.constant 0 : index
    %766 = vector.load %arg13[%c0_203, %c0_204] : memref<1x1xf32, #tpu.memory_space<vmem>>, vector<1x1xf32>
    %767 = vector.broadcast %766 : vector<1x1xf32> to vector<2x1xf32>
    %768 = arith.addf %765, %767 : vector<2x1xf32>
    %769 = arith.negf %768 : vector<2x1xf32>
    %770 = math.exp %769 : vector<2x1xf32>
    %cst_205 = arith.constant 1.000000e+00 : f32
    %771 = vector.broadcast %cst_205 : f32 to vector<2x1xf32>
    %772 = arith.addf %771, %770 : vector<2x1xf32>
    %773 = arith.divf %771, %772 : vector<2x1xf32>
    %774 = vector.shape_cast %773 : vector<2x1xf32> to vector<2x1xf32>
    %775 = vector.broadcast %774 : vector<2x1xf32> to vector<2x128xf32>
    %c0_206 = arith.constant 0 : index
    %c0_207 = arith.constant 0 : index
    %776 = vector.load %arg14[%c0_206, %c0_207] : memref<2x128xf32, #tpu.memory_space<vmem>>, vector<2x128xf32>
    tpu.vector_store %arg14[%c0_206, %c0_207], %775 {strides = array<i32>} : memref<2x128xf32, #tpu.memory_space<vmem>>, vector<2x128xf32>,
    return
  }
}

</mosaic_0001>

<bundles_post_ra>
// kernel: rnn_ordonator_forward.1
= control target key start
LH: loop header
LB: loop body
LE: loop exit
PB: predicated region body
PF: predicated region fallthrough
CT: control target
= control target key end

     0   :  { %s6674_s0 = inlined_call_operand.vmem [shape: bf16[64,16], index: 0, kind: input, shape index: {}]   ;;  %s6675_s1 = inlined_call_operand.hbm [shape: bf16[16,128], index: 1, kind: input, shape index: {}]   ;;  %s6676_s2 = inlined_call_operand.hbm [shape: bf16[32,128], index: 2, kind: input, shape index: {}]   ;;  %s6677_s3 = inlined_call_operand.vmem [shape: f32[1,128], index: 3, kind: input, shape index: {}]   ;;  %s6678_s4 = inlined_call_operand.vmem [shape: bf16[3,32,128], index: 4, kind: input, shape index: {}]   ;;  %s6679_s5 = inlined_call_operand.hbm [shape: bf16[3,32,128], index: 5, kind: input, shape index: {}]   ;;  %s6680_s6 = inlined_call_operand.hbm [shape: f32[3,1,128], index: 6, kind: input, shape index: {}]   ;;  %s6681_s7 = inlined_call_operand.hbm [shape: f32[32,32], index: 7, kind: input, shape index: {}]   ;;  %s6682_s8 = inlined_call_operand.hbm [shape: f32[32,32], index: 8, kind: input, shape index: {}]   ;;  %s6683_s9 = inlined_call_operand.vmem [shape: f32[1,32], index: 9, kind: input, shape index: {}]   ;;  %s6684_s10 = inlined_call_operand.vmem [shape: f32[4,32,32], index: 10, kind: input, shape index: {}]   ;;  %s6685_s11 = inlined_call_operand.hbm [shape: f32[4,1,32], index: 11, kind: input, shape index: {}]   ;;  %s6686_s12 = inlined_call_operand.vmem [shape: f32[32,1], index: 12, kind: input, shape index: {}]   ;;  %s6687_s13 = inlined_call_operand.<no memory space> [shape: f32[1,1], index: 13, kind: input, shape index: {}]   ;;  %s6688_s14 = inlined_call_operand.vmem [shape: f32[2,128], index: 14, kind: output, shape index: {}]  }
   0x1   :  { %v19_v0 = vstv %s6687_s13 }
   0x2   :  { %20 = vst [vmem:[#allocation2] sm:$0x1] %v19_v0 }
   0x3   :  { %21 = vsyncpa [#allocation4], 0 }
   0x4   :  { %22 = vsyncpa [#allocation6], 0 }
   0x5   :  { %23 = vsyncpa [#allocation9], 0 }
   0x6   :  { %24 = vsyncpa [#allocation12], 0  ;;  %s5439_s15 = smov [#allocation5]   ;;  %s5440_s17 = smov [#allocation8]  }
   0x7   :  { %s44_s16 = sshll.u32 %s5439_s15, 4  ;;  %s72_s18 = sshll.u32 %s5440_s17, 4  ;;  %s45_s16 = int_to_ptr.vmem [resolvable:$true] %s44_s16  ;;  %s5535_s18 = int_to_ptr.vmem [resolvable:$true] %s72_s18 }
   0x8   :  { %s5277_s21 = scalar_lea.hbm %s6676_s2, 256 }
   0x9   :  { %p5278_p0 = scmp.ne.s32.totalorder %s6676_s2, %s5277_s21  ;;  %p5281_p1 = scmp.lt.u32.totalorder %s5277_s21, %s6676_s2 }
   0xb   :  { %p5283_p2 = pnand %p5281_p1, %p5278_p0 }
   0xd   :  { %5286 = shalt.err (!%p5283_p2)
}
   0xe   :  { %s5287_s25 = scalar_lea.vmem %s45_s16, 256  ;;  %p5292_p4 = scmp.lt.s32.totalorder %s45_s16, %s45_s16 }
   0xf   :  { %p5288_p3 = scmp.ne.s32.totalorder %s45_s16, %s5287_s25  ;;  %p5293_p5 = scmp.lt.s32.totalorder %s5287_s25, %s5287_s25 }
  0x11   :  { %p5294_p6 = por %p5293_p5, %p5292_p4 }
  0x13   :  { %p5295_p7 = pnand %p5294_p6, %p5288_p3 }
  0x15   :  { %5298 = shalt.err (!%p5295_p7)
}
  0x16   :  { %s5441_s26 = smov 64   ;;  %s5442_s27 = smov 4  }
  0x17   :  { %50 = dma.hbm_to_vmem [thread:$0]  %s6676_s2, 256, %s45_s16, [#allocation6], %s5441_s26, %s5441_s26, %s5442_s27  }
  0x18   :  { %s5299_s17 = scalar_lea.hbm %s6680_s6, 48 }
  0x19   :  { %p5300_p8 = scmp.ne.s32.totalorder %s6680_s6, %s5299_s17  ;;  %p5303_p9 = scmp.lt.u32.totalorder %s5299_s17, %s6680_s6 }
  0x1b   :  { %p5305_p10 = pnand %p5303_p9, %p5300_p8 }
  0x1d   :  { %5308 = shalt.err (!%p5305_p10)
}
  0x1e   :  { %s5309_s23 = scalar_lea.vmem %s5535_s18, 48  ;;  %s5313_s2 = scalar_lea.vmem %s5535_s18, 64 }
  0x1f   :  { %p5310_p11 = scmp.ne.s32.totalorder %s5535_s18, %s5309_s23  ;;  %p5314_p12 = scmp.lt.s32.totalorder %s5535_s18, %s5535_s18 }
  0x20   :  { %p5315_p13 = scmp.lt.s32.totalorder %s5313_s2, %s5309_s23 }
  0x22   :  { %p5316_p0 = por %p5315_p13, %p5314_p12 }
  0x24   :  { %p5317_p1 = pnand %p5316_p0, %p5310_p11 }
  0x26   :  { %5320 = shalt.err (!%p5317_p1)
}
  0x27   :  { %s5443_s16 = smov 16   ;;  %s5444_s13 = smov 1  }
  0x28   :  { %78 = dma.hbm_to_vmem [thread:$0]  %s6680_s6, 48, %s5535_s18, [#allocation9], %s5443_s16, %s5443_s16, %s5444_s13  }
  0x29   :  { %s5445_s28 = smov [#allocation11]   ;;  %s5446_s30 = smov [#allocation3]  }
  0x2a   :  { %s96_s29 = sshll.u32 %s5445_s28, 4  ;;  %s32_s15 = sshll.u32 %s5446_s30, 4  ;;  %s97_s29 = int_to_ptr.vmem [resolvable:$true] %s96_s29  ;;  %s5573_s15 = int_to_ptr.vmem [resolvable:$true] %s32_s15 }
  0x2b   :  { %s5321_s20 = scalar_lea.hbm %s6682_s8, 512 }
  0x2c   :  { %p5322_p2 = scmp.ne.s32.totalorder %s6682_s8, %s5321_s20  ;;  %p5325_p3 = scmp.lt.u32.totalorder %s5321_s20, %s6682_s8 }
  0x2e   :  { %p5327_p4 = pnand %p5325_p3, %p5322_p2 }
  0x30   :  { %5330 = shalt.err (!%p5327_p4)
}
  0x31   :  { %s5331_s6 = scalar_lea.vmem %s97_s29, 512  ;;  %p5336_p6 = scmp.lt.s32.totalorder %s97_s29, %s97_s29 }
  0x32   :  { %p5332_p5 = scmp.ne.s32.totalorder %s97_s29, %s5331_s6  ;;  %p5337_p7 = scmp.lt.s32.totalorder %s5331_s6, %s5331_s6 }
  0x34   :  { %p5338_p8 = por %p5337_p7, %p5336_p6 }
  0x36   :  { %p5339_p9 = pnand %p5338_p8, %p5332_p5 }
  0x38   :  { %5342 = shalt.err (!%p5339_p9)
}
  0x39   :  { %s5447_s18 = smov 128   ;;  %s5448_s24 = smov 8  }
  0x3a   :  { %102 = dma.hbm_to_vmem [thread:$0]  %s6682_s8, 512, %s97_s29, [#allocation12], %s5447_s18, %s5447_s18, %s5448_s24  }
  0x3b   :  { %s5343_s19 = scalar_lea.hbm %s6675_s1, 128 }
  0x3c   :  { %p5344_p10 = scmp.ne.s32.totalorder %s6675_s1, %s5343_s19  ;;  %p5347_p11 = scmp.lt.u32.totalorder %s5343_s19, %s6675_s1 }
  0x3e   :  { %p5349_p12 = pnand %p5347_p11, %p5344_p10 }
  0x40   :  { %5352 = shalt.err (!%p5349_p12)
}
  0x41   :  { %s5353_s2 = scalar_lea.vmem %s5573_s15, 128  ;;  %p5358_p0 = scmp.lt.s32.totalorder %s5573_s15, %s5573_s15 }
  0x42   :  { %p5354_p13 = scmp.ne.s32.totalorder %s5573_s15, %s5353_s2  ;;  %p5359_p1 = scmp.lt.s32.totalorder %s5353_s2, %s5353_s2 }
  0x44   :  { %p5360_p2 = por %p5359_p1, %p5358_p0 }
  0x46   :  { %p5361_p3 = pnand %p5360_p2, %p5354_p13 }
  0x48   :  { %5364 = shalt.err (!%p5361_p3)
}
  0x49   :  { %38 = dma.hbm_to_vmem [thread:$0]  %s6675_s1, 128, %s5573_s15, [#allocation4], %s5441_s26, %s5441_s26, %s5442_s27  }
  0x4a   :  { %s5449_s6 = smov [#allocation7]   ;;  %s5450_s28 = smov [#allocation10]  }
  0x4b   :  { %s60_s25 = sshll.u32 %s5449_s6, 4  ;;  %s84_s30 = sshll.u32 %s5450_s28, 4  ;;  %s61_s25 = int_to_ptr.vmem [resolvable:$true] %s60_s25  ;;  %s5610_s30 = int_to_ptr.vmem [resolvable:$true] %s84_s30 }
  0x4c   :  { %s5365_s20 = scalar_lea.hbm %s6679_s5, 768 }
  0x4d   :  { %p5366_p4 = scmp.ne.s32.totalorder %s6679_s5, %s5365_s20  ;;  %p5369_p5 = scmp.lt.u32.totalorder %s5365_s20, %s6679_s5 }
  0x4f   :  { %p5371_p6 = pnand %p5369_p5, %p5366_p4 }
  0x51   :  { %5374 = shalt.err (!%p5371_p6)
}
  0x52   :  { %s5375_s1 = scalar_lea.vmem %s61_s25, 768  ;;  %p5380_p8 = scmp.lt.s32.totalorder %s61_s25, %s61_s25 }
  0x53   :  { %p5376_p7 = scmp.ne.s32.totalorder %s61_s25, %s5375_s1  ;;  %p5381_p9 = scmp.lt.s32.totalorder %s5375_s1, %s5375_s1 }
  0x55   :  { %p5382_p10 = por %p5381_p9, %p5380_p8 }
  0x57   :  { %p5383_p11 = pnand %p5382_p10, %p5376_p7 }
  0x59   :  { %5386 = shalt.err (!%p5383_p11)
}
  0x5a   :  { %66 = dma.hbm_to_vmem [thread:$0]  %s6679_s5, 768, %s61_s25, [#allocation6], %s5441_s26, %s5441_s26, %s5442_s27  }
  0x5b   :  { %s5387_s28 = scalar_lea.hbm %s6681_s7, 512 }
  0x5c   :  { %p5388_p12 = scmp.ne.s32.totalorder %s6681_s7, %s5387_s28  ;;  %p5391_p13 = scmp.lt.u32.totalorder %s5387_s28, %s6681_s7 }
  0x5e   :  { %p5393_p0 = pnand %p5391_p13, %p5388_p12 }
  0x60   :  { %5396 = shalt.err (!%p5393_p0)
}
  0x61   :  { %s5397_s22 = scalar_lea.vmem %s5610_s30, 512  ;;  %p5402_p2 = scmp.lt.s32.totalorder %s5610_s30, %s5610_s30 }
  0x62   :  { %p5398_p1 = scmp.ne.s32.totalorder %s5610_s30, %s5397_s22  ;;  %p5403_p3 = scmp.lt.s32.totalorder %s5397_s22, %s5397_s22 }
  0x64   :  { %p5404_p4 = por %p5403_p3, %p5402_p2 }
  0x66   :  { %p5405_p5 = pnand %p5404_p4, %p5398_p1 }
  0x68   :  { %5408 = shalt.err (!%p5405_p5)
}
  0x69   :  { %90 = dma.hbm_to_vmem [thread:$0]  %s6681_s7, 512, %s5610_s30, [#allocation9], %s5447_s18, %s5447_s18, %s5448_s24  }
  0x6a   :  { %s5451_s25 = smov [#allocation13]   ;;  %s5409_s15 = scalar_lea.hbm %s6685_s11, 64 }
  0x6b   :  { %s112_s23 = sshll.u32 %s5451_s25, 4  ;;  %p5410_p6 = scmp.ne.s32.totalorder %s6685_s11, %s5409_s15  ;;  %s113_s23 = int_to_ptr.vmem [resolvable:$true] %s112_s23 }
  0x6c   :  { %p5413_p7 = scmp.lt.u32.totalorder %s5409_s15, %s6685_s11 }
  0x6e   :  { %p5415_p8 = pnand %p5413_p7, %p5410_p6 }
  0x70   :  { %5418 = shalt.err (!%p5415_p8)
}
  0x71   :  { %s5419_s17 = scalar_lea.vmem %s113_s23, 64  ;;  %p5424_p10 = scmp.lt.s32.totalorder %s113_s23, %s113_s23 }
  0x72   :  { %p5420_p9 = scmp.ne.s32.totalorder %s113_s23, %s5419_s17  ;;  %p5425_p11 = scmp.lt.s32.totalorder %s5419_s17, %s5419_s17 }
  0x74   :  { %p5426_p12 = por %p5425_p11, %p5424_p10 }
  0x76   :  { %p5427_p13 = pnand %p5426_p12, %p5420_p9 }
  0x78   :  { %5430 = shalt.err (!%p5427_p13)
}
  0x79   :  { %118 = dma.hbm_to_vmem [thread:$0]  %s6685_s11, 64, %s113_s23, [#allocation12], %s5443_s16, %s5443_s16, %s5444_s13  }
  0x7a   :  { %5431 = dma.done.wait [#allocation4], 128  }
  0x7b   :  { %5432 = vsyncadd [#allocation4], 4294967168 }
  0x7c   :  { %5433 = dma.done.wait [#allocation6], 1024  }
  0x7d   :  { %5434 = vsyncadd [#allocation6], 4294966272 }
  0x7e   :  { %5435 = dma.done.wait [#allocation9], 560  }
  0x7f   :  { %5436 = vsyncadd [#allocation9], 4294966736 }
  0x80   :  { %5437 = dma.done.wait [#allocation12], 576  }
  0x81   :  { %5438 = vsyncadd [#allocation12], 4294966720  ;;  %v5452_v1 = vmov 0.0   ;;  %vm5453_vm0 = vmmov 0   ;;  %v5454_v2 = vmov 0   ;;  %v5108_v3 = vld [vmem:[#allocation3] sm:$0xff]   ;;  %v303_v19 = vlaneseq }
  0x82   :  { %4521 = vmatprep.subr.bf16.mxu1 %v5452_v1  ;;  %4525 = vmatprep.mubr.msk.bf16.mxu1 %vm5453_vm0, %v5452_v1  ;;  %v5667_v4 = vld [vmem:[#allocation5] sm:$0xff]   ;;  %vm188_vm1 = vcmask 130048   ;;  %v5110_v5 = vld [vmem:[%s6674_s0] sm:$0xff]   ;;  %v5678_v7 = vld [vmem:[#allocation5 + $0x8] sm:$0xff]   ;;  %s5455_s20 = smov 32   ;;  %vm318_vm3 = vcmask 261120  }
  0x83   :  { %5106 = vset.pattern.permute.xlu1 %v5454_v2  ;;  %5107 = vset.pattern.permute.xlu0 %v5454_v2  ;;  %v5111_v6 = vld [vmem:[%s6674_s0 + $0x8] sm:$0xff]   ;;  %v5694_v8 = vld [vmem:[%s6677_s3] ss:$0 sm:$0xff]  ;;  %v5703_v20 = vand.u32 127, %v303_v19  ;;  %v5114_v31 = vld [vmem:[%s6674_s0 + $0x10] sm:$0xff]  }
  0x84   :  { %4511 = vmatprep.subr.bf16.mxu0 %v5108_v3  ;;  %4522 = vmatpush3.bf16.msra.mxu1 %v5667_v4  ;;  %v5713_v30 = vld [vmem:[#allocation7] sm:$0xff]   ;;  %v5728_v34 = vld [vmem:[#allocation7 + $0x8] sm:$0xff]   ;;  %v5774_v55 = vld [vmem:[#allocation8] ss:$0 sm:$0xff] }
  0x85   :  { %4512 = vmatpush3.bf16.msra.mxu0 %v5108_v3  ;;  %4513 = vmatprep.mubr.msk.bf16.mxu0 %vm188_vm1, %v5110_v5  ;;  %vm305_vm2 = vcmp.lt.s32.totalorder %v5703_v20, 96  ;;  %v5115_v32 = vld [vmem:[%s6674_s0 + $0x18] sm:$0xff]   ;;  %v5751_v42 = vld [vmem:[%s6678_s4] sm:$0xff]   ;;  %v5758_v44 = vld [vmem:[%s6678_s4 + $0x8] sm:$0xff]  }
  0x86   :  { %4523 = vmatprep.subr.bf16.mxu1 %v5452_v1  ;;  %4537 = vmatprep.subr.bf16.mxu0 %v5452_v1 }
  0x88   :  { %4514 = vmatmul.mubr.msk.bf16.vlgmr.msra.gmra.mrb[0].mxu0 %vm188_vm1, %v5111_v6  ;;  %4524 = vmatpush3.bf16.msra.mxu1 %v5678_v7 }
  0x89   :  { %4529 = vmatprep.subr.bf16.mxu1 %v5452_v1  ;;  %4538 = vmatpush3.bf16.msra.mxu0 %v5713_v30 }
  0x8a   :  { %4517 = vmatprep.mubr.msk.bf16.mxu0 %vm188_vm1, %v5114_v31  ;;  %4539 = vmatprep.subr.bf16.mxu0 %v5452_v1 }
  0x8b   :  { %4526 = vmatmul.mubr.bf16.vlgmr.msra.gmra.mrb[0].mxu1 %v5454_v2 }
  0x8c   :  { %4530 = vmatpush3.bf16.msra.mxu1 %v5667_v4  ;;  %4533 = vmatprep.mubr.msk.bf16.mxu1 %vm5453_vm0, %v5452_v1 }
  0x8d   :  { %4531 = vmatprep.subr.bf16.mxu1 %v5452_v1  ;;  %4540 = vmatpush3.bf16.msra.mxu0 %v5728_v34 }
  0x8e   :  { %4553 = vmatprep.subr.bf16.mxu0 %v5452_v1 }
  0x90   :  { %4532 = vmatpush3.bf16.msra.mxu1 %v5678_v7  ;;  %4518 = vmatmul.mubr.msk.bf16.gmra.mrb[4].mxu0 %vm188_vm1, %v5115_v32 }
  0x91   :  { %4545 = vmatprep.subr.bf16.mxu1 %v5452_v1  ;;  %4541 = vmatprep.mubr.msk.bf16.mxu0 %vm5453_vm0, %v5452_v1 }
  0x98   :  { %4542 = vmatmul.mubr.bf16.vlgmr.msra.gmra.mrb[8].mxu0 %v5454_v2 }
  0x99   :  { %4554 = vmatpush3.bf16.msra.mxu0 %v5667_v4  ;;  %4557 = vmatprep.mubr.msk.bf16.mxu0 %vm5453_vm0, %v5452_v1 }
  0x9a   :  { %4555 = vmatprep.subr.bf16.mxu0 %v5452_v1 }
  0x9d   :  { %4556 = vmatpush3.bf16.msra.mxu0 %v5678_v7 }
  0x9e   :  { %4569 = vmatprep.subr.bf16.mxu0 %v5452_v1 }
 0x15b   :  { %v5696_v9 = vpop.f32.mrb[0].mxu0 }
 0x15c   :  { %v235_v10 = vpop.f32.mrb[1].mxu0 }
 0x15d   :  { %v236_v11 = vadd.f32 %v5694_v8, %v235_v10  ;;  %v5699_v12 = vpop.f32.mrb[2].mxu0 }
 0x15e   :  { %v5701_v13 = vpop.f32.mrb[3].mxu0  ;;  %v356_v14 = vpop.f32.mrb[0].mxu1 }
 0x15f   :  { %v362_v15 = vadd.f32 %v356_v14, %v236_v11  ;;  %v4527_v16 = vpop.f32.mrb[1].mxu1  ;;  %v239_v49 = vadd.f32 %v5694_v8, %v5701_v13 }
 0x160   :  { %v359_v17 = vpop.f32.mrb[2].mxu1 }
 0x161   :  { %5127 = vtanh.f32 %v362_v15  ;;  %v4528_v18 = vpop.f32.mrb[3].mxu1 }
 0x163   :  { %v5740_v38 = vpop.f32.mrb[4].mxu0 }
 0x164   :  { %v5742_v39 = vpop.f32.mrb[5].mxu0 }
 0x165   :  { %v5744_v40 = vpop.f32.mrb[6].mxu0 }
 0x166   :  { %v5746_v41 = vpop.f32.mrb[7].mxu0 }
 0x16b   :  { %v5128_v21 = vpop.eup %5127  ;;  %v499_v45 = vpop.f32.mrb[8].mxu0 }
 0x16c   :  { %v364_v22 = vadd.f32 1.0, %v5128_v21  ;;  %v4543_v46 = vpop.f32.mrb[9].mxu0 }
 0x16d   :  { %v502_v47 = vpop.f32.mrb[10].mxu0  ;;  %v244_v46 = vadd.f32 %v5696_v9, %v5694_v8 }
 0x16e   :  { %v365_v23 = vmul.f32 0.5, %v364_v22  ;;  %v4544_v48 = vpop.f32.mrb[11].mxu0 }
 0x170   :  { %v366_v24 = vsel %vm305_vm2, %v365_v23, %v5128_v21 }
 0x171   :  { %369 = vrot.lane.b32.xlu0 %v366_v24, %s5455_s20  ;;  %v367_v27 = vmul.f32 0.0, %v366_v24 }
 0x1e3   :  { %v370_v25 = vpop.permute.xlu0 %369 }
 0x1e4   :  { %v372_v26 = vmul.f32 %v370_v25, %v366_v24 }
 0x1e6   :  { %374 = vrot.lane.b32.xlu0 %v372_v26, %s5455_s20 }
 0x258   :  { %v375_v28 = vpop.permute.xlu0 %374 }
 0x259   :  { %v5710_v29 = vadd.f32 %v375_v28, %v367_v27 }
 0x25b   :  { %5129 = vtanh.f32 %v5710_v29 }
 0x265   :  { %v5130_v33 = vpop.eup %5129 }
 0x266   :  { %380 = vrot.lane.b32.xlu1 %v5130_v33, %s5455_s20 }
 0x2d8   :  { %v381_v35 = vpop.permute.xlu1 %380 }
 0x2d9   :  { %v383_v36 = vmul.f32 %v381_v35, %v366_v24  ;;  %v5805_v35 = vld [vmem:[%s6678_s4 + $0x10] sm:$0xff]  }
 0x2db   :  { %v384_v37 = vpack.c.bf16 %v383_v36, %v383_v36  ;;  %v5808_v36 = vld [vmem:[#allocation7 + $0x10] sm:$0xff]  }
 0x2dd   :  { %386 = vrot.lane.b32.xlu1 %v384_v37, %s5441_s26 }
 0x34f   :  { %v387_v43 = vpop.permute.xlu1 %386 }
 0x350   :  { %4534 = vmatmul.mubr.msk.bf16.vlgmr.msra.gmra.mrb[4].mxu1 %vm318_vm3, %v387_v43 }
 0x351   :  { %4546 = vmatpush3.bf16.msra.mxu1 %v5751_v42  ;;  %4549 = vmatprep.mubr.msk.bf16.mxu1 %vm5453_vm0, %v5452_v1 }
 0x352   :  { %4547 = vmatprep.subr.bf16.mxu1 %v5452_v1 }
 0x355   :  { %4548 = vmatpush3.bf16.msra.mxu1 %v5758_v44 }
 0x356   :  { %4561 = vmatprep.subr.bf16.mxu1 %v5452_v1 }
 0x358   :  { %4550 = vmatmul.mubr.msk.bf16.vlgmr.msra.gmra.mrb[8].mxu1 %vm318_vm3, %v387_v43  ;;  %v5815_v43 = vld [vmem:[%s6678_s4 + $0x18] sm:$0xff]  }
 0x359   :  { %4562 = vmatpush3.bf16.msra.mxu1 %v5713_v30  ;;  %4565 = vmatprep.mubr.msk.bf16.mxu1 %vm5453_vm0, %v5452_v1 }
 0x35a   :  { %4563 = vmatprep.subr.bf16.mxu1 %v5452_v1 }
 0x35d   :  { %4564 = vmatpush3.bf16.msra.mxu1 %v5728_v34 }
 0x35e   :  { %4577 = vmatprep.subr.bf16.mxu1 %v5452_v1 }
 0x423   :  { %v425_v50 = vpop.f32.mrb[4].mxu1 }
 0x424   :  { %v431_v51 = vadd.f32 %v425_v50, %v239_v49  ;;  %v4535_v52 = vpop.f32.mrb[5].mxu1 }
 0x425   :  { %v428_v53 = vpop.f32.mrb[6].mxu1 }
 0x426   :  { %5131 = vtanh.f32 %v431_v51  ;;  %v4536_v54 = vpop.f32.mrb[7].mxu1 }
 0x42b   :  { %v551_v56 = vpop.f32.mrb[8].mxu1 }
 0x42c   :  { %v552_v57 = vadd.f32 %v551_v56, %v499_v45  ;;  %v4551_v58 = vpop.f32.mrb[9].mxu1  ;;  %v5822_v45 = vld [vmem:[#allocation7 + $0x18] sm:$0xff]  }
 0x42d   :  { %v554_v59 = vpop.f32.mrb[10].mxu1 }
 0x42e   :  { %v563_v60 = vadd.f32 %v5774_v55, %v552_v57  ;;  %v4552_v61 = vpop.f32.mrb[11].mxu1 }
 0x430   :  { %v5132_v62 = vpop.eup %5131  ;;  %5133 = vtanh.f32 %v563_v60 }
 0x431   :  { %v433_v63 = vadd.f32 1.0, %v5132_v62 }
 0x433   :  { %v434_v0 = vmul.f32 0.5, %v433_v63 }
 0x435   :  { %v435_v3 = vsel %vm305_vm2, %v434_v0, %v5132_v62 }
 0x436   :  { %438 = vrot.lane.b32.xlu0 %v435_v3, %s5455_s20  ;;  %v436_v17 = vmul.f32 %v435_v3, %v5710_v29 }
 0x43a   :  { %v5134_v5 = vpop.eup %5133 }
 0x43b   :  { %v565_v6 = vadd.f32 1.0, %v5134_v5 }
 0x43d   :  { %v566_v10 = vmul.f32 0.5, %v565_v6  ;;  %v5848_v6 = vld [vmem:[#allocation8 + $0x1] ss:$0 sm:$0xff] }
 0x43f   :  { %v567_v11 = vsel %vm305_vm2, %v566_v10, %v5134_v5 }
 0x440   :  { %570 = vrot.lane.b32.xlu1 %v567_v11, %s5455_s20  ;;  %v568_v21 = vmul.f32 0.0, %v567_v11 }
 0x4a8   :  { %v439_v13 = vpop.permute.xlu0 %438 }
 0x4a9   :  { %v441_v14 = vmul.f32 %v439_v13, %v435_v3 }
 0x4ab   :  { %443 = vrot.lane.b32.xlu0 %v441_v14, %s5455_s20 }
 0x4b2   :  { %v571_v15 = vpop.permute.xlu1 %570 }
 0x4b3   :  { %v573_v16 = vmul.f32 %v571_v15, %v567_v11 }
 0x4b5   :  { %575 = vrot.lane.b32.xlu1 %v573_v16, %s5455_s20 }
 0x51d   :  { %v444_v18 = vpop.permute.xlu0 %443 }
 0x51e   :  { %v5786_v19 = vadd.f32 %v444_v18, %v436_v17 }
 0x520   :  { %5135 = vtanh.f32 %v5786_v19 }
 0x527   :  { %v576_v22 = vpop.permute.xlu1 %575 }
 0x528   :  { %v5789_v23 = vadd.f32 %v576_v22, %v568_v21 }
 0x52a   :  { %v5136_v24 = vpop.eup %5135  ;;  %5137 = vtanh.f32 %v5789_v23 }
 0x52b   :  { %449 = vrot.lane.b32.xlu0 %v5136_v24, %s5455_s20 }
 0x534   :  { %v5138_v25 = vpop.eup %5137 }
 0x535   :  { %581 = vrot.lane.b32.xlu1 %v5138_v25, %s5455_s20 }
 0x59d   :  { %v450_v26 = vpop.permute.xlu0 %449 }
 0x59e   :  { %v452_v27 = vmul.f32 %v450_v26, %v435_v3 }
 0x5a0   :  { %v585_v28 = vpack.c.bf16 %v452_v27, %v452_v27 }
 0x5a2   :  { %587 = vrot.lane.b32.xlu0 %v585_v28, %s5441_s26 }
 0x5a7   :  { %v582_v29 = vpop.permute.xlu1 %581 }
 0x5a8   :  { %v584_v31 = vmul.f32 %v582_v29, %v567_v11 }
 0x5aa   :  { %v654_v32 = vpack.c.bf16 %v584_v31, %v584_v31 }
 0x5ac   :  { %656 = vrot.lane.b32.xlu1 %v654_v32, %s5441_s26 }
 0x614   :  { %v588_v33 = vpop.permute.xlu0 %587 }
 0x615   :  { %4558 = vmatmul.mubr.msk.bf16.vlgmr.msra.gmra.mrb[12].mxu0 %vm318_vm3, %v588_v33 }
 0x616   :  { %4570 = vmatpush3.bf16.msra.mxu0 %v5751_v42  ;;  %4573 = vmatprep.mubr.msk.bf16.mxu0 %vm5453_vm0, %v5452_v1 }
 0x617   :  { %4571 = vmatprep.subr.bf16.mxu0 %v5452_v1 }
 0x61a   :  { %4572 = vmatpush3.bf16.msra.mxu0 %v5758_v44 }
 0x61b   :  { %4585 = vmatprep.subr.bf16.mxu0 %v5452_v1 }
 0x61d   :  { %4574 = vmatmul.mubr.msk.bf16.vlgmr.msra.gmra.mrb[16].mxu0 %vm318_vm3, %v588_v33 }
 0x61e   :  { %4586 = vmatpush3.bf16.msra.mxu0 %v5805_v35  ;;  %v657_v37 = vpop.permute.xlu1 %656  ;;  %4589 = vmatprep.mubr.msk.bf16.mxu0 %vm5453_vm0, %v5452_v1 }
 0x61f   :  { %4566 = vmatmul.mubr.msk.bf16.vlgmr.msra.gmra.mrb[12].mxu1 %vm318_vm3, %v657_v37  ;;  %4587 = vmatprep.subr.bf16.mxu0 %v5452_v1 }
 0x620   :  { %4578 = vmatpush3.bf16.msra.mxu1 %v5808_v36  ;;  %4581 = vmatprep.mubr.msk.bf16.mxu1 %vm5453_vm0, %v5452_v1 }
 0x621   :  { %4579 = vmatprep.subr.bf16.mxu1 %v5452_v1 }
 0x622   :  { %4588 = vmatpush3.bf16.msra.mxu0 %v5815_v43 }
 0x623   :  { %4601 = vmatprep.subr.bf16.mxu0 %v5452_v1 }
 0x624   :  { %4580 = vmatpush3.bf16.msra.mxu1 %v5822_v45 }
 0x625   :  { %4590 = vmatmul.mubr.msk.bf16.vlgmr.msra.gmra.mrb[20].mxu0 %vm318_vm3, %v657_v37  ;;  %4593 = vmatprep.subr.bf16.mxu1 %v5452_v1 }
 0x626   :  { %4602 = vmatpush3.bf16.msra.mxu0 %v5713_v30  ;;  %4605 = vmatprep.mubr.msk.bf16.mxu0 %vm5453_vm0, %v5452_v1 }
 0x627   :  { %4582 = vmatmul.mubr.bf16.vlgmr.msra.gmra.mrb[16].mxu1 %v5454_v2  ;;  %4603 = vmatprep.subr.bf16.mxu0 %v5452_v1 }
 0x628   :  { %4594 = vmatpush3.bf16.msra.mxu1 %v5667_v4  ;;  %4597 = vmatprep.mubr.msk.bf16.mxu1 %vm5453_vm0, %v5452_v1 }
 0x629   :  { %4595 = vmatprep.subr.bf16.mxu1 %v5452_v1 }
 0x62a   :  { %4604 = vmatpush3.bf16.msra.mxu0 %v5728_v34 }
 0x62b   :  { %4617 = vmatprep.subr.bf16.mxu0 %v5452_v1 }
 0x62c   :  { %4596 = vmatpush3.bf16.msra.mxu1 %v5678_v7 }
 0x62d   :  { %4609 = vmatprep.subr.bf16.mxu1 %v5452_v1 }
 0x6e8   :  { %v626_v47 = vpop.f32.mrb[12].mxu0 }
 0x6e9   :  { %v632_v48 = vadd.f32 %v626_v47, %v244_v46  ;;  %v4559_v49 = vpop.f32.mrb[13].mxu0 }
 0x6ea   :  { %v629_v50 = vpop.f32.mrb[14].mxu0 }
 0x6eb   :  { %5139 = vtanh.f32 %v632_v48  ;;  %v4560_v51 = vpop.f32.mrb[15].mxu0 }
 0x6f0   :  { %v735_v52 = vpop.f32.mrb[16].mxu0 }
 0x6f1   :  { %v4575_v53 = vpop.f32.mrb[17].mxu0 }
 0x6f2   :  { %v695_v54 = vpop.f32.mrb[12].mxu1  ;;  %v738_v56 = vpop.f32.mrb[18].mxu0 }
 0x6f3   :  { %v736_v57 = vadd.f32 %v735_v52, %v695_v54  ;;  %v4567_v58 = vpop.f32.mrb[13].mxu1  ;;  %v4576_v59 = vpop.f32.mrb[19].mxu0 }
 0x6f4   :  { %v698_v60 = vpop.f32.mrb[14].mxu1 }
 0x6f5   :  { %v5140_v61 = vpop.eup %5139  ;;  %v741_v62 = vadd.f32 %v5774_v55, %v736_v57  ;;  %v4568_v63 = vpop.f32.mrb[15].mxu1 }
 0x6f6   :  { %v634_v0 = vadd.f32 1.0, %v5140_v61 }
 0x6f7   :  { %5141 = vtanh.f32 %v741_v62 }
 0x6f8   :  { %v861_v9 = vpop.f32.mrb[20].mxu0  ;;  %v635_v3 = vmul.f32 0.5, %v634_v0 }
 0x6f9   :  { %v4591_v5 = vpop.f32.mrb[21].mxu0 }
 0x6fa   :  { %v809_v10 = vpop.f32.mrb[16].mxu1  ;;  %v864_v11 = vpop.f32.mrb[22].mxu0  ;;  %v636_v13 = vsel %vm305_vm2, %v635_v3, %v5140_v61 }
 0x6fb   :  { %v862_v14 = vadd.f32 %v861_v9, %v809_v10  ;;  %639 = vrot.lane.b32.xlu0 %v636_v13, %s5455_s20  ;;  %v4583_v15 = vpop.f32.mrb[17].mxu1  ;;  %v4592_v16 = vpop.f32.mrb[23].mxu0  ;;  %v637_v49 = vmul.f32 %v636_v13, %v5786_v19 }
 0x6fc   :  { %v812_v17 = vpop.f32.mrb[18].mxu1  ;;  %v5907_v15 = vld [vmem:[#allocation7 + $0x20] sm:$0xff]   ;;  %v5912_v16 = vld [vmem:[%s6678_s4 + $0x28] sm:$0xff]  }
 0x6fd   :  { %v873_v18 = vadd.f32 %v5848_v6, %v862_v14  ;;  %v4584_v21 = vpop.f32.mrb[19].mxu1  ;;  %v5898_v14 = vld [vmem:[%s6678_s4 + $0x20] sm:$0xff]  }
 0x6fe   :  { %v247_v21 = vadd.f32 %v5699_v12, %v5694_v8 }
 0x6ff   :  { %5143 = vtanh.f32 %v873_v18  ;;  %v5921_v18 = vld [vmem:[#allocation7 + $0x28] sm:$0xff]  }
 0x701   :  { %v5142_v22 = vpop.eup %5141 }
 0x702   :  { %v743_v24 = vadd.f32 1.0, %v5142_v22 }
 0x704   :  { %v744_v25 = vmul.f32 0.5, %v743_v24 }
 0x706   :  { %v745_v26 = vsel %vm305_vm2, %v744_v25, %v5142_v22 }
 0x707   :  { %748 = vrot.lane.b32.xlu1 %v745_v26, %s5455_s20  ;;  %v746_v52 = vmul.f32 %v745_v26, %v5789_v23 }
 0x709   :  { %v5144_v27 = vpop.eup %5143 }
 0x70a   :  { %v875_v28 = vadd.f32 1.0, %v5144_v27 }
 0x70c   :  { %v876_v29 = vmul.f32 0.5, %v875_v28 }
 0x70e   :  { %v877_v31 = vsel %vm305_vm2, %v876_v29, %v5144_v27 }
 0x70f   :  { %880 = vrot.lane.b32.xlu0 %v877_v31, %s5455_s20  ;;  %v878_v57 = vmul.f32 0.0, %v877_v31 }
 0x76d   :  { %v640_v32 = vpop.permute.xlu0 %639 }
 0x76e   :  { %v642_v33 = vmul.f32 %v640_v32, %v636_v13 }
 0x770   :  { %644 = vrot.lane.b32.xlu1 %v642_v33, %s5455_s20 }
 0x779   :  { %v749_v37 = vpop.permute.xlu1 %748 }
 0x77a   :  { %v751_v46 = vmul.f32 %v749_v37, %v745_v26 }
 0x77c   :  { %753 = vrot.lane.b32.xlu0 %v751_v46, %s5455_s20 }
 0x781   :  { %v881_v47 = vpop.permute.xlu0 %880 }
 0x782   :  { %v883_v48 = vmul.f32 %v881_v47, %v877_v31 }
 0x784   :  { %885 = vrot.lane.b32.xlu1 %v883_v48, %s5455_s20 }
 0x7e2   :  { %v645_v50 = vpop.permute.xlu1 %644 }
 0x7e3   :  { %v5864_v51 = vadd.f32 %v645_v50, %v637_v49 }
 0x7e5   :  { %5145 = vtanh.f32 %v5864_v51 }
 0x7ee   :  { %v754_v53 = vpop.permute.xlu0 %753 }
 0x7ef   :  { %v5146_v54 = vpop.eup %5145  ;;  %v5868_v56 = vadd.f32 %v754_v53, %v746_v52 }
 0x7f0   :  { %650 = vrot.lane.b32.xlu0 %v5146_v54, %s5455_s20 }
 0x7f1   :  { %5147 = vtanh.f32 %v5868_v56 }
 0x7f6   :  { %v886_v58 = vpop.permute.xlu1 %885 }
 0x7f7   :  { %v5872_v59 = vadd.f32 %v886_v58, %v878_v57 }
 0x7f9   :  { %5149 = vtanh.f32 %v5872_v59 }
 0x7fb   :  { %v5148_v19 = vpop.eup %5147 }
 0x7fc   :  { %759 = vrot.lane.b32.xlu1 %v5148_v19, %s5455_s20 }
 0x803   :  { %v5150_v60 = vpop.eup %5149 }
 0x804   :  { %891 = vrot.lane.b32.xlu0 %v5150_v60, %s5455_s20 }
 0x862   :  { %v651_v23 = vpop.permute.xlu0 %650 }
 0x863   :  { %v653_v61 = vmul.f32 %v651_v23, %v636_v13 }
 0x865   :  { %v895_v62 = vpack.c.bf16 %v653_v61, %v653_v61 }
 0x867   :  { %897 = vrot.lane.b32.xlu1 %v895_v62, %s5441_s26 }
 0x86e   :  { %v760_v63 = vpop.permute.xlu1 %759 }
 0x86f   :  { %v762_v0 = vmul.f32 %v760_v63, %v745_v26 }
 0x871   :  { %v964_v9 = vpack.c.bf16 %v762_v0, %v762_v0 }
 0x873   :  { %966 = vrot.lane.b32.xlu0 %v964_v9, %s5441_s26 }
 0x876   :  { %v892_v3 = vpop.permute.xlu0 %891 }
 0x877   :  { %v894_v5 = vmul.f32 %v892_v3, %v877_v31 }
 0x879   :  { %v1073_v10 = vpack.c.bf16 %v894_v5, %v894_v5 }
 0x87b   :  { %1075 = vrot.lane.b32.xlu1 %v1073_v10, %s5441_s26 }
 0x8d9   :  { %v898_v11 = vpop.permute.xlu1 %897 }
 0x8da   :  { %4598 = vmatmul.mubr.msk.bf16.vlgmr.msra.gmra.mrb[20].mxu1 %vm318_vm3, %v898_v11 }
 0x8db   :  { %4610 = vmatpush3.bf16.msra.mxu1 %v5751_v42  ;;  %4613 = vmatprep.mubr.msk.bf16.mxu1 %vm5453_vm0, %v5452_v1 }
 0x8dc   :  { %4611 = vmatprep.subr.bf16.mxu1 %v5452_v1 }
 0x8df   :  { %4612 = vmatpush3.bf16.msra.mxu1 %v5758_v44 }
 0x8e0   :  { %4625 = vmatprep.subr.bf16.mxu1 %v5452_v1 }
 0x8e2   :  { %4614 = vmatmul.mubr.msk.bf16.vlgmr.msra.gmra.mrb[24].mxu1 %vm318_vm3, %v898_v11  ;;  %v5953_v11 = vld [vmem:[#allocation8 + $0x2] ss:$0 sm:$0xff] }
 0x8e3   :  { %4626 = vmatpush3.bf16.msra.mxu1 %v5805_v35  ;;  %4629 = vmatprep.mubr.msk.bf16.mxu1 %vm5453_vm0, %v5452_v1 }
 0x8e4   :  { %4627 = vmatprep.subr.bf16.mxu1 %v5452_v1 }
 0x8e5   :  { %v967_v13 = vpop.permute.xlu0 %966 }
 0x8e6   :  { %4606 = vmatmul.mubr.msk.bf16.vlgmr.msra.gmra.mrb[24].mxu0 %vm318_vm3, %v967_v13 }
 0x8e7   :  { %4618 = vmatpush3.bf16.msra.mxu0 %v5808_v36  ;;  %4628 = vmatpush3.bf16.msra.mxu1 %v5815_v43 }
 0x8e8   :  { %4619 = vmatprep.subr.bf16.mxu0 %v5452_v1  ;;  %4641 = vmatprep.subr.bf16.mxu1 %v5452_v1 }
 0x8e9   :  { %4621 = vmatprep.mubr.msk.bf16.mxu0 %vm5453_vm0, %v5452_v1 }
 0x8ea   :  { %4630 = vmatmul.mubr.msk.bf16.vlgmr.msra.gmra.mrb[28].mxu1 %vm318_vm3, %v967_v13 }
 0x8eb   :  { %4620 = vmatpush3.bf16.msra.mxu0 %v5822_v45  ;;  %4642 = vmatpush3.bf16.msra.mxu1 %v5898_v14 }
 0x8ec   :  { %4633 = vmatprep.subr.bf16.mxu0 %v5452_v1  ;;  %4643 = vmatprep.subr.bf16.mxu1 %v5452_v1 }
 0x8ed   :  { %v1076_v17 = vpop.permute.xlu1 %1075  ;;  %4645 = vmatprep.mubr.msk.bf16.mxu1 %vm5453_vm0, %v5452_v1 }
 0x8ee   :  { %4622 = vmatmul.mubr.msk.bf16.vlgmr.msra.gmra.mrb[28].mxu0 %vm318_vm3, %v1076_v17 }
 0x8ef   :  { %4634 = vmatpush3.bf16.msra.mxu0 %v5907_v15  ;;  %4644 = vmatpush3.bf16.msra.mxu1 %v5912_v16 }
 0x8f0   :  { %4635 = vmatprep.subr.bf16.mxu0 %v5452_v1  ;;  %4637 = vmatprep.mubr.msk.bf16.mxu0 %vm5453_vm0, %v5452_v1 }
 0x8f1   :  { %4657 = vmatprep.subr.bf16.mxu1 %v5452_v1 }
 0x8f2   :  { %4646 = vmatmul.mubr.msk.bf16.vlgmr.msra.gmra.mrb[32].mxu1 %vm318_vm3, %v1076_v17 }
 0x8f3   :  { %4636 = vmatpush3.bf16.msra.mxu0 %v5921_v18  ;;  %4658 = vmatpush3.bf16.msra.mxu1 %v5713_v30 }
 0x8f4   :  { %4649 = vmatprep.subr.bf16.mxu0 %v5452_v1  ;;  %4659 = vmatprep.subr.bf16.mxu1 %v5452_v1 }
 0x8f5   :  { %4661 = vmatprep.mubr.msk.bf16.mxu1 %vm5453_vm0, %v5452_v1 }
 0x8f6   :  { %4638 = vmatmul.mubr.bf16.vlgmr.msra.gmra.mrb[32].mxu0 %v5454_v2 }
 0x8f7   :  { %4650 = vmatpush3.bf16.msra.mxu0 %v5667_v4  ;;  %4653 = vmatprep.mubr.msk.bf16.mxu0 %vm5453_vm0, %v5452_v1 }
 0x8f8   :  { %4651 = vmatprep.subr.bf16.mxu0 %v5452_v1  ;;  %4660 = vmatpush3.bf16.msra.mxu1 %v5728_v34 }
 0x8f9   :  { %4673 = vmatprep.subr.bf16.mxu1 %v5452_v1 }
 0x8fb   :  { %4652 = vmatpush3.bf16.msra.mxu0 %v5678_v7 }
 0x8fc   :  { %4665 = vmatprep.subr.bf16.mxu0 %v5452_v1 }
 0x9ad   :  { %v936_v22 = vpop.f32.mrb[20].mxu1 }
 0x9ae   :  { %v942_v2 = vadd.f32 %v936_v22, %v247_v21  ;;  %v4599_v24 = vpop.f32.mrb[21].mxu1 }
 0x9af   :  { %v939_v25 = vpop.f32.mrb[22].mxu1 }
 0x9b0   :  { %5151 = vtanh.f32 %v942_v2  ;;  %v4600_v26 = vpop.f32.mrb[23].mxu1 }
 0x9b5   :  { %v1045_v27 = vpop.f32.mrb[24].mxu1 }
 0x9b6   :  { %v4615_v28 = vpop.f32.mrb[25].mxu1 }
 0x9b7   :  { %v1048_v29 = vpop.f32.mrb[26].mxu1 }
 0x9b8   :  { %v4616_v31 = vpop.f32.mrb[27].mxu1 }
 0x9b9   :  { %v1005_v32 = vpop.f32.mrb[24].mxu0 }
 0x9ba   :  { %v5152_v33 = vpop.eup %5151  ;;  %v1046_v37 = vadd.f32 %v1045_v27, %v1005_v32  ;;  %v4607_v46 = vpop.f32.mrb[25].mxu0 }
 0x9bb   :  { %v1008_v47 = vpop.f32.mrb[26].mxu0  ;;  %v944_v48 = vadd.f32 1.0, %v5152_v33 }
 0x9bc   :  { %v1051_v49 = vadd.f32 %v5774_v55, %v1046_v37  ;;  %v4608_v50 = vpop.f32.mrb[27].mxu0 }
 0x9bd   :  { %v1154_v12 = vpop.f32.mrb[28].mxu1  ;;  %v945_v52 = vmul.f32 0.5, %v944_v48 }
 0x9be   :  { %5153 = vtanh.f32 %v1051_v49  ;;  %v4631_v53 = vpop.f32.mrb[29].mxu1 }
 0x9bf   :  { %v1157_v54 = vpop.f32.mrb[30].mxu1  ;;  %v5948_v57 = vsel %vm305_vm2, %v945_v52, %v5152_v33 }
 0x9c0   :  { %949 = vrot.lane.b32.xlu0 %v5948_v57, %s5455_s20  ;;  %v4632_v58 = vpop.f32.mrb[31].mxu1 }
 0x9c1   :  { %v1114_v19 = vpop.f32.mrb[28].mxu0 }
 0x9c2   :  { %v1155_v60 = vadd.f32 %v1154_v12, %v1114_v19  ;;  %v4623_v23 = vpop.f32.mrb[29].mxu0  ;;  %v947_v19 = vmul.f32 %v5948_v57, %v5864_v51 }
 0x9c3   :  { %v1117_v61 = vpop.f32.mrb[30].mxu0 }
 0x9c4   :  { %v1160_v62 = vadd.f32 %v5848_v6, %v1155_v60  ;;  %v4624_v63 = vpop.f32.mrb[31].mxu0 }
 0x9c5   :  { %v1280_v0 = vpop.f32.mrb[32].mxu1 }
 0x9c6   :  { %5155 = vtanh.f32 %v1160_v62  ;;  %v4647_v9 = vpop.f32.mrb[33].mxu1 }
 0x9c7   :  { %v1283_v3 = vpop.f32.mrb[34].mxu1 }
 0x9c8   :  { %v5154_v5 = vpop.eup %5153  ;;  %v4648_v10 = vpop.f32.mrb[35].mxu1 }
 0x9c9   :  { %v1228_v13 = vpop.f32.mrb[32].mxu0  ;;  %v1053_v17 = vadd.f32 1.0, %v5154_v5 }
 0x9ca   :  { %v1281_v21 = vadd.f32 %v1280_v0, %v1228_v13  ;;  %v4639_v22 = vpop.f32.mrb[33].mxu0 }
 0x9cb   :  { %v1231_v2 = vpop.f32.mrb[34].mxu0  ;;  %v1054_v24 = vmul.f32 0.5, %v1053_v17 }
 0x9cc   :  { %v1292_v25 = vadd.f32 %v5953_v11, %v1281_v21  ;;  %v4640_v26 = vpop.f32.mrb[35].mxu0 }
 0x9cd   :  { %v1055_v27 = vsel %vm305_vm2, %v1054_v24, %v5154_v5 }
 0x9ce   :  { %5157 = vtanh.f32 %v1292_v25  ;;  %1058 = vrot.lane.b32.xlu1 %v1055_v27, %s5455_s20  ;;  %v1056_v62 = vmul.f32 %v1055_v27, %v5868_v56 }
 0x9d0   :  { %v5156_v28 = vpop.eup %5155 }
 0x9d1   :  { %v1162_v29 = vadd.f32 1.0, %v5156_v28 }
 0x9d3   :  { %v1163_v31 = vmul.f32 0.5, %v1162_v29 }
 0x9d5   :  { %v1164_v32 = vsel %vm305_vm2, %v1163_v31, %v5156_v28 }
 0x9d6   :  { %1167 = vrot.lane.b32.xlu0 %v1164_v32, %s5455_s20  ;;  %v1165_v9 = vmul.f32 %v1164_v32, %v5872_v59 }
 0x9d8   :  { %v5158_v33 = vpop.eup %5157 }
 0x9d9   :  { %v1294_v37 = vadd.f32 1.0, %v5158_v33 }
 0x9db   :  { %v1295_v46 = vmul.f32 0.5, %v1294_v37 }
 0x9dd   :  { %v1296_v47 = vsel %vm305_vm2, %v1295_v46, %v5158_v33 }
 0x9de   :  { %1299 = vrot.lane.b32.xlu1 %v1296_v47, %s5455_s20  ;;  %v1297_v10 = vmul.f32 0.0, %v1296_v47 }
 0xa32   :  { %v950_v48 = vpop.permute.xlu0 %949 }
 0xa33   :  { %v952_v49 = vmul.f32 %v950_v48, %v5948_v57 }
 0xa35   :  { %954 = vrot.lane.b32.xlu0 %v952_v49, %s5455_s20 }
 0xa40   :  { %v1059_v50 = vpop.permute.xlu1 %1058 }
 0xa41   :  { %v1061_v12 = vmul.f32 %v1059_v50, %v1055_v27 }
 0xa43   :  { %1063 = vrot.lane.b32.xlu1 %v1061_v12, %s5455_s20 }
 0xa48   :  { %v1168_v52 = vpop.permute.xlu0 %1167 }
 0xa49   :  { %v1170_v53 = vmul.f32 %v1168_v52, %v1164_v32 }
 0xa4b   :  { %1172 = vrot.lane.b32.xlu0 %v1170_v53, %s5455_s20 }
 0xa50   :  { %v1300_v54 = vpop.permute.xlu1 %1299 }
 0xa51   :  { %v1302_v58 = vmul.f32 %v1300_v54, %v1296_v47 }
 0xa53   :  { %1304 = vrot.lane.b32.xlu1 %v1302_v58, %s5455_s20 }
 0xaa7   :  { %v955_v60 = vpop.permute.xlu0 %954 }
 0xaa8   :  { %v5972_v23 = vadd.f32 %v955_v60, %v947_v19 }
 0xaaa   :  { %5159 = vtanh.f32 %v5972_v23 }
 0xab4   :  { %v5160_v61 = vpop.eup %5159 }
 0xab5   :  { %960 = vrot.lane.b32.xlu0 %v5160_v61, %s5455_s20  ;;  %v1064_v63 = vpop.permute.xlu1 %1063 }
 0xab6   :  { %v5977_v0 = vadd.f32 %v1064_v63, %v1056_v62 }
 0xab8   :  { %5161 = vtanh.f32 %v5977_v0 }
 0xabd   :  { %v1173_v3 = vpop.permute.xlu0 %1172 }
 0xabe   :  { %v5981_v5 = vadd.f32 %v1173_v3, %v1165_v9 }
 0xac0   :  { %5163 = vtanh.f32 %v5981_v5 }
 0xac2   :  { %v5162_v51 = vpop.eup %5161 }
 0xac3   :  { %1069 = vrot.lane.b32.xlu1 %v5162_v51, %s5455_s20 }
 0xac5   :  { %v1305_v13 = vpop.permute.xlu1 %1304 }
 0xac6   :  { %v5985_v56 = vadd.f32 %v1305_v13, %v1297_v10 }
 0xac8   :  { %5165 = vtanh.f32 %v5985_v56 }
 0xaca   :  { %v5164_v17 = vpop.eup %5163 }
 0xacb   :  { %1178 = vrot.lane.b32.xlu0 %v5164_v17, %s5455_s20 }
 0xad2   :  { %v5166_v21 = vpop.eup %5165 }
 0xad3   :  { %1310 = vrot.lane.b32.xlu1 %v5166_v21, %s5455_s20 }
 0xb27   :  { %v961_v59 = vpop.permute.xlu0 %960 }
 0xb28   :  { %v963_v22 = vmul.f32 %v961_v59, %v5948_v57 }
 0xb2a   :  { %v1314_v2 = vpack.c.bf16 %v963_v22, %v963_v22 }
 0xb2c   :  { %1316 = vrot.lane.b32.xlu0 %v1314_v2, %s5441_s26 }
 0xb35   :  { %v1070_v24 = vpop.permute.xlu1 %1069 }
 0xb36   :  { %v1072_v25 = vmul.f32 %v1070_v24, %v1055_v27 }
 0xb38   :  { %v1383_v26 = vpack.c.bf16 %v1072_v25, %v1072_v25 }
 0xb3a   :  { %1385 = vrot.lane.b32.xlu1 %v1383_v26, %s5441_s26 }
 0xb3d   :  { %v1179_v28 = vpop.permute.xlu0 %1178 }
 0xb3e   :  { %v1181_v29 = vmul.f32 %v1179_v28, %v1164_v32 }
 0xb40   :  { %v1492_v31 = vpack.c.bf16 %v1181_v29, %v1181_v29 }
 0xb42   :  { %1494 = vrot.lane.b32.xlu0 %v1492_v31, %s5441_s26 }
 0xb45   :  { %v1311_v33 = vpop.permute.xlu1 %1310 }
 0xb46   :  { %v1313_v37 = vmul.f32 %v1311_v33, %v1296_v47 }
 0xb48   :  { %v1601_v46 = vpack.c.bf16 %v1313_v37, %v1313_v37 }
 0xb4a   :  { %1603 = vrot.lane.b32.xlu1 %v1601_v46, %s5441_s26 }
 0xb9e   :  { %v1317_v48 = vpop.permute.xlu0 %1316 }
 0xb9f   :  { %4654 = vmatmul.mubr.msk.bf16.vlgmr.msra.gmra.mrb[36].mxu0 %vm318_vm3, %v1317_v48 }
 0xba0   :  { %4666 = vmatpush3.bf16.msra.mxu0 %v5751_v42  ;;  %4669 = vmatprep.mubr.msk.bf16.mxu0 %vm5453_vm0, %v5452_v1 }
 0xba1   :  { %4667 = vmatprep.subr.bf16.mxu0 %v5452_v1 }
 0xba4   :  { %4668 = vmatpush3.bf16.msra.mxu0 %v5758_v44 }
 0xba5   :  { %4681 = vmatprep.subr.bf16.mxu0 %v5452_v1 }
 0xba7   :  { %4670 = vmatmul.mubr.msk.bf16.vlgmr.msra.gmra.mrb[40].mxu0 %vm318_vm3, %v1317_v48 }
 0xba8   :  { %4682 = vmatpush3.bf16.msra.mxu0 %v5805_v35  ;;  %4685 = vmatprep.mubr.msk.bf16.mxu0 %vm5453_vm0, %v5452_v1 }
 0xba9   :  { %4683 = vmatprep.subr.bf16.mxu0 %v5452_v1 }
 0xbac   :  { %4684 = vmatpush3.bf16.msra.mxu0 %v5815_v43  ;;  %v1386_v42 = vpop.permute.xlu1 %1385 }
 0xbad   :  { %4662 = vmatmul.mubr.msk.bf16.vlgmr.msra.gmra.mrb[36].mxu1 %vm318_vm3, %v1386_v42  ;;  %4697 = vmatprep.subr.bf16.mxu0 %v5452_v1 }
 0xbae   :  { %4674 = vmatpush3.bf16.msra.mxu1 %v5808_v36  ;;  %4677 = vmatprep.mubr.msk.bf16.mxu1 %vm5453_vm0, %v5452_v1 }
 0xbaf   :  { %4686 = vmatmul.mubr.msk.bf16.vlgmr.msra.gmra.mrb[44].mxu0 %vm318_vm3, %v1386_v42  ;;  %4675 = vmatprep.subr.bf16.mxu1 %v5452_v1 }
 0xbb0   :  { %4698 = vmatpush3.bf16.msra.mxu0 %v5898_v14  ;;  %4701 = vmatprep.mubr.msk.bf16.mxu0 %vm5453_vm0, %v5452_v1 }
 0xbb1   :  { %4699 = vmatprep.subr.bf16.mxu0 %v5452_v1 }
 0xbb2   :  { %4676 = vmatpush3.bf16.msra.mxu1 %v5822_v45 }
 0xbb3   :  { %4689 = vmatprep.subr.bf16.mxu1 %v5452_v1 }
 0xbb4   :  { %v1495_v57 = vpop.permute.xlu0 %1494  ;;  %4700 = vmatpush3.bf16.msra.mxu0 %v5912_v16 }
 0xbb5   :  { %4678 = vmatmul.mubr.msk.bf16.vlgmr.msra.gmra.mrb[40].mxu1 %vm318_vm3, %v1495_v57  ;;  %4713 = vmatprep.subr.bf16.mxu0 %v5452_v1 }
 0xbb6   :  { %4690 = vmatpush3.bf16.msra.mxu1 %v5907_v15  ;;  %4693 = vmatprep.mubr.msk.bf16.mxu1 %vm5453_vm0, %v5452_v1 }
 0xbb7   :  { %4702 = vmatmul.mubr.msk.bf16.vlgmr.msra.gmra.mrb[48].mxu0 %vm318_vm3, %v1495_v57  ;;  %4691 = vmatprep.subr.bf16.mxu1 %v5452_v1 }
 0xbb8   :  { %4714 = vmatpush3.bf16.msra.mxu0 %v5713_v30  ;;  %4717 = vmatprep.mubr.msk.bf16.mxu0 %vm5453_vm0, %v5452_v1  ;;  %v252_v30 = vadd.f32 %v5694_v8, %v5742_v39 }
 0xbb9   :  { %4715 = vmatprep.subr.bf16.mxu0 %v5452_v1 }
 0xbba   :  { %4692 = vmatpush3.bf16.msra.mxu1 %v5921_v18 }
 0xbbb   :  { %4705 = vmatprep.subr.bf16.mxu1 %v5452_v1 }
 0xbbc   :  { %v1604_v27 = vpop.permute.xlu1 %1603  ;;  %4716 = vmatpush3.bf16.msra.mxu0 %v5728_v34 }
 0xbbd   :  { %4694 = vmatmul.mubr.msk.bf16.vlgmr.msra.gmra.mrb[44].mxu1 %vm318_vm3, %v1604_v27  ;;  %4729 = vmatprep.subr.bf16.mxu0 %v5452_v1 }
 0xbbe   :  { %4706 = vmatpush3.bf16.msra.mxu1 %v5667_v4  ;;  %4709 = vmatprep.mubr.msk.bf16.mxu1 %vm5453_vm0, %v5452_v1 }
 0xbbf   :  { %4707 = vmatprep.subr.bf16.mxu1 %v5452_v1 }
 0xbc2   :  { %4708 = vmatpush3.bf16.msra.mxu1 %v5678_v7 }
 0xbc3   :  { %4721 = vmatprep.subr.bf16.mxu1 %v5452_v1 }
 0xc72   :  { %v1355_v32 = vpop.f32.mrb[36].mxu0 }
 0xc73   :  { %v1361_v34 = vadd.f32 %v1355_v32, %v252_v30  ;;  %v4655_v47 = vpop.f32.mrb[37].mxu0 }
 0xc74   :  { %v1358_v49 = vpop.f32.mrb[38].mxu0 }
 0xc75   :  { %5167 = vtanh.f32 %v1361_v34  ;;  %v4656_v50 = vpop.f32.mrb[39].mxu0 }
 0xc7a   :  { %v1464_v12 = vpop.f32.mrb[40].mxu0 }
 0xc7b   :  { %v4671_v4 = vpop.f32.mrb[41].mxu0 }
 0xc7c   :  { %v1467_v52 = vpop.f32.mrb[42].mxu0 }
 0xc7d   :  { %v4672_v53 = vpop.f32.mrb[43].mxu0 }
 0xc7f   :  { %v5168_v54 = vpop.eup %5167 }
 0xc80   :  { %v1424_v58 = vpop.f32.mrb[36].mxu1  ;;  %v1363_v19 = vadd.f32 1.0, %v5168_v54 }
 0xc81   :  { %v1465_v60 = vadd.f32 %v1464_v12, %v1424_v58  ;;  %v4663_v7 = vpop.f32.mrb[37].mxu1 }
 0xc82   :  { %v1427_v61 = vpop.f32.mrb[38].mxu1  ;;  %v1573_v62 = vpop.f32.mrb[44].mxu0  ;;  %v1364_v63 = vmul.f32 0.5, %v1363_v19 }
 0xc83   :  { %v1470_v8 = vadd.f32 %v5774_v55, %v1465_v60  ;;  %v4664_v39 = vpop.f32.mrb[39].mxu1  ;;  %v4687_v9 = vpop.f32.mrb[45].mxu0 }
 0xc84   :  { %v1576_v3 = vpop.f32.mrb[46].mxu0  ;;  %v6049_v51 = vsel %vm305_vm2, %v1364_v63, %v5168_v54 }
 0xc85   :  { %5169 = vtanh.f32 %v1470_v8  ;;  %1368 = vrot.lane.b32.xlu0 %v6049_v51, %s5455_s20  ;;  %v4688_v10 = vpop.f32.mrb[47].mxu0 }
 0xc88   :  { %v1533_v13 = vpop.f32.mrb[40].mxu1 }
 0xc89   :  { %v1574_v17 = vadd.f32 %v1573_v62, %v1533_v13  ;;  %v4679_v21 = vpop.f32.mrb[41].mxu1  ;;  %v1366_v62 = vmul.f32 %v6049_v51, %v5972_v23 }
 0xc8a   :  { %v1536_v59 = vpop.f32.mrb[42].mxu1  ;;  %v1682_v22 = vpop.f32.mrb[48].mxu0 }
 0xc8b   :  { %v1579_v2 = vadd.f32 %v5848_v6, %v1574_v17  ;;  %v4680_v55 = vpop.f32.mrb[43].mxu1  ;;  %v4703_v24 = vpop.f32.mrb[49].mxu0 }
 0xc8c   :  { %v1685_v25 = vpop.f32.mrb[50].mxu0 }
 0xc8d   :  { %5171 = vtanh.f32 %v1579_v2  ;;  %v4704_v26 = vpop.f32.mrb[51].mxu0 }
 0xc8f   :  { %v5170_v28 = vpop.eup %5169 }
 0xc90   :  { %v1642_v29 = vpop.f32.mrb[44].mxu1  ;;  %v1472_v31 = vadd.f32 1.0, %v5170_v28 }
 0xc91   :  { %v1683_v33 = vadd.f32 %v1682_v22, %v1642_v29  ;;  %v4695_v37 = vpop.f32.mrb[45].mxu1 }
 0xc92   :  { %v1645_v46 = vpop.f32.mrb[46].mxu1  ;;  %v1473_v48 = vmul.f32 0.5, %v1472_v31 }
 0xc93   :  { %v1688_v42 = vadd.f32 %v5953_v11, %v1683_v33  ;;  %v4696_v57 = vpop.f32.mrb[47].mxu1 }
 0xc94   :  { %v1474_v27 = vsel %vm305_vm2, %v1473_v48, %v5170_v28 }
 0xc95   :  { %5173 = vtanh.f32 %v1688_v42  ;;  %1477 = vrot.lane.b32.xlu1 %v1474_v27, %s5455_s20  ;;  %v1475_v9 = vmul.f32 %v1474_v27, %v5977_v0 }
 0xc97   :  { %v5172_v30 = vpop.eup %5171 }
 0xc98   :  { %v1581_v32 = vadd.f32 1.0, %v5172_v30 }
 0xc9a   :  { %v1582_v34 = vmul.f32 0.5, %v1581_v32 }
 0xc9c   :  { %v1583_v47 = vsel %vm305_vm2, %v1582_v34, %v5172_v30  ;;  %v6160_v30 = vld [vmem:[%s6677_s3] ss:$0 sm:$0xff] }
 0xc9d   :  { %1586 = vrot.lane.b32.xlu0 %v1583_v47, %s5455_s20  ;;  %v1584_v13 = vmul.f32 %v1583_v47, %v5981_v5  ;;  %v255_v32 = vadd.f32 %v6160_v30, %v5746_v41 }
 0xc9f   :  { %v5174_v49 = vpop.eup %5173 }
 0xca0   :  { %v1690_v50 = vadd.f32 1.0, %v5174_v49 }
 0xca2   :  { %v1691_v12 = vmul.f32 0.5, %v1690_v50 }
 0xca4   :  { %v1692_v4 = vsel %vm305_vm2, %v1691_v12, %v5174_v49 }
 0xca5   :  { %1695 = vrot.lane.b32.xlu1 %v1692_v4, %s5455_s20  ;;  %v1693_v59 = vmul.f32 %v1692_v4, %v5985_v56 }
 0xcf7   :  { %v1369_v52 = vpop.permute.xlu0 %1368 }
 0xcf8   :  { %v1371_v53 = vmul.f32 %v1369_v52, %v6049_v51 }
 0xcfa   :  { %1373 = vrot.lane.b32.xlu0 %v1371_v53, %s5455_s20 }
 0xd07   :  { %v1478_v54 = vpop.permute.xlu1 %1477 }
 0xd08   :  { %v1480_v58 = vmul.f32 %v1478_v54, %v1474_v27 }
 0xd0a   :  { %1482 = vrot.lane.b32.xlu1 %v1480_v58, %s5455_s20 }
 0xd0f   :  { %v1587_v19 = vpop.permute.xlu0 %1586 }
 0xd10   :  { %v1589_v60 = vmul.f32 %v1587_v19, %v1583_v47 }
 0xd12   :  { %1591 = vrot.lane.b32.xlu0 %v1589_v60, %s5455_s20 }
 0xd17   :  { %v1696_v7 = vpop.permute.xlu1 %1695 }
 0xd18   :  { %v1698_v61 = vmul.f32 %v1696_v7, %v1692_v4 }
 0xd1a   :  { %1700 = vrot.lane.b32.xlu1 %v1698_v61, %s5455_s20 }
 0xd6c   :  { %v1374_v63 = vpop.permute.xlu0 %1373 }
 0xd6d   :  { %v6071_v8 = vadd.f32 %v1374_v63, %v1366_v62 }
 0xd6f   :  { %5175 = vtanh.f32 %v6071_v8 }
 0xd79   :  { %v5176_v39 = vpop.eup %5175 }
 0xd7a   :  { %1379 = vrot.lane.b32.xlu0 %v5176_v39, %s5455_s20 }
 0xd7c   :  { %v1483_v3 = vpop.permute.xlu1 %1482 }
 0xd7d   :  { %v6076_v10 = vadd.f32 %v1483_v3, %v1475_v9 }
 0xd7f   :  { %5177 = vtanh.f32 %v6076_v10 }
 0xd84   :  { %v1592_v17 = vpop.permute.xlu0 %1591 }
 0xd85   :  { %v6080_v21 = vadd.f32 %v1592_v17, %v1584_v13  ;;  %v6168_v13 = vld [vmem:[#allocation8] ss:$0 sm:$0xff] }
 0xd87   :  { %5179 = vtanh.f32 %v6080_v21 }
 0xd89   :  { %v5178_v23 = vpop.eup %5177 }
 0xd8a   :  { %1488 = vrot.lane.b32.xlu1 %v5178_v23, %s5455_s20 }
 0xd8c   :  { %v1701_v22 = vpop.permute.xlu1 %1700 }
 0xd8d   :  { %v6085_v2 = vadd.f32 %v1701_v22, %v1693_v59 }
 0xd8f   :  { %5181 = vtanh.f32 %v6085_v2 }
 0xd91   :  { %v5180_v0 = vpop.eup %5179 }
 0xd92   :  { %1597 = vrot.lane.b32.xlu0 %v5180_v0, %s5455_s20 }
 0xd99   :  { %v5182_v55 = vpop.eup %5181 }
 0xd9a   :  { %1706 = vrot.lane.b32.xlu1 %v5182_v55, %s5455_s20 }
 0xdec   :  { %v1380_v5 = vpop.permute.xlu0 %1379 }
 0xded   :  { %v1382_v24 = vmul.f32 %v1380_v5, %v6049_v51  ;;  %v6099_v51 = vld [vmem:[%s6678_s4] sm:$0xff]  }
 0xdef   :  { %v1710_v25 = vpack.c.bf16 %v1382_v24, %v1382_v24 }
 0xdf1   :  { %1712 = vrot.lane.b32.xlu0 %v1710_v25, %s5441_s26 }
 0xdfc   :  { %v1489_v26 = vpop.permute.xlu1 %1488 }
 0xdfd   :  { %v1491_v28 = vmul.f32 %v1489_v26, %v1474_v27  ;;  %v6153_v27 = vld [vmem:[#allocation5 + $0x8] sm:$0xff]  }
 0xdff   :  { %v1779_v56 = vpack.c.bf16 %v1491_v28, %v1491_v28 }
 0xe01   :  { %1781 = vrot.lane.b32.xlu1 %v1779_v56, %s5441_s26 }
 0xe04   :  { %v1598_v29 = vpop.permute.xlu0 %1597 }
 0xe05   :  { %v1600_v31 = vmul.f32 %v1598_v29, %v1583_v47 }
 0xe07   :  { %v1888_v33 = vpack.c.bf16 %v1600_v31, %v1600_v31 }
 0xe09   :  { %1890 = vrot.lane.b32.xlu0 %v1888_v33, %s5441_s26 }
 0xe0c   :  { %v1707_v37 = vpop.permute.xlu1 %1706 }
 0xe0d   :  { %v1709_v46 = vmul.f32 %v1707_v37, %v1692_v4 }
 0xe0f   :  { %v1997_v48 = vpack.c.bf16 %v1709_v46, %v1709_v46 }
 0xe11   :  { %1999 = vrot.lane.b32.xlu1 %v1997_v48, %s5441_s26 }
 0xe63   :  { %v1713_v42 = vpop.permute.xlu0 %1712 }
 0xe64   :  { %4710 = vmatmul.mubr.msk.bf16.vlgmr.msra.gmra.mrb[48].mxu1 %vm318_vm3, %v1713_v42 }
 0xe65   :  { %4722 = vmatpush3.bf16.msra.mxu1 %v6099_v51  ;;  %4725 = vmatprep.mubr.msk.bf16.mxu1 %vm5453_vm0, %v5452_v1 }
 0xe66   :  { %4723 = vmatprep.subr.bf16.mxu1 %v5452_v1 }
 0xe69   :  { %4724 = vmatpush3.bf16.msra.mxu1 %v5758_v44 }
 0xe6a   :  { %4737 = vmatprep.subr.bf16.mxu1 %v5452_v1 }
 0xe6c   :  { %4726 = vmatmul.mubr.msk.bf16.vlgmr.msra.gmra.mrb[52].mxu1 %vm318_vm3, %v1713_v42 }
 0xe6d   :  { %4738 = vmatpush3.bf16.msra.mxu1 %v5805_v35  ;;  %4741 = vmatprep.mubr.msk.bf16.mxu1 %vm5453_vm0, %v5452_v1  ;;  %v6134_v35 = vld [vmem:[#allocation7] sm:$0xff]  }
 0xe6e   :  { %4739 = vmatprep.subr.bf16.mxu1 %v5452_v1 }
 0xe71   :  { %4740 = vmatpush3.bf16.msra.mxu1 %v5815_v43 }
 0xe72   :  { %4753 = vmatprep.subr.bf16.mxu1 %v5452_v1 }
 0xe73   :  { %v1782_v57 = vpop.permute.xlu1 %1781 }
 0xe74   :  { %4718 = vmatmul.mubr.msk.bf16.vlgmr.msra.gmra.mrb[52].mxu0 %vm318_vm3, %v1782_v57  ;;  %4742 = vmatmul.mubr.msk.bf16.vlgmr.msra.gmra.mrb[56].mxu1 %vm318_vm3, %v1782_v57 }
 0xe75   :  { %4730 = vmatpush3.bf16.msra.mxu0 %v5808_v36  ;;  %4754 = vmatpush3.bf16.msra.mxu1 %v5898_v14  ;;  %v6142_v36 = vld [vmem:[#allocation7 + $0x8] sm:$0xff]  }
 0xe76   :  { %4731 = vmatprep.subr.bf16.mxu0 %v5452_v1  ;;  %4755 = vmatprep.subr.bf16.mxu1 %v5452_v1 }
 0xe77   :  { %4733 = vmatprep.mubr.msk.bf16.mxu0 %vm5453_vm0, %v5452_v1  ;;  %4757 = vmatprep.mubr.msk.bf16.mxu1 %vm5453_vm0, %v5452_v1 }
 0xe79   :  { %4732 = vmatpush3.bf16.msra.mxu0 %v5822_v45  ;;  %4756 = vmatpush3.bf16.msra.mxu1 %v5912_v16  ;;  %v6147_v45 = vld [vmem:[#allocation5] sm:$0xff]  }
 0xe7a   :  { %4745 = vmatprep.subr.bf16.mxu0 %v5452_v1  ;;  %4769 = vmatprep.subr.bf16.mxu1 %v5452_v1 }
 0xe7b   :  { %v1891_v44 = vpop.permute.xlu0 %1890 }
 0xe7c   :  { %4734 = vmatmul.mubr.msk.bf16.vlgmr.msra.gmra.mrb[56].mxu0 %vm318_vm3, %v1891_v44  ;;  %4758 = vmatmul.mubr.msk.bf16.vlgmr.msra.gmra.mrb[60].mxu1 %vm318_vm3, %v1891_v44 }
 0xe7d   :  { %4746 = vmatpush3.bf16.msra.mxu0 %v5907_v15  ;;  %4749 = vmatprep.mubr.msk.bf16.mxu0 %vm5453_vm0, %v5452_v1 }
 0xe7e   :  { %4747 = vmatprep.subr.bf16.mxu0 %v5452_v1  ;;  %4770 = vmatpush3.bf16.msra.mxu1 %v6134_v35 }
 0xe7f   :  { %4771 = vmatprep.subr.bf16.mxu1 %v5452_v1  ;;  %4773 = vmatprep.mubr.msk.bf16.mxu1 %vm5453_vm0, %v5452_v1 }
 0xe81   :  { %4748 = vmatpush3.bf16.msra.mxu0 %v5921_v18 }
 0xe82   :  { %4761 = vmatprep.subr.bf16.mxu0 %v5452_v1  ;;  %4772 = vmatpush3.bf16.msra.mxu1 %v6142_v36 }
 0xe83   :  { %v2000_v43 = vpop.permute.xlu1 %1999  ;;  %4785 = vmatprep.subr.bf16.mxu1 %v5452_v1 }
 0xe84   :  { %4750 = vmatmul.mubr.msk.bf16.vlgmr.msra.gmra.mrb[60].mxu0 %vm318_vm3, %v2000_v43 }
 0xe85   :  { %4762 = vmatpush3.bf16.msra.mxu0 %v6147_v45  ;;  %4765 = vmatprep.mubr.msk.bf16.mxu0 %vm5453_vm0, %v5452_v1 }
 0xe86   :  { %4763 = vmatprep.subr.bf16.mxu0 %v5452_v1 }
 0xe89   :  { %4764 = vmatpush3.bf16.msra.mxu0 %v6153_v27 }
 0xe8a   :  { %4777 = vmatprep.subr.bf16.mxu0 %v5452_v1 }
 0xf37   :  { %v1751_v34 = vpop.f32.mrb[48].mxu1 }
 0xf38   :  { %v1757_v47 = vadd.f32 %v1751_v34, %v255_v32  ;;  %v4711_v49 = vpop.f32.mrb[49].mxu1 }
 0xf39   :  { %v1754_v50 = vpop.f32.mrb[50].mxu1 }
 0xf3a   :  { %5183 = vtanh.f32 %v1757_v47  ;;  %v4712_v12 = vpop.f32.mrb[51].mxu1 }
 0xf3f   :  { %v1860_v4 = vpop.f32.mrb[52].mxu1 }
 0xf40   :  { %v4727_v52 = vpop.f32.mrb[53].mxu1 }
 0xf41   :  { %v1863_v53 = vpop.f32.mrb[54].mxu1 }
 0xf42   :  { %v4728_v54 = vpop.f32.mrb[55].mxu1 }
 0xf44   :  { %v5184_v58 = vpop.eup %5183 }
 0xf45   :  { %v1759_v19 = vadd.f32 1.0, %v5184_v58 }
 0xf47   :  { %v1820_v60 = vpop.f32.mrb[52].mxu0  ;;  %v1969_v7 = vpop.f32.mrb[56].mxu1  ;;  %v1760_v61 = vmul.f32 0.5, %v1759_v19 }
 0xf48   :  { %v1861_v62 = vadd.f32 %v1860_v4, %v1820_v60  ;;  %v4719_v63 = vpop.f32.mrb[53].mxu0  ;;  %v4743_v39 = vpop.f32.mrb[57].mxu1 }
 0xf49   :  { %v1823_v9 = vpop.f32.mrb[54].mxu0  ;;  %v1972_v41 = vpop.f32.mrb[58].mxu1  ;;  %v6166_v3 = vsel %vm305_vm2, %v1760_v61, %v5184_v58 }
 0xf4a   :  { %v1866_v17 = vadd.f32 %v6168_v13, %v1861_v62  ;;  %v4720_v23 = vpop.f32.mrb[55].mxu0  ;;  %1764 = vrot.lane.b32.xlu0 %v6166_v3, %s5455_s20  ;;  %v4744_v59 = vpop.f32.mrb[59].mxu1  ;;  %v1762_v63 = vmul.f32 %v6166_v3, %v6071_v8 }
 0xf4c   :  { %5185 = vtanh.f32 %v1866_v17 }
 0xf4f   :  { %v1929_v22 = vpop.f32.mrb[56].mxu0  ;;  %v2078_v0 = vpop.f32.mrb[60].mxu1 }
 0xf50   :  { %v1970_v55 = vadd.f32 %v1969_v7, %v1929_v22  ;;  %v4735_v5 = vpop.f32.mrb[57].mxu0  ;;  %v4759_v24 = vpop.f32.mrb[61].mxu1 }
 0xf51   :  { %v1932_v25 = vpop.f32.mrb[58].mxu0  ;;  %v2081_v26 = vpop.f32.mrb[62].mxu1 }
 0xf52   :  { %v1975_v28 = vadd.f32 %v5848_v6, %v1970_v55  ;;  %v4736_v56 = vpop.f32.mrb[59].mxu0  ;;  %v4760_v29 = vpop.f32.mrb[63].mxu1 }
 0xf54   :  { %5187 = vtanh.f32 %v1975_v28 }
 0xf56   :  { %v5186_v31 = vpop.eup %5185 }
 0xf57   :  { %v2038_v33 = vpop.f32.mrb[60].mxu0  ;;  %v1868_v37 = vadd.f32 1.0, %v5186_v31 }
 0xf58   :  { %v2079_v46 = vadd.f32 %v2078_v0, %v2038_v33  ;;  %v4751_v48 = vpop.f32.mrb[61].mxu0 }
 0xf59   :  { %v2041_v42 = vpop.f32.mrb[62].mxu0  ;;  %v1869_v57 = vmul.f32 0.5, %v1868_v37 }
 0xf5a   :  { %v2084_v44 = vadd.f32 %v5953_v11, %v2079_v46  ;;  %v4752_v43 = vpop.f32.mrb[63].mxu0 }
 0xf5b   :  { %v1870_v32 = vsel %vm305_vm2, %v1869_v57, %v5186_v31  ;;  %v6231_v43 = vld [vmem:[%s6678_s4 + $0x10] sm:$0xff]  }
 0xf5c   :  { %5189 = vtanh.f32 %v2084_v44  ;;  %1873 = vrot.lane.b32.xlu1 %v1870_v32, %s5455_s20  ;;  %v1871_v17 = vmul.f32 %v1870_v32, %v6076_v10 }
 0xf5e   :  { %v5188_v6 = vpop.eup %5187 }
 0xf5f   :  { %v1977_v34 = vadd.f32 1.0, %v5188_v6 }
 0xf61   :  { %v1978_v47 = vmul.f32 0.5, %v1977_v34  ;;  %v6246_v34 = vld [vmem:[#allocation7 + $0x10] sm:$0xff]  }
 0xf63   :  { %v1979_v49 = vsel %vm305_vm2, %v1978_v47, %v5188_v6  ;;  %v6256_v47 = vld [vmem:[#allocation7 + $0x18] sm:$0xff]  }
 0xf64   :  { %1982 = vrot.lane.b32.xlu0 %v1979_v49, %s5455_s20  ;;  %v1980_v22 = vmul.f32 %v1979_v49, %v6080_v21 }
 0xf66   :  { %v5190_v50 = vpop.eup %5189 }
 0xf67   :  { %v2086_v12 = vadd.f32 1.0, %v5190_v50 }
 0xf69   :  { %v2087_v4 = vmul.f32 0.5, %v2086_v12 }
 0xf6b   :  { %v2088_v52 = vsel %vm305_vm2, %v2087_v4, %v5190_v50 }
 0xf6c   :  { %2091 = vrot.lane.b32.xlu1 %v2088_v52, %s5455_s20  ;;  %v2089_v5 = vmul.f32 %v2088_v52, %v6085_v2 }
 0xfbc   :  { %v1765_v53 = vpop.permute.xlu0 %1764 }
 0xfbd   :  { %v1767_v54 = vmul.f32 %v1765_v53, %v6166_v3 }
 0xfbf   :  { %1769 = vrot.lane.b32.xlu0 %v1767_v54, %s5455_s20 }
 0xfce   :  { %v1874_v58 = vpop.permute.xlu1 %1873 }
 0xfcf   :  { %v1876_v19 = vmul.f32 %v1874_v58, %v1870_v32 }
 0xfd1   :  { %1878 = vrot.lane.b32.xlu1 %v1876_v19, %s5455_s20 }
 0xfd6   :  { %v1983_v60 = vpop.permute.xlu0 %1982 }
 0xfd7   :  { %v1985_v7 = vmul.f32 %v1983_v60, %v1979_v49 }
 0xfd9   :  { %1987 = vrot.lane.b32.xlu0 %v1985_v7, %s5455_s20 }
 0xfde   :  { %v2092_v61 = vpop.permute.xlu1 %2091 }
 0xfdf   :  { %v2094_v62 = vmul.f32 %v2092_v61, %v2088_v52 }
 0xfe1   :  { %2096 = vrot.lane.b32.xlu1 %v2094_v62, %s5455_s20 }
0x1031   :  { %v1770_v39 = vpop.permute.xlu0 %1769 }
0x1032   :  { %v6191_v9 = vadd.f32 %v1770_v39, %v1762_v63 }
0x1034   :  { %5191 = vtanh.f32 %v6191_v9 }
0x103e   :  { %v5192_v41 = vpop.eup %5191 }
0x103f   :  { %1775 = vrot.lane.b32.xlu0 %v5192_v41, %s5455_s20 }
0x1043   :  { %v1879_v23 = vpop.permute.xlu1 %1878 }
0x1044   :  { %v6196_v59 = vadd.f32 %v1879_v23, %v1871_v17 }
0x1046   :  { %5193 = vtanh.f32 %v6196_v59 }
0x104b   :  { %v1988_v0 = vpop.permute.xlu0 %1987 }
0x104c   :  { %v6200_v55 = vadd.f32 %v1988_v0, %v1980_v22 }
0x104e   :  { %5195 = vtanh.f32 %v6200_v55 }
0x1050   :  { %v5194_v8 = vpop.eup %5193 }
0x1051   :  { %1884 = vrot.lane.b32.xlu1 %v5194_v8, %s5455_s20 }
0x1053   :  { %v2097_v24 = vpop.permute.xlu1 %2096 }
0x1054   :  { %v6205_v25 = vadd.f32 %v2097_v24, %v2089_v5 }
0x1056   :  { %5197 = vtanh.f32 %v6205_v25 }
0x1058   :  { %v5196_v10 = vpop.eup %5195 }
0x1059   :  { %1993 = vrot.lane.b32.xlu0 %v5196_v10, %s5455_s20 }
0x1060   :  { %v5198_v26 = vpop.eup %5197 }
0x1061   :  { %2102 = vrot.lane.b32.xlu1 %v5198_v26, %s5455_s20 }
0x10b1   :  { %v1776_v21 = vpop.permute.xlu0 %1775 }
0x10b2   :  { %v1778_v28 = vmul.f32 %v1776_v21, %v6166_v3  ;;  %v6223_v3 = vld [vmem:[%s6678_s4 + $0x8] sm:$0xff]  }
0x10b4   :  { %v2106_v56 = vpack.c.bf16 %v1778_v28, %v1778_v28  ;;  %v6292_v28 = vld [vmem:[#allocation8 + $0x1] ss:$0 sm:$0xff] }
0x10b6   :  { %2108 = vrot.lane.b32.xlu0 %v2106_v56, %s5441_s26 }
0x10c3   :  { %v1885_v29 = vpop.permute.xlu1 %1884 }
0x10c4   :  { %v1887_v31 = vmul.f32 %v1885_v29, %v1870_v32  ;;  %v6240_v32 = vld [vmem:[%s6678_s4 + $0x18] sm:$0xff]  }
0x10c6   :  { %v2175_v2 = vpack.c.bf16 %v1887_v31, %v1887_v31 }
0x10c8   :  { %2177 = vrot.lane.b32.xlu1 %v2175_v2, %s5441_s26 }
0x10cb   :  { %v1994_v33 = vpop.permute.xlu0 %1993 }
0x10cc   :  { %v1996_v37 = vmul.f32 %v1994_v33, %v1979_v49 }
0x10ce   :  { %v2284_v46 = vpack.c.bf16 %v1996_v37, %v1996_v37 }
0x10d0   :  { %2286 = vrot.lane.b32.xlu0 %v2284_v46, %s5441_s26 }
0x10d3   :  { %v2103_v48 = vpop.permute.xlu1 %2102 }
0x10d4   :  { %v2105_v42 = vmul.f32 %v2103_v48, %v2088_v52 }
0x10d6   :  { %v2393_v57 = vpack.c.bf16 %v2105_v42, %v2105_v42 }
0x10d8   :  { %2395 = vrot.lane.b32.xlu1 %v2393_v57, %s5441_s26 }
0x1128   :  { %v2109_v44 = vpop.permute.xlu0 %2108 }
0x1129   :  { %4766 = vmatmul.mubr.msk.bf16.vlgmr.msra.gmra.mrb[64].mxu0 %vm318_vm3, %v2109_v44 }
0x112a   :  { %4778 = vmatpush3.bf16.msra.mxu0 %v6099_v51  ;;  %4781 = vmatprep.mubr.msk.bf16.mxu0 %vm5453_vm0, %v5452_v1 }
0x112b   :  { %4779 = vmatprep.subr.bf16.mxu0 %v5452_v1 }
0x112e   :  { %4780 = vmatpush3.bf16.msra.mxu0 %v6223_v3 }
0x112f   :  { %4793 = vmatprep.subr.bf16.mxu0 %v5452_v1 }
0x1131   :  { %4782 = vmatmul.mubr.msk.bf16.vlgmr.msra.gmra.mrb[68].mxu0 %vm318_vm3, %v2109_v44 }
0x1132   :  { %4794 = vmatpush3.bf16.msra.mxu0 %v6231_v43  ;;  %4797 = vmatprep.mubr.msk.bf16.mxu0 %vm5453_vm0, %v5452_v1 }
0x1133   :  { %4795 = vmatprep.subr.bf16.mxu0 %v5452_v1 }
0x1136   :  { %4796 = vmatpush3.bf16.msra.mxu0 %v6240_v32 }
0x1137   :  { %4809 = vmatprep.subr.bf16.mxu0 %v5452_v1 }
0x113a   :  { %v2178_v6 = vpop.permute.xlu1 %2177 }
0x113b   :  { %4774 = vmatmul.mubr.msk.bf16.vlgmr.msra.gmra.mrb[64].mxu1 %vm318_vm3, %v2178_v6  ;;  %4798 = vmatmul.mubr.msk.bf16.vlgmr.msra.gmra.mrb[72].mxu0 %vm318_vm3, %v2178_v6 }
0x113c   :  { %4786 = vmatpush3.bf16.msra.mxu1 %v6246_v34  ;;  %4810 = vmatpush3.bf16.msra.mxu0 %v5898_v14 }
0x113d   :  { %4787 = vmatprep.subr.bf16.mxu1 %v5452_v1  ;;  %4811 = vmatprep.subr.bf16.mxu0 %v5452_v1 }
0x113e   :  { %4789 = vmatprep.mubr.msk.bf16.mxu1 %vm5453_vm0, %v5452_v1  ;;  %4813 = vmatprep.mubr.msk.bf16.mxu0 %vm5453_vm0, %v5452_v1 }
0x1140   :  { %4788 = vmatpush3.bf16.msra.mxu1 %v6256_v47  ;;  %4812 = vmatpush3.bf16.msra.mxu0 %v5912_v16 }
0x1141   :  { %4801 = vmatprep.subr.bf16.mxu1 %v5452_v1  ;;  %4825 = vmatprep.subr.bf16.mxu0 %v5452_v1 }
0x1142   :  { %v2287_v14 = vpop.permute.xlu0 %2286 }
0x1143   :  { %4790 = vmatmul.mubr.msk.bf16.vlgmr.msra.gmra.mrb[68].mxu1 %vm318_vm3, %v2287_v14  ;;  %4814 = vmatmul.mubr.msk.bf16.vlgmr.msra.gmra.mrb[76].mxu0 %vm318_vm3, %v2287_v14 }
0x1144   :  { %4802 = vmatpush3.bf16.msra.mxu1 %v5907_v15  ;;  %4805 = vmatprep.mubr.msk.bf16.mxu1 %vm5453_vm0, %v5452_v1  ;;  %v260_v15 = vadd.f32 %v6160_v30, %v5740_v38 }
0x1145   :  { %4803 = vmatprep.subr.bf16.mxu1 %v5452_v1  ;;  %4826 = vmatpush3.bf16.msra.mxu0 %v6134_v35 }
0x1146   :  { %4827 = vmatprep.subr.bf16.mxu0 %v5452_v1  ;;  %4829 = vmatprep.mubr.msk.bf16.mxu0 %vm5453_vm0, %v5452_v1 }
0x1148   :  { %4804 = vmatpush3.bf16.msra.mxu1 %v5921_v18 }
0x1149   :  { %4817 = vmatprep.subr.bf16.mxu1 %v5452_v1  ;;  %4828 = vmatpush3.bf16.msra.mxu0 %v6142_v36 }
0x114a   :  { %v2396_v16 = vpop.permute.xlu1 %2395  ;;  %4841 = vmatprep.subr.bf16.mxu0 %v5452_v1 }
0x114b   :  { %4806 = vmatmul.mubr.msk.bf16.vlgmr.msra.gmra.mrb[72].mxu1 %vm318_vm3, %v2396_v16 }
0x114c   :  { %4818 = vmatpush3.bf16.msra.mxu1 %v6147_v45  ;;  %4821 = vmatprep.mubr.msk.bf16.mxu1 %vm5453_vm0, %v5452_v1 }
0x114d   :  { %4819 = vmatprep.subr.bf16.mxu1 %v5452_v1 }
0x1150   :  { %4820 = vmatpush3.bf16.msra.mxu1 %v6153_v27 }
0x1151   :  { %4833 = vmatprep.subr.bf16.mxu1 %v5452_v1 }
0x11fc   :  { %v2147_v18 = vpop.f32.mrb[64].mxu0 }
0x11fd   :  { %v2153_v49 = vadd.f32 %v2147_v18, %v260_v15  ;;  %v4767_v50 = vpop.f32.mrb[65].mxu0 }
0x11fe   :  { %v2150_v12 = vpop.f32.mrb[66].mxu0 }
0x11ff   :  { %5199 = vtanh.f32 %v2153_v49  ;;  %v4768_v4 = vpop.f32.mrb[67].mxu0 }
0x1204   :  { %v2256_v52 = vpop.f32.mrb[68].mxu0 }
0x1205   :  { %v4783_v45 = vpop.f32.mrb[69].mxu0 }
0x1206   :  { %v2259_v53 = vpop.f32.mrb[70].mxu0 }
0x1207   :  { %v4784_v54 = vpop.f32.mrb[71].mxu0 }
0x1209   :  { %v5200_v58 = vpop.eup %5199 }
0x120a   :  { %v2155_v19 = vadd.f32 1.0, %v5200_v58 }
0x120c   :  { %v2156_v60 = vmul.f32 0.5, %v2155_v19 }
0x120e   :  { %v2216_v7 = vpop.f32.mrb[64].mxu1  ;;  %v2365_v27 = vpop.f32.mrb[72].mxu0  ;;  %v6287_v61 = vsel %vm305_vm2, %v2156_v60, %v5200_v58 }
0x120f   :  { %v2257_v38 = vadd.f32 %v2256_v52, %v2216_v7  ;;  %2160 = vrot.lane.b32.xlu0 %v6287_v61, %s5455_s20  ;;  %v4775_v62 = vpop.f32.mrb[65].mxu1  ;;  %v4799_v63 = vpop.f32.mrb[73].mxu0 }
0x1210   :  { %v2219_v39 = vpop.f32.mrb[66].mxu1  ;;  %v2368_v41 = vpop.f32.mrb[74].mxu0 }
0x1211   :  { %v2262_v17 = vadd.f32 %v6168_v13, %v2257_v38  ;;  %v4776_v23 = vpop.f32.mrb[67].mxu1  ;;  %v4800_v22 = vpop.f32.mrb[75].mxu0 }
0x1213   :  { %5201 = vtanh.f32 %v2262_v17 }
0x1216   :  { %v2325_v0 = vpop.f32.mrb[68].mxu1  ;;  %v2474_v8 = vpop.f32.mrb[76].mxu0 }
0x1217   :  { %v2366_v5 = vadd.f32 %v2365_v27, %v2325_v0  ;;  %v4791_v24 = vpop.f32.mrb[69].mxu1  ;;  %v4815_v10 = vpop.f32.mrb[77].mxu0  ;;  %v2158_v27 = vmul.f32 %v6287_v61, %v6191_v9 }
0x1218   :  { %v2328_v26 = vpop.f32.mrb[70].mxu1  ;;  %v2477_v21 = vpop.f32.mrb[78].mxu0 }
0x1219   :  { %v2371_v56 = vadd.f32 %v6292_v28, %v2366_v5  ;;  %v4792_v29 = vpop.f32.mrb[71].mxu1  ;;  %v4816_v31 = vpop.f32.mrb[79].mxu0 }
0x121b   :  { %5203 = vtanh.f32 %v2371_v56 }
0x121d   :  { %v5202_v2 = vpop.eup %5201 }
0x121e   :  { %v2434_v33 = vpop.f32.mrb[72].mxu1  ;;  %v2264_v37 = vadd.f32 1.0, %v5202_v2 }
0x121f   :  { %v2475_v46 = vadd.f32 %v2474_v8, %v2434_v33  ;;  %v4807_v48 = vpop.f32.mrb[73].mxu1 }
0x1220   :  { %v2437_v42 = vpop.f32.mrb[74].mxu1  ;;  %v2265_v57 = vmul.f32 0.5, %v2264_v37 }
0x1221   :  { %v2480_v44 = vadd.f32 %v5953_v11, %v2475_v46  ;;  %v4808_v6 = vpop.f32.mrb[75].mxu1 }
0x1222   :  { %v2266_v14 = vsel %vm305_vm2, %v2265_v57, %v5202_v2  ;;  %v6356_v57 = vld [vmem:[%s6678_s4 + $0x20] sm:$0xff]  }
0x1223   :  { %5205 = vtanh.f32 %v2480_v44  ;;  %2269 = vrot.lane.b32.xlu1 %v2266_v14, %s5455_s20  ;;  %v2267_v39 = vmul.f32 %v2266_v14, %v6196_v59  ;;  %v6369_v44 = vld [vmem:[%s6678_s4 + $0x28] sm:$0xff]  }
0x1225   :  { %v5204_v16 = vpop.eup %5203 }
0x1226   :  { %v2373_v15 = vadd.f32 1.0, %v5204_v16 }
0x1228   :  { %v2374_v18 = vmul.f32 0.5, %v2373_v15 }
0x122a   :  { %v2375_v49 = vsel %vm305_vm2, %v2374_v18, %v5204_v16  ;;  %v6386_v16 = vld [vmem:[#allocation7 + $0x28] sm:$0xff]  }
0x122b   :  { %2378 = vrot.lane.b32.xlu0 %v2375_v49, %s5455_s20  ;;  %v2376_v23 = vmul.f32 %v2375_v49, %v6200_v55 }
0x122d   :  { %v5206_v50 = vpop.eup %5205 }
0x122e   :  { %v2482_v12 = vadd.f32 1.0, %v5206_v50 }
0x1230   :  { %v2483_v4 = vmul.f32 0.5, %v2482_v12 }
0x1232   :  { %v2484_v11 = vsel %vm305_vm2, %v2483_v4, %v5206_v50 }
0x1233   :  { %2487 = vrot.lane.b32.xlu1 %v2484_v11, %s5455_s20  ;;  %v2485_v8 = vmul.f32 %v2484_v11, %v6205_v25 }
0x1281   :  { %v2161_v52 = vpop.permute.xlu0 %2160 }
0x1282   :  { %v2163_v45 = vmul.f32 %v2161_v52, %v6287_v61 }
0x1284   :  { %2165 = vrot.lane.b32.xlu0 %v2163_v45, %s5455_s20 }
0x1295   :  { %v2270_v53 = vpop.permute.xlu1 %2269 }
0x1296   :  { %v2272_v54 = vmul.f32 %v2270_v53, %v2266_v14 }
0x1298   :  { %2274 = vrot.lane.b32.xlu1 %v2272_v54, %s5455_s20 }
0x129d   :  { %v2379_v58 = vpop.permute.xlu0 %2378 }
0x129e   :  { %v2381_v19 = vmul.f32 %v2379_v58, %v2375_v49 }
0x12a0   :  { %2383 = vrot.lane.b32.xlu0 %v2381_v19, %s5455_s20 }
0x12a5   :  { %v2488_v60 = vpop.permute.xlu1 %2487 }
0x12a6   :  { %v2490_v7 = vmul.f32 %v2488_v60, %v2484_v11 }
0x12a8   :  { %2492 = vrot.lane.b32.xlu1 %v2490_v7, %s5455_s20 }
0x12f6   :  { %v2166_v38 = vpop.permute.xlu0 %2165 }
0x12f7   :  { %v6312_v62 = vadd.f32 %v2166_v38, %v2158_v27 }
0x12f9   :  { %5207 = vtanh.f32 %v6312_v62 }
0x1303   :  { %v5208_v63 = vpop.eup %5207 }
0x1304   :  { %2171 = vrot.lane.b32.xlu0 %v5208_v63, %s5455_s20 }
0x130a   :  { %v2275_v41 = vpop.permute.xlu1 %2274 }
0x130b   :  { %v6317_v17 = vadd.f32 %v2275_v41, %v2267_v39 }
0x130d   :  { %5209 = vtanh.f32 %v6317_v17 }
0x1312   :  { %v2384_v22 = vpop.permute.xlu0 %2383 }
0x1313   :  { %v6321_v0 = vadd.f32 %v2384_v22, %v2376_v23 }
0x1315   :  { %5211 = vtanh.f32 %v6321_v0 }
0x1317   :  { %v5210_v9 = vpop.eup %5209 }
0x1318   :  { %2280 = vrot.lane.b32.xlu1 %v5210_v9, %s5455_s20 }
0x131a   :  { %v2493_v5 = vpop.permute.xlu1 %2492 }
0x131b   :  { %v6326_v24 = vadd.f32 %v2493_v5, %v2485_v8 }
0x131d   :  { %5213 = vtanh.f32 %v6326_v24 }
0x131f   :  { %v5212_v59 = vpop.eup %5211 }
0x1320   :  { %2389 = vrot.lane.b32.xlu0 %v5212_v59, %s5455_s20 }
0x1327   :  { %v5214_v10 = vpop.eup %5213 }
0x1328   :  { %2498 = vrot.lane.b32.xlu1 %v5214_v10, %s5455_s20 }
0x1376   :  { %v2172_v55 = vpop.permute.xlu0 %2171 }
0x1377   :  { %v2174_v26 = vmul.f32 %v2172_v55, %v6287_v61 }
0x1379   :  { %v2502_v21 = vpack.c.bf16 %v2174_v26, %v2174_v26 }
0x137b   :  { %2504 = vrot.lane.b32.xlu0 %v2502_v21, %s5441_s26 }
0x138a   :  { %v2281_v56 = vpop.permute.xlu1 %2280 }
0x138b   :  { %v2283_v29 = vmul.f32 %v2281_v56, %v2266_v14  ;;  %v6376_v14 = vld [vmem:[#allocation7 + $0x20] sm:$0xff]  }
0x138d   :  { %v2571_v25 = vpack.c.bf16 %v2283_v29, %v2283_v29 }
0x138f   :  { %2573 = vrot.lane.b32.xlu1 %v2571_v25, %s5441_s26 }
0x1392   :  { %v2390_v31 = vpop.permute.xlu0 %2389 }
0x1393   :  { %v2392_v2 = vmul.f32 %v2390_v31, %v2375_v49 }
0x1395   :  { %v2680_v33 = vpack.c.bf16 %v2392_v2, %v2392_v2 }
0x1397   :  { %2682 = vrot.lane.b32.xlu0 %v2680_v33, %s5441_s26 }
0x139a   :  { %v2499_v37 = vpop.permute.xlu1 %2498 }
0x139b   :  { %v2501_v46 = vmul.f32 %v2499_v37, %v2484_v11  ;;  %v6409_v37 = vld [vmem:[#allocation8 + $0x2] ss:$0 sm:$0xff] }
0x139d   :  { %v2789_v48 = vpack.c.bf16 %v2501_v46, %v2501_v46 }
0x139f   :  { %2791 = vrot.lane.b32.xlu1 %v2789_v48, %s5441_s26 }
0x13ed   :  { %v2505_v42 = vpop.permute.xlu0 %2504 }
0x13ee   :  { %4822 = vmatmul.mubr.msk.bf16.vlgmr.msra.gmra.mrb[76].mxu1 %vm318_vm3, %v2505_v42 }
0x13ef   :  { %4834 = vmatpush3.bf16.msra.mxu1 %v6099_v51  ;;  %4837 = vmatprep.mubr.msk.bf16.mxu1 %vm5453_vm0, %v5452_v1 }
0x13f0   :  { %4835 = vmatprep.subr.bf16.mxu1 %v5452_v1 }
0x13f3   :  { %4836 = vmatpush3.bf16.msra.mxu1 %v6223_v3 }
0x13f4   :  { %4849 = vmatprep.subr.bf16.mxu1 %v5452_v1 }
0x13f6   :  { %4838 = vmatmul.mubr.msk.bf16.vlgmr.msra.gmra.mrb[80].mxu1 %vm318_vm3, %v2505_v42 }
0x13f7   :  { %4850 = vmatpush3.bf16.msra.mxu1 %v6231_v43  ;;  %4853 = vmatprep.mubr.msk.bf16.mxu1 %vm5453_vm0, %v5452_v1 }
0x13f8   :  { %4851 = vmatprep.subr.bf16.mxu1 %v5452_v1 }
0x13fb   :  { %4852 = vmatpush3.bf16.msra.mxu1 %v6240_v32 }
0x13fc   :  { %4865 = vmatprep.subr.bf16.mxu1 %v5452_v1 }
0x1401   :  { %v2574_v61 = vpop.permute.xlu1 %2573 }
0x1402   :  { %4830 = vmatmul.mubr.msk.bf16.vlgmr.msra.gmra.mrb[80].mxu0 %vm318_vm3, %v2574_v61  ;;  %4854 = vmatmul.mubr.msk.bf16.vlgmr.msra.gmra.mrb[84].mxu1 %vm318_vm3, %v2574_v61 }
0x1403   :  { %4842 = vmatpush3.bf16.msra.mxu0 %v6246_v34  ;;  %4866 = vmatpush3.bf16.msra.mxu1 %v6356_v57 }
0x1404   :  { %4843 = vmatprep.subr.bf16.mxu0 %v5452_v1  ;;  %4867 = vmatprep.subr.bf16.mxu1 %v5452_v1 }
0x1405   :  { %4845 = vmatprep.mubr.msk.bf16.mxu0 %vm5453_vm0, %v5452_v1  ;;  %4869 = vmatprep.mubr.msk.bf16.mxu1 %vm5453_vm0, %v5452_v1 }
0x1407   :  { %4844 = vmatpush3.bf16.msra.mxu0 %v6256_v47  ;;  %4868 = vmatpush3.bf16.msra.mxu1 %v6369_v44 }
0x1408   :  { %4857 = vmatprep.subr.bf16.mxu0 %v5452_v1  ;;  %4881 = vmatprep.subr.bf16.mxu1 %v5452_v1 }
0x1409   :  { %v2683_v6 = vpop.permute.xlu0 %2682 }
0x140a   :  { %4846 = vmatmul.mubr.msk.bf16.vlgmr.msra.gmra.mrb[84].mxu0 %vm318_vm3, %v2683_v6  ;;  %4870 = vmatmul.mubr.msk.bf16.vlgmr.msra.gmra.mrb[88].mxu1 %vm318_vm3, %v2683_v6 }
0x140b   :  { %4858 = vmatpush3.bf16.msra.mxu0 %v6376_v14  ;;  %4861 = vmatprep.mubr.msk.bf16.mxu0 %vm5453_vm0, %v5452_v1 }
0x140c   :  { %4859 = vmatprep.subr.bf16.mxu0 %v5452_v1  ;;  %4882 = vmatpush3.bf16.msra.mxu1 %v6099_v51  ;;  %v263_v51 = vadd.f32 %v6160_v30, %v5744_v40 }
0x140d   :  { %4883 = vmatprep.subr.bf16.mxu1 %v5452_v1  ;;  %4885 = vmatprep.mubr.msk.bf16.mxu1 %vm5453_vm0, %v5452_v1 }
0x140f   :  { %4860 = vmatpush3.bf16.msra.mxu0 %v6386_v16 }
0x1410   :  { %4884 = vmatpush3.bf16.msra.mxu1 %v6223_v3  ;;  %4873 = vmatprep.subr.bf16.mxu0 %v5452_v1 }
0x1411   :  { %v2792_v15 = vpop.permute.xlu1 %2791  ;;  %4897 = vmatprep.subr.bf16.mxu1 %v5452_v1 }
0x1412   :  { %4862 = vmatmul.mubr.msk.bf16.vlgmr.msra.gmra.mrb[88].mxu0 %vm318_vm3, %v2792_v15 }
0x1413   :  { %4874 = vmatpush3.bf16.msra.mxu0 %v6134_v35  ;;  %4877 = vmatprep.mubr.msk.bf16.mxu0 %vm5453_vm0, %v5452_v1 }
0x1414   :  { %4875 = vmatprep.subr.bf16.mxu0 %v5452_v1 }
0x1417   :  { %4876 = vmatpush3.bf16.msra.mxu0 %v6142_v36 }
0x1418   :  { %4889 = vmatprep.subr.bf16.mxu0 %v5452_v1 }
0x14c1   :  { %v2543_v3 = vpop.f32.mrb[76].mxu1 }
0x14c2   :  { %v2549_v18 = vadd.f32 %v2543_v3, %v263_v51  ;;  %v4823_v49 = vpop.f32.mrb[77].mxu1 }
0x14c3   :  { %v2546_v50 = vpop.f32.mrb[78].mxu1 }
0x14c4   :  { %5215 = vtanh.f32 %v2549_v18  ;;  %v4824_v12 = vpop.f32.mrb[79].mxu1 }
0x14c9   :  { %v2652_v4 = vpop.f32.mrb[80].mxu1 }
0x14ca   :  { %v4839_v35 = vpop.f32.mrb[81].mxu1 }
0x14cb   :  { %v2655_v11 = vpop.f32.mrb[82].mxu1 }
0x14cc   :  { %v4840_v52 = vpop.f32.mrb[83].mxu1 }
0x14ce   :  { %v5216_v45 = vpop.eup %5215 }
0x14cf   :  { %v2551_v53 = vadd.f32 1.0, %v5216_v45 }
0x14d1   :  { %v2552_v54 = vmul.f32 0.5, %v2551_v53 }
0x14d3   :  { %v6403_v36 = vsel %vm305_vm2, %v2552_v54, %v5216_v45 }
0x14d4   :  { %2556 = vrot.lane.b32.xlu0 %v6403_v36, %s5455_s20 }
0x14d5   :  { %v2612_v40 = vpop.f32.mrb[80].mxu0  ;;  %v2761_v30 = vpop.f32.mrb[84].mxu1 }
0x14d6   :  { %v2653_v58 = vadd.f32 %v2652_v4, %v2612_v40  ;;  %v4831_v19 = vpop.f32.mrb[81].mxu0  ;;  %v4855_v60 = vpop.f32.mrb[85].mxu1  ;;  %v2554_v40 = vmul.f32 %v6403_v36, %v6312_v62 }
0x14d7   :  { %v2615_v7 = vpop.f32.mrb[82].mxu0  ;;  %v2764_v27 = vpop.f32.mrb[86].mxu1 }
0x14d8   :  { %v2658_v38 = vadd.f32 %v6168_v13, %v2653_v58  ;;  %v4832_v63 = vpop.f32.mrb[83].mxu0  ;;  %v4856_v39 = vpop.f32.mrb[87].mxu1 }
0x14da   :  { %5217 = vtanh.f32 %v2658_v38 }
0x14dd   :  { %v2721_v41 = vpop.f32.mrb[84].mxu0  ;;  %v2870_v23 = vpop.f32.mrb[88].mxu1 }
0x14de   :  { %v2762_v22 = vadd.f32 %v2761_v30, %v2721_v41  ;;  %v4847_v9 = vpop.f32.mrb[85].mxu0  ;;  %v4871_v8 = vpop.f32.mrb[89].mxu1 }
0x14df   :  { %v2724_v5 = vpop.f32.mrb[86].mxu0  ;;  %v2873_v59 = vpop.f32.mrb[90].mxu1 }
0x14e0   :  { %v2767_v10 = vadd.f32 %v6292_v28, %v2762_v22  ;;  %v4848_v55 = vpop.f32.mrb[87].mxu0  ;;  %v4872_v26 = vpop.f32.mrb[91].mxu1 }
0x14e2   :  { %5219 = vtanh.f32 %v2767_v10 }
0x14e4   :  { %v5218_v21 = vpop.eup %5217 }
0x14e5   :  { %v2830_v56 = vpop.f32.mrb[88].mxu0  ;;  %v2660_v29 = vadd.f32 1.0, %v5218_v21 }
0x14e6   :  { %v2871_v25 = vadd.f32 %v2870_v23, %v2830_v56  ;;  %v4863_v31 = vpop.f32.mrb[89].mxu0 }
0x14e7   :  { %v2833_v2 = vpop.f32.mrb[90].mxu0  ;;  %v2661_v33 = vmul.f32 0.5, %v2660_v29 }
0x14e8   :  { %v2876_v46 = vadd.f32 %v6409_v37, %v2871_v25  ;;  %v4864_v48 = vpop.f32.mrb[91].mxu0 }
0x14e9   :  { %v2662_v42 = vsel %vm305_vm2, %v2661_v33, %v5218_v21 }
0x14ea   :  { %5221 = vtanh.f32 %v2876_v46  ;;  %2665 = vrot.lane.b32.xlu1 %v2662_v42, %s5455_s20  ;;  %v2663_v60 = vmul.f32 %v2662_v42, %v6317_v17 }
0x14ec   :  { %v5220_v61 = vpop.eup %5219 }
0x14ed   :  { %v2769_v6 = vadd.f32 1.0, %v5220_v61 }
0x14ef   :  { %v2770_v15 = vmul.f32 0.5, %v2769_v6 }
0x14f1   :  { %v2771_v51 = vsel %vm305_vm2, %v2770_v15, %v5220_v61 }
0x14f2   :  { %2774 = vrot.lane.b32.xlu0 %v2771_v51, %s5455_s20  ;;  %v2772_v38 = vmul.f32 %v2771_v51, %v6321_v0 }
0x14f4   :  { %v5222_v3 = vpop.eup %5221 }
0x14f5   :  { %v2878_v18 = vadd.f32 1.0, %v5222_v3 }
0x14f7   :  { %v2879_v49 = vmul.f32 0.5, %v2878_v18 }
0x14f9   :  { %v2880_v50 = vsel %vm305_vm2, %v2879_v49, %v5222_v3 }
0x14fa   :  { %2883 = vrot.lane.b32.xlu1 %v2880_v50, %s5455_s20  ;;  %v2881_v41 = vmul.f32 %v2880_v50, %v6326_v24 }
0x1546   :  { %v2557_v12 = vpop.permute.xlu0 %2556 }
0x1547   :  { %v2559_v4 = vmul.f32 %v2557_v12, %v6403_v36 }
0x1549   :  { %2561 = vrot.lane.b32.xlu0 %v2559_v4, %s5455_s20 }
0x155c   :  { %v2666_v35 = vpop.permute.xlu1 %2665 }
0x155d   :  { %v2668_v11 = vmul.f32 %v2666_v35, %v2662_v42 }
0x155f   :  { %2670 = vrot.lane.b32.xlu1 %v2668_v11, %s5455_s20 }
0x1564   :  { %v2775_v52 = vpop.permute.xlu0 %2774 }
0x1565   :  { %v2777_v45 = vmul.f32 %v2775_v52, %v2771_v51 }
0x1567   :  { %2779 = vrot.lane.b32.xlu0 %v2777_v45, %s5455_s20 }
0x156c   :  { %v2884_v53 = vpop.permute.xlu1 %2883 }
0x156d   :  { %v2886_v54 = vmul.f32 %v2884_v53, %v2880_v50 }
0x156f   :  { %2888 = vrot.lane.b32.xlu1 %v2886_v54, %s5455_s20 }
0x15bb   :  { %v2562_v30 = vpop.permute.xlu0 %2561 }
0x15bc   :  { %v2564_v58 = vadd.f32 %v2562_v30, %v2554_v40 }
0x15be   :  { %5223 = vtanh.f32 %v2564_v58 }
0x15c8   :  { %v5224_v19 = vpop.eup %5223 }
0x15c9   :  { %2567 = vrot.lane.b32.xlu0 %v5224_v19, %s5455_s20 }
0x15d1   :  { %v2671_v7 = vpop.permute.xlu1 %2670 }
0x15d2   :  { %v6430_v27 = vadd.f32 %v2671_v7, %v2663_v60 }
0x15d4   :  { %5225 = vtanh.f32 %v6430_v27 }
0x15d9   :  { %v2780_v63 = vpop.permute.xlu0 %2779 }
0x15da   :  { %v6434_v39 = vadd.f32 %v2780_v63, %v2772_v38 }
0x15dc   :  { %5227 = vtanh.f32 %v6434_v39 }
0x15de   :  { %v5226_v62 = vpop.eup %5225 }
0x15df   :  { %2676 = vrot.lane.b32.xlu1 %v5226_v62, %s5455_s20 }
0x15e1   :  { %v2889_v23 = vpop.permute.xlu1 %2888 }
0x15e2   :  { %v6439_v22 = vadd.f32 %v2889_v23, %v2881_v41 }
0x15e4   :  { %5229 = vtanh.f32 %v6439_v22 }
0x15e6   :  { %v5228_v17 = vpop.eup %5227 }
0x15e7   :  { %2785 = vrot.lane.b32.xlu0 %v5228_v17, %s5455_s20 }
0x15ee   :  { %v5230_v9 = vpop.eup %5229 }
0x15ef   :  { %2894 = vrot.lane.b32.xlu1 %v5230_v9, %s5455_s20 }
0x163b   :  { %v2568_v0 = vpop.permute.xlu0 %2567 }
0x163c   :  { %v2570_v8 = vmul.f32 %v2568_v0, %v6403_v36 }
0x163e   :  { %v2898_v5 = vpack.c.bf16 %v2570_v8, %v2570_v8 }
0x1640   :  { %2947 = vrot.lane.b32.xlu1 %v2898_v5, %s5441_s26 }
0x1651   :  { %v2677_v59 = vpop.permute.xlu1 %2676 }
0x1652   :  { %v2679_v10 = vmul.f32 %v2677_v59, %v2662_v42 }
0x1654   :  { %v2899_v24 = vpack.c.bf16 %v2679_v10, %v2679_v10 }
0x1656   :  { %2901 = vrot.lane.b32.xlu0 %v2899_v24, %s5441_s26 }
0x1659   :  { %v2786_v55 = vpop.permute.xlu0 %2785 }
0x165a   :  { %v2788_v26 = vmul.f32 %v2786_v55, %v2771_v51 }
0x165c   :  { %v3014_v21 = vpack.c.bf16 %v2788_v26, %v2788_v26 }
0x165e   :  { %3016 = vrot.lane.b32.xlu0 %v3014_v21, %s5441_s26 }
0x1661   :  { %v2895_v56 = vpop.permute.xlu1 %2894 }
0x1662   :  { %v2897_v29 = vmul.f32 %v2895_v56, %v2880_v50 }
0x1664   :  { %v3123_v25 = vpack.c.bf16 %v2897_v29, %v2897_v29 }
0x1666   :  { %3125 = vrot.lane.b32.xlu1 %v3123_v25, %s5441_s26 }
0x16b2   :  { %v2948_v31 = vpop.permute.xlu1 %2947 }
0x16b3   :  { %4886 = vmatmul.mubr.msk.bf16.vlgmr.msra.gmra.mrb[92].mxu1 %vm318_vm3, %v2948_v31 }
0x16b4   :  { %4898 = vmatpush3.bf16.msra.mxu1 %v6231_v43  ;;  %4901 = vmatprep.mubr.msk.bf16.mxu1 %vm5453_vm0, %v5452_v1 }
0x16b5   :  { %4899 = vmatprep.subr.bf16.mxu1 %v5452_v1 }
0x16b8   :  { %4900 = vmatpush3.bf16.msra.mxu1 %v6240_v32 }
0x16b9   :  { %4913 = vmatprep.subr.bf16.mxu1 %v5452_v1 }
0x16c8   :  { %v2902_v36 = vpop.permute.xlu0 %2901 }
0x16c9   :  { %4878 = vmatmul.mubr.msk.bf16.vlgmr.msra.gmra.mrb[92].mxu0 %vm318_vm3, %v2902_v36  ;;  %4902 = vmatmul.mubr.msk.bf16.vlgmr.msra.gmra.mrb[96].mxu1 %vm318_vm3, %v2902_v36 }
0x16ca   :  { %4890 = vmatpush3.bf16.msra.mxu0 %v6246_v34  ;;  %4914 = vmatpush3.bf16.msra.mxu1 %v6356_v57 }
0x16cb   :  { %4891 = vmatprep.subr.bf16.mxu0 %v5452_v1  ;;  %4915 = vmatprep.subr.bf16.mxu1 %v5452_v1 }
0x16cc   :  { %4893 = vmatprep.mubr.msk.bf16.mxu0 %vm5453_vm0, %v5452_v1  ;;  %4917 = vmatprep.mubr.msk.bf16.mxu1 %vm5453_vm0, %v5452_v1 }
0x16ce   :  { %4892 = vmatpush3.bf16.msra.mxu0 %v6256_v47  ;;  %4916 = vmatpush3.bf16.msra.mxu1 %v6369_v44 }
0x16cf   :  { %4905 = vmatprep.subr.bf16.mxu0 %v5452_v1  ;;  %4929 = vmatprep.subr.bf16.mxu1 %v5452_v1 }
0x16d0   :  { %v3017_v2 = vpop.permute.xlu0 %3016 }
0x16d1   :  { %4894 = vmatmul.mubr.msk.bf16.vlgmr.msra.gmra.mrb[96].mxu0 %vm318_vm3, %v3017_v2  ;;  %4918 = vmatmul.mubr.msk.bf16.vlgmr.msra.gmra.mrb[100].mxu1 %vm318_vm3, %v3017_v2 }
0x16d2   :  { %4906 = vmatpush3.bf16.msra.mxu0 %v6376_v14  ;;  %4909 = vmatprep.mubr.msk.bf16.mxu0 %vm5453_vm0, %v5452_v1 }
0x16d3   :  { %4907 = vmatprep.subr.bf16.mxu0 %v5452_v1  ;;  %4930 = vmatpush3.bf16.msra.mxu1 %v6231_v43 }
0x16d4   :  { %4931 = vmatprep.subr.bf16.mxu1 %v5452_v1  ;;  %4933 = vmatprep.mubr.msk.bf16.mxu1 %vm5453_vm0, %v5452_v1 }
0x16d6   :  { %4908 = vmatpush3.bf16.msra.mxu0 %v6386_v16 }
0x16d7   :  { %4932 = vmatpush3.bf16.msra.mxu1 %v6240_v32  ;;  %4921 = vmatprep.subr.bf16.mxu0 %v5452_v1 }
0x16d8   :  { %v3126_v33 = vpop.permute.xlu1 %3125  ;;  %4945 = vmatprep.subr.bf16.mxu1 %v5452_v1 }
0x16d9   :  { %4910 = vmatmul.mubr.msk.bf16.vlgmr.msra.gmra.mrb[100].mxu0 %vm318_vm3, %v3126_v33 }
0x16da   :  { %4922 = vmatpush3.bf16.msra.mxu0 %v6246_v34  ;;  %4925 = vmatprep.mubr.msk.bf16.mxu0 %vm5453_vm0, %v5452_v1 }
0x16db   :  { %4923 = vmatprep.subr.bf16.mxu0 %v5452_v1 }
0x16de   :  { %4924 = vmatpush3.bf16.msra.mxu0 %v6256_v47 }
0x16df   :  { %4937 = vmatprep.subr.bf16.mxu0 %v5452_v1 }
0x1786   :  { %v2986_v43 = vpop.f32.mrb[92].mxu1 }
0x1787   :  { %v4887_v32 = vpop.f32.mrb[93].mxu1 }
0x1788   :  { %v2989_v46 = vpop.f32.mrb[94].mxu1 }
0x1789   :  { %v4888_v48 = vpop.f32.mrb[95].mxu1 }
0x179c   :  { %v2940_v42 = vpop.f32.mrb[92].mxu0  ;;  %v3095_v61 = vpop.f32.mrb[96].mxu1 }
0x179d   :  { %v2987_v6 = vadd.f32 %v2986_v43, %v2940_v42  ;;  %v4879_v15 = vpop.f32.mrb[93].mxu0  ;;  %v4903_v51 = vpop.f32.mrb[97].mxu1 }
0x179e   :  { %v2943_v3 = vpop.f32.mrb[94].mxu0  ;;  %v3098_v34 = vpop.f32.mrb[98].mxu1 }
0x179f   :  { %v2992_v18 = vadd.f32 %v6168_v13, %v2987_v6  ;;  %v4880_v49 = vpop.f32.mrb[95].mxu0  ;;  %v4904_v50 = vpop.f32.mrb[99].mxu1 }
0x17a1   :  { %5231 = vtanh.f32 %v2992_v18 }
0x17a4   :  { %v3055_v12 = vpop.f32.mrb[96].mxu0  ;;  %v3204_v47 = vpop.f32.mrb[100].mxu1 }
0x17a5   :  { %v3096_v4 = vadd.f32 %v3095_v61, %v3055_v12  ;;  %v4895_v35 = vpop.f32.mrb[97].mxu0  ;;  %v4919_v11 = vpop.f32.mrb[101].mxu1 }
0x17a6   :  { %v3058_v52 = vpop.f32.mrb[98].mxu0  ;;  %v3207_v45 = vpop.f32.mrb[102].mxu1 }
0x17a7   :  { %v3101_v53 = vadd.f32 %v6292_v28, %v3096_v4  ;;  %v4896_v54 = vpop.f32.mrb[99].mxu0  ;;  %v4920_v40 = vpop.f32.mrb[103].mxu1 }
0x17a9   :  { %5233 = vtanh.f32 %v3101_v53 }
0x17ab   :  { %v5232_v30 = vpop.eup %5231 }
0x17ac   :  { %v3164_v58 = vpop.f32.mrb[100].mxu0  ;;  %v2994_v19 = vadd.f32 1.0, %v5232_v30 }
0x17ad   :  { %v3205_v60 = vadd.f32 %v3204_v47, %v3164_v58  ;;  %v4911_v13 = vpop.f32.mrb[101].mxu0 }
0x17ae   :  { %v3167_v7 = vpop.f32.mrb[102].mxu0  ;;  %v2995_v38 = vmul.f32 0.5, %v2994_v19 }
0x17af   :  { %v3210_v63 = vadd.f32 %v6409_v37, %v3205_v60  ;;  %v4912_v62 = vpop.f32.mrb[103].mxu0 }
0x17b0   :  { %v2996_v41 = vsel %vm305_vm2, %v2995_v38, %v5232_v30 }
0x17b1   :  { %5235 = vtanh.f32 %v3210_v63  ;;  %2999 = vrot.lane.b32.xlu0 %v2996_v41, %s5455_s20  ;;  %v2997_v25 = vmul.f32 %v2996_v41, %v6430_v27 }
0x17b3   :  { %v5234_v23 = vpop.eup %5233 }
0x17b4   :  { %v3103_v17 = vadd.f32 1.0, %v5234_v23 }
0x17b6   :  { %v3104_v9 = vmul.f32 0.5, %v3103_v17 }
0x17b8   :  { %v3105_v0 = vsel %vm305_vm2, %v3104_v9, %v5234_v23 }
0x17b9   :  { %3108 = vrot.lane.b32.xlu1 %v3105_v0, %s5455_s20  ;;  %v3106_v2 = vmul.f32 %v3105_v0, %v6434_v39 }
0x17bb   :  { %v5236_v8 = vpop.eup %5235 }
0x17bc   :  { %v3212_v5 = vadd.f32 1.0, %v5236_v8 }
0x17be   :  { %v3213_v59 = vmul.f32 0.5, %v3212_v5 }
0x17c0   :  { %v3214_v10 = vsel %vm305_vm2, %v3213_v59, %v5236_v8 }
0x17c1   :  { %3217 = vrot.lane.b32.xlu0 %v3214_v10, %s5455_s20  ;;  %v3215_v46 = vmul.f32 %v3214_v10, %v6439_v22 }
0x1823   :  { %v3000_v24 = vpop.permute.xlu0 %2999 }
0x1824   :  { %v3002_v55 = vmul.f32 %v3000_v24, %v2996_v41 }
0x1826   :  { %3004 = vrot.lane.b32.xlu1 %v3002_v55, %s5455_s20 }
0x182b   :  { %v3109_v26 = vpop.permute.xlu1 %3108 }
0x182c   :  { %v3111_v21 = vmul.f32 %v3109_v26, %v3105_v0 }
0x182e   :  { %3113 = vrot.lane.b32.xlu0 %v3111_v21, %s5455_s20 }
0x1833   :  { %v3218_v56 = vpop.permute.xlu0 %3217 }
0x1834   :  { %v3220_v29 = vmul.f32 %v3218_v56, %v3214_v10 }
0x1836   :  { %3222 = vrot.lane.b32.xlu1 %v3220_v29, %s5455_s20 }
0x1898   :  { %v3005_v31 = vpop.permute.xlu1 %3004 }
0x1899   :  { %v3007_v36 = vadd.f32 %v3005_v31, %v2997_v25 }
0x189b   :  { %5237 = vtanh.f32 %v3007_v36 }
0x18a0   :  { %v3114_v33 = vpop.permute.xlu0 %3113 }
0x18a1   :  { %v6508_v43 = vadd.f32 %v3114_v33, %v3106_v2 }
0x18a3   :  { %5239 = vtanh.f32 %v6508_v43 }
0x18a5   :  { %v5238_v32 = vpop.eup %5237 }
0x18a6   :  { %3010 = vrot.lane.b32.xlu0 %v5238_v32, %s5455_s20 }
0x18a8   :  { %v3223_v48 = vpop.permute.xlu1 %3222 }
0x18a9   :  { %v6513_v42 = vadd.f32 %v3223_v48, %v3215_v46 }
0x18ab   :  { %5241 = vtanh.f32 %v6513_v42 }
0x18ad   :  { %v5240_v27 = vpop.eup %5239 }
0x18ae   :  { %3119 = vrot.lane.b32.xlu1 %v5240_v27, %s5455_s20 }
0x18b5   :  { %v5242_v61 = vpop.eup %5241 }
0x18b6   :  { %3228 = vrot.lane.b32.xlu0 %v5242_v61, %s5455_s20 }
0x1918   :  { %v3011_v39 = vpop.permute.xlu0 %3010 }
0x1919   :  { %v3013_v6 = vmul.f32 %v3011_v39, %v2996_v41 }
0x191b   :  { %v3232_v15 = vpack.c.bf16 %v3013_v6, %v3013_v6 }
0x191d   :  { %3281 = vrot.lane.b32.xlu0 %v3232_v15, %s5441_s26 }
0x1920   :  { %v3120_v51 = vpop.permute.xlu1 %3119 }
0x1921   :  { %v3122_v3 = vmul.f32 %v3120_v51, %v3105_v0 }
0x1923   :  { %v3233_v34 = vpack.c.bf16 %v3122_v3, %v3122_v3 }
0x1925   :  { %3235 = vrot.lane.b32.xlu1 %v3233_v34, %s5441_s26 }
0x1928   :  { %v3229_v22 = vpop.permute.xlu0 %3228 }
0x1929   :  { %v3231_v18 = vmul.f32 %v3229_v22, %v3214_v10 }
0x192b   :  { %v3348_v49 = vpack.c.bf16 %v3231_v18, %v3231_v18 }
0x192d   :  { %3350 = vrot.lane.b32.xlu1 %v3348_v49, %s5441_s26 }
0x198f   :  { %v3282_v50 = vpop.permute.xlu0 %3281 }
0x1990   :  { %4934 = vmatmul.mubr.msk.bf16.vlgmr.msra.gmra.mrb[104].mxu1 %vm318_vm3, %v3282_v50 }
0x1991   :  { %4946 = vmatpush3.bf16.msra.mxu1 %v6356_v57  ;;  %4949 = vmatprep.mubr.msk.bf16.mxu1 %vm5453_vm0, %v5452_v1 }
0x1992   :  { %4947 = vmatprep.subr.bf16.mxu1 %v5452_v1 }
0x1995   :  { %4948 = vmatpush3.bf16.msra.mxu1 %v6369_v44 }
0x1996   :  { %4961 = vmatprep.subr.bf16.mxu1 %v5452_v1 }
0x1997   :  { %v3236_v12 = vpop.permute.xlu1 %3235 }
0x1998   :  { %4926 = vmatmul.mubr.msk.bf16.vlgmr.msra.gmra.mrb[104].mxu0 %vm318_vm3, %v3236_v12  ;;  %4950 = vmatmul.mubr.msk.bf16.vlgmr.msra.gmra.mrb[108].mxu1 %vm318_vm3, %v3236_v12 }
0x1999   :  { %4938 = vmatpush3.bf16.msra.mxu0 %v6376_v14  ;;  %4941 = vmatprep.mubr.msk.bf16.mxu0 %vm5453_vm0, %v5452_v1 }
0x199a   :  { %4939 = vmatprep.subr.bf16.mxu0 %v5452_v1  ;;  %4962 = vmatpush3.bf16.msra.mxu1 %v6356_v57 }
0x199b   :  { %4963 = vmatprep.subr.bf16.mxu1 %v5452_v1  ;;  %4965 = vmatprep.mubr.msk.bf16.mxu1 %vm5453_vm0, %v5452_v1 }
0x199d   :  { %4940 = vmatpush3.bf16.msra.mxu0 %v6386_v16 }
0x199e   :  { %4964 = vmatpush3.bf16.msra.mxu1 %v6369_v44  ;;  %4953 = vmatprep.subr.bf16.mxu0 %v5452_v1 }
0x199f   :  { %v3351_v47 = vpop.permute.xlu1 %3350 }
0x19a0   :  { %4942 = vmatmul.mubr.msk.bf16.vlgmr.msra.gmra.mrb[108].mxu0 %vm318_vm3, %v3351_v47 }
0x19a1   :  { %4954 = vmatpush3.bf16.msra.mxu0 %v6376_v14  ;;  %4957 = vmatprep.mubr.msk.bf16.mxu0 %vm5453_vm0, %v5452_v1 }
0x19a2   :  { %4955 = vmatprep.subr.bf16.mxu0 %v5452_v1 }
0x19a5   :  { %4956 = vmatpush3.bf16.msra.mxu0 %v6386_v16 }
0x1a63   :  { %v3320_v57 = vpop.f32.mrb[104].mxu1 }
0x1a64   :  { %v4935_v4 = vpop.f32.mrb[105].mxu1 }
0x1a65   :  { %v3323_v35 = vpop.f32.mrb[106].mxu1 }
0x1a66   :  { %v4936_v11 = vpop.f32.mrb[107].mxu1 }
0x1a6b   :  { %v3274_v52 = vpop.f32.mrb[104].mxu0  ;;  %v3429_v44 = vpop.f32.mrb[108].mxu1 }
0x1a6c   :  { %v3321_v45 = vadd.f32 %v3320_v57, %v3274_v52  ;;  %v4927_v53 = vpop.f32.mrb[105].mxu0  ;;  %v4951_v54 = vpop.f32.mrb[109].mxu1 }
0x1a6d   :  { %v3277_v40 = vpop.f32.mrb[106].mxu0  ;;  %v3432_v30 = vpop.f32.mrb[110].mxu1  ;;  %v3577_v53 = vld [vmem:[#allocation11] sm:$0xff]  ;;  %v5456_v54 = vmov 0.0|0.0  }
0x1a6e   :  { %v3326_v14 = vadd.f32 %v6292_v28, %v3321_v45  ;;  %v4928_v58 = vpop.f32.mrb[107].mxu0  ;;  %v4952_v19 = vpop.f32.mrb[111].mxu1  ;;  %v3573_v45 = vld [vmem:[#allocation10] sm:$0xff]  ;;  %5052 = vmatprep.subr.bf16.mxu1 %v5456_v54  ;;  %5046 = vmatprep.subr.bf16.mxu0 %v5456_v54  ;;  %v3578_v40 = vld [vmem:[#allocation11 + $0x8] sm:$0xff]  ;;  %v3575_v30 = vld [vmem:[#allocation10 + $0x10] sm:$0xff] }
0x1a6f   :  { %v5047_v58 = vpack.c.bf16 %v3578_v40, %v3577_v53  ;;  %v3579_v19 = vld [vmem:[#allocation11 + $0x10] sm:$0xff] }
0x1a70   :  { %5243 = vtanh.f32 %v3326_v14  ;;  %v3576_v14 = vld [vmem:[#allocation10 + $0x18] sm:$0xff] }
0x1a73   :  { %v3389_v60 = vpop.f32.mrb[108].mxu0 }
0x1a74   :  { %v3430_v13 = vadd.f32 %v3429_v44, %v3389_v60  ;;  %v4943_v7 = vpop.f32.mrb[109].mxu0  ;;  %v3580_v60 = vld [vmem:[#allocation11 + $0x18] sm:$0xff] }
0x1a75   :  { %v3392_v16 = vpop.f32.mrb[110].mxu0  ;;  %v5050_v7 = vpack.c.bf16 %v3580_v60, %v3579_v19  ;;  %v4298_v19 = vld [vmem:[#allocation13 + $0x3] ss:$0 sm:$0xff] }
0x1a76   :  { %v3435_v38 = vadd.f32 %v6409_v37, %v3430_v13  ;;  %v4944_v63 = vpop.f32.mrb[111].mxu0  ;;  %v5056_v13 = vpack.c.bf16 %v3576_v14, %v3575_v30  ;;  %v4088_v30 = vld [vmem:[%s6686_s12 + $0x10] sm:$0xff]  ;;  %v4089_v14 = vld [vmem:[%s6686_s12 + $0x18] sm:$0xff] }
0x1a78   :  { %5245 = vtanh.f32 %v3435_v38 }
0x1a7a   :  { %v5244_v62 = vpop.eup %5243 }
0x1a7b   :  { %v3328_v41 = vadd.f32 1.0, %v5244_v62 }
0x1a7d   :  { %v3329_v23 = vmul.f32 0.5, %v3328_v41 }
0x1a7f   :  { %v3330_v17 = vsel %vm305_vm2, %v3329_v23, %v5244_v62 }
0x1a80   :  { %3333 = vrot.lane.b32.xlu0 %v3330_v17, %s5455_s20  ;;  %v3331_v55 = vmul.f32 %v3330_v17, %v6508_v43 }
0x1a82   :  { %v5246_v28 = vpop.eup %5245 }
0x1a83   :  { %v3437_v9 = vadd.f32 1.0, %v5246_v28 }
0x1a85   :  { %v3438_v0 = vmul.f32 0.5, %v3437_v9 }
0x1a87   :  { %v3439_v8 = vsel %vm305_vm2, %v3438_v0, %v5246_v28  ;;  %v3741_v28 = vld [vmem:[%s6684_s10 + $0x8] sm:$0xff]  ;;  %v3742_v0 = vld [vmem:[%s6684_s10 + $0x10] sm:$0xff] }
0x1a88   :  { %3442 = vrot.lane.b32.xlu1 %v3439_v8, %s5455_s20  ;;  %v3440_v56 = vmul.f32 %v3439_v8, %v6513_v42 }
0x1af2   :  { %v3334_v5 = vpop.permute.xlu0 %3333 }
0x1af3   :  { %v3336_v59 = vmul.f32 %v3334_v5, %v3330_v17 }
0x1af5   :  { %3338 = vrot.lane.b32.xlu0 %v3336_v59, %s5455_s20  ;;  %v4282_v59 = vld [vmem:[%s6684_s10 + $0x20] sm:$0xff] }
0x1afa   :  { %v3443_v10 = vpop.permute.xlu1 %3442 }
0x1afb   :  { %v3445_v24 = vmul.f32 %v3443_v10, %v3439_v8  ;;  %v4283_v10 = vld [vmem:[%s6684_s10 + $0x28] sm:$0xff] }
0x1afd   :  { %3447 = vrot.lane.b32.xlu1 %v3445_v24, %s5455_s20  ;;  %v5065_v24 = vpack.c.bf16 %v4283_v10, %v4282_v59 }
0x1b67   :  { %v3339_v26 = vpop.permute.xlu0 %3338 }
0x1b68   :  { %v3341_v21 = vadd.f32 %v3339_v26, %v3331_v55 }
0x1b6a   :  { %5247 = vtanh.f32 %v3341_v21 }
0x1b6f   :  { %v3448_v29 = vpop.permute.xlu1 %3447 }
0x1b70   :  { %v3450_v25 = vadd.f32 %v3448_v29, %v3440_v56  ;;  %v4279_v56 = vld [vmem:[%s6683_s9] ss:$0 sm:$0xff] }
0x1b72   :  { %5249 = vtanh.f32 %v3450_v25 }
0x1b74   :  { %v5248_v31 = vpop.eup %5247 }
0x1b75   :  { %3344 = vrot.lane.b32.xlu0 %v5248_v31, %s5455_s20 }
0x1b7c   :  { %v5250_v36 = vpop.eup %5249 }
0x1b7d   :  { %3453 = vrot.lane.b32.xlu1 %v5250_v36, %s5455_s20 }
0x1be7   :  { %v3345_v2 = vpop.permute.xlu0 %3344 }
0x1be8   :  { %v3347_v33 = vmul.f32 %v3345_v2, %v3330_v17  ;;  %v3740_v17 = vld [vmem:[%s6684_s10] sm:$0xff]  ;;  %v4284_v2 = vld [vmem:[%s6684_s10 + $0x30] sm:$0xff] }
0x1be9   :  { %v5059_v9 = vpack.c.bf16 %v3741_v28, %v3740_v17 }
0x1bea   :  { %v3457_v32 = vpack.c.bf16 %v3347_v33, %v3347_v33  ;;  %v4285_v33 = vld [vmem:[%s6684_s10 + $0x38] sm:$0xff] }
0x1bec   :  { %3506 = vrot.lane.b32.xlu1 %v3457_v32, %s5441_s26  ;;  %v5068_v32 = vpack.c.bf16 %v4285_v33, %v4284_v2 }
0x1bef   :  { %v3454_v43 = vpop.permute.xlu1 %3453 }
0x1bf0   :  { %v3456_v46 = vmul.f32 %v3454_v43, %v3439_v8  ;;  %v3743_v8 = vld [vmem:[%s6684_s10 + $0x18] sm:$0xff]  ;;  %v4288_v43 = vld [vmem:[%s6684_s10 + $0x40] sm:$0xff] }
0x1bf1   :  { %v5062_v5 = vpack.c.bf16 %v3743_v8, %v3742_v0 }
0x1bf2   :  { %v3458_v48 = vpack.c.bf16 %v3456_v46, %v3456_v46  ;;  %v4289_v46 = vld [vmem:[%s6684_s10 + $0x48] sm:$0xff] }
0x1bf4   :  { %3460 = vrot.lane.b32.xlu0 %v3458_v48, %s5441_s26  ;;  %v5071_v48 = vpack.c.bf16 %v4289_v46, %v4288_v43 }
0x1c5e   :  { %v3507_v42 = vpop.permute.xlu1 %3506 }
0x1c5f   :  { %4966 = vmatmul.mubr.msk.bf16.vlgmr.msra.gmra.mrb[112].mxu1 %vm318_vm3, %v3507_v42  ;;  %v4280_v42 = vld [vmem:[#allocation13] ss:$0 sm:$0xff] }
0x1c60   :  { %4988 = vmatprep.mubr.msk.f32.mxu1 %vm5453_vm0, %v5452_v1 }
0x1c66   :  { %v3461_v27 = vpop.permute.xlu0 %3460 }
0x1c67   :  { %4958 = vmatmul.mubr.msk.bf16.vlgmr.msra.gmra.mrb[112].mxu0 %vm318_vm3, %v3461_v27 }
0x1c68   :  { %4977 = vmatprep.mubr.msk.f32.mxu0 %vm5453_vm0, %v5452_v1  ;;  %5048 = vmatpush3.bf16.msra.mxu0 %v5047_v58  ;;  %v5086_v58 = vpack.c.bf16 %v4089_v14, %v4088_v30 }
0x1c69   :  { %5049 = vmatprep.subr.bf16.mxu0 %v5456_v54 }
0x1c6c   :  { %5051 = vmatpush3.bf16.msra.mxu0 %v5050_v7 }
0x1c6d   :  { %5058 = vmatprep.subr.bf16.mxu0 %v5456_v54 }
0x1d32   :  { %v3545_v61 = vpop.f32.mrb[112].mxu1 }
0x1d33   :  { %v4967_v39 = vpop.f32.mrb[113].mxu1 }
0x1d34   :  { %v3548_v6 = vpop.f32.mrb[114].mxu1 }
0x1d35   :  { %v4968_v15 = vpop.f32.mrb[115].mxu1 }
0x1d36   :  { %v4290_v15 = vld [vmem:[%s6684_s10 + $0x50] sm:$0xff] }
0x1d3a   :  { %v3499_v51 = vpop.f32.mrb[112].mxu0 }
0x1d3b   :  { %v3546_v3 = vadd.f32 %v3545_v61, %v3499_v51  ;;  %v4959_v34 = vpop.f32.mrb[113].mxu0  ;;  %v4291_v51 = vld [vmem:[%s6684_s10 + $0x58] sm:$0xff] }
0x1d3c   :  { %v3502_v22 = vpop.f32.mrb[114].mxu0  ;;  %v4294_v34 = vld [vmem:[%s6684_s10 + $0x60] sm:$0xff] }
0x1d3d   :  { %v3551_v18 = vadd.f32 %v6409_v37, %v3546_v3  ;;  %v4960_v49 = vpop.f32.mrb[115].mxu0  ;;  %v3574_v37 = vld [vmem:[#allocation10 + $0x8] sm:$0xff]  ;;  %v5074_v3 = vpack.c.bf16 %v4291_v51, %v4290_v15  ;;  %v4295_v22 = vld [vmem:[%s6684_s10 + $0x68] sm:$0xff] }
0x1d3e   :  { %v5053_v20 = vpack.c.bf16 %v3574_v37, %v3573_v45  ;;  %v4286_v49 = vld [vmem:[#allocation13 + $0x1] ss:$0 sm:$0xff] }
0x1d3f   :  { %5251 = vtanh.f32 %v3551_v18  ;;  %v5077_v18 = vpack.c.bf16 %v4295_v22, %v4294_v34 }
0x1d40   :  { %5054 = vmatpush3.bf16.msra.mxu1 %v5053_v20 }
0x1d41   :  { %5055 = vmatprep.subr.bf16.mxu1 %v5456_v54 }
0x1d44   :  { %5057 = vmatpush3.bf16.msra.mxu1 %v5056_v13 }
0x1d45   :  { %5064 = vmatprep.subr.bf16.mxu1 %v5456_v54 }
0x1d49   :  { %v5252_v50 = vpop.eup %5251 }
0x1d4a   :  { %v3553_v12 = vadd.f32 1.0, %v5252_v50 }
0x1d4c   :  { %v3554_v47 = vmul.f32 0.5, %v3553_v12 }
0x1d4e   :  { %v3555_v57 = vsel %vm305_vm2, %v3554_v47, %v5252_v50 }
0x1d4f   :  { %3558 = vrot.lane.b32.xlu0 %v3555_v57, %s5455_s20  ;;  %v3556_v11 = vmul.f32 %v3555_v57, %v3450_v25 }
0x1dc1   :  { %v3559_v4 = vpop.permute.xlu0 %3558 }
0x1dc2   :  { %v3561_v35 = vmul.f32 %v3559_v4, %v3555_v57  ;;  %v4296_v4 = vld [vmem:[%s6684_s10 + $0x70] sm:$0xff] }
0x1dc4   :  { %3563 = vrot.lane.b32.xlu1 %v3561_v35, %s5455_s20  ;;  %v4297_v35 = vld [vmem:[%s6684_s10 + $0x78] sm:$0xff] }
0x1e36   :  { %v3564_v52 = vpop.permute.xlu1 %3563 }
0x1e37   :  { %v3566_v44 = vadd.f32 %v3564_v52, %v3556_v11  ;;  %v5080_v11 = vpack.c.bf16 %v4297_v35, %v4296_v4  ;;  %v4086_v52 = vld [vmem:[%s6686_s12] sm:$0xff] }
0x1e39   :  { %5253 = vtanh.f32 %v3566_v44  ;;  %v4087_v44 = vld [vmem:[%s6686_s12 + $0x8] sm:$0xff] }
0x1e3a   :  { %v5083_v45 = vpack.c.bf16 %v4087_v44, %v4086_v52 }
0x1e43   :  { %v5254_v16 = vpop.eup %5253 }
0x1e44   :  { %3569 = vrot.lane.b32.xlu0 %v5254_v16, %s5455_s20  ;;  %v4300_v16 = vld [vmem:[#allocation2] ss:$0 sm:$0xff] }
0x1eb6   :  { %v3570_v38 = vpop.permute.xlu0 %3569 }
0x1eb7   :  { %v3572_v63 = vmul.f32 %v3570_v38, %v3555_v57 }
0x1eb9   :  { %v3582_v62 = vrot.slane %v3572_v63, 2  ;;  %3657 = vrot.lane.b32.xlu0 %v3572_v63, %s5441_s26 }
0x1ebb   :  { %3583 = vrot.lane.b32.xlu1 %v3582_v62, %s5441_s26 }
0x1f2b   :  { %v3658_v41 = vpop.permute.xlu0 %3657 }
0x1f2c   :  { %4989 = vmatmul.mubr.msk.f32.vlgmr.msra.gmra.mrb[116].mxu1 %vm318_vm3, %v3658_v41 }
0x1f2d   :  { %v3584_v23 = vpop.permute.xlu1 %3583  ;;  %5010 = vmatprep.mubr.msk.f32.mxu1 %vm5453_vm0, %v5452_v1  ;;  %5066 = vmatpush3.bf16.msra.mxu1 %v5065_v24 }
0x1f2e   :  { %4978 = vmatmul.mubr.msk.f32.vlgmr.msra.gmra.mrb[116].mxu0 %vm318_vm3, %v3584_v23  ;;  %5067 = vmatprep.subr.bf16.mxu1 %v5456_v54 }
0x1f2f   :  { %4999 = vmatprep.mubr.msk.f32.mxu0 %vm5453_vm0, %v5452_v1  ;;  %5060 = vmatpush3.bf16.msra.mxu0 %v5059_v9 }
0x1f30   :  { %5061 = vmatprep.subr.bf16.mxu0 %v5456_v54 }
0x1f31   :  { %5069 = vmatpush3.bf16.msra.mxu1 %v5068_v32 }
0x1f32   :  { %5076 = vmatprep.subr.bf16.mxu1 %v5456_v54 }
0x1f33   :  { %5063 = vmatpush3.bf16.msra.mxu0 %v5062_v5 }
0x1f34   :  { %5070 = vmatprep.subr.bf16.mxu0 %v5456_v54 }
0x1fff   :  { %v3727_v55 = vpop.f32.mrb[116].mxu1 }
0x2000   :  { %v4990_v26 = vpop.f32.mrb[117].mxu1 }
0x2001   :  { %v3653_v21 = vpop.f32.mrb[116].mxu0 }
0x2002   :  { %v3728_v29 = vadd.f32 %v3727_v55, %v3653_v21  ;;  %v4979_v25 = vpop.f32.mrb[117].mxu0 }
0x2004   :  { %v3738_v31 = vadd.f32 %v4279_v56, %v3728_v29 }
0x2006   :  { %v3739_v36 = vmax.f32 %v3738_v31, 0.0 }
0x2008   :  { %5000 = vmatmul.mubr.msk.f32.vlgmr.msra.gmra.mrb[118].mxu0 %vm318_vm3, %v3739_v36 }
0x2009   :  { %5021 = vmatprep.mubr.msk.f32.mxu0 %vm5453_vm0, %v5452_v1  ;;  %5072 = vmatpush3.bf16.msra.mxu0 %v5071_v48 }
0x200a   :  { %5073 = vmatprep.subr.bf16.mxu0 %v5456_v54 }
0x200d   :  { %5075 = vmatpush3.bf16.msra.mxu0 %v5074_v3 }
0x200e   :  { %5082 = vmatprep.subr.bf16.mxu0 %v5456_v54 }
0x20db   :  { %v3820_v27 = vpop.f32.mrb[118].mxu0 }
0x20dc   :  { %v3821_v61 = vadd.f32 %v4280_v42, %v3820_v27  ;;  %v5001_v39 = vpop.f32.mrb[119].mxu0 }
0x20de   :  { %v3824_v6 = vmax.f32 %v3821_v61, 0.0 }
0x20e0   :  { %5011 = vmatmul.mubr.msk.f32.vlgmr.msra.gmra.mrb[118].mxu1 %vm318_vm3, %v3824_v6 }
0x20e1   :  { %5032 = vmatprep.mubr.msk.f32.mxu1 %vm5453_vm0, %v5452_v1  ;;  %5078 = vmatpush3.bf16.msra.mxu1 %v5077_v18 }
0x20e2   :  { %5079 = vmatprep.subr.bf16.mxu1 %v5456_v54 }
0x20e5   :  { %5081 = vmatpush3.bf16.msra.mxu1 %v5080_v11 }
0x21b3   :  { %v3907_v50 = vpop.f32.mrb[118].mxu1 }
0x21b4   :  { %v3908_v12 = vadd.f32 %v4286_v49, %v3907_v50  ;;  %v5012_v47 = vpop.f32.mrb[119].mxu1 }
0x21b6   :  { %v3911_v57 = vmax.f32 %v3908_v12, 0.0 }
0x21b8   :  { %5022 = vmatmul.mubr.msk.f32.vlgmr.msra.gmra.mrb[120].mxu0 %vm318_vm3, %v3911_v57 }
0x21b9   :  { %5043 = vmatprep.mubr.msk.f32.mxu0 %vm5453_vm0, %v5452_v1  ;;  %5084 = vmatpush3.bf16.msra.mxu0 %v5083_v45  ;;  %v4292_v1 = vld [vmem:[#allocation13 + $0x2] ss:$0 sm:$0xff] }
0x21ba   :  { %5085 = vmatprep.subr.bf16.mxu0 %v5456_v54 }
0x21bd   :  { %5087 = vmatpush3.bf16.msra.mxu0 %v5086_v58 }
0x228b   :  { %v3994_v37 = vpop.f32.mrb[120].mxu0 }
0x228c   :  { %v3995_v53 = vadd.f32 %v4292_v1, %v3994_v37  ;;  %v5023_v20 = vpop.f32.mrb[121].mxu0 }
0x228e   :  { %v3998_v40 = vmax.f32 %v3995_v53, 0.0 }
0x2290   :  { %5033 = vmatmul.mubr.msk.f32.vlgmr.msra.gmra.mrb[120].mxu1 %vm318_vm3, %v3998_v40 }
0x2363   :  { %v4081_v60 = vpop.f32.mrb[120].mxu1 }
0x2364   :  { %v4082_v54 = vadd.f32 %v4298_v19, %v4081_v60  ;;  %v5034_v13 = vpop.f32.mrb[121].mxu1 }
0x2366   :  { %v4085_v7 = vmax.f32 %v4082_v54, 0.0 }
0x2368   :  { %5044 = vmatmul.mubr.msk.f32.vlgmr.msra.gmra.mrb[122].mxu0 %vm318_vm3, %v4085_v7 }
0x243b   :  { %v4166_v38 = vpop.f32.mrb[122].mxu0 }
0x243c   :  { %v4167_v63 = vadd.f32 %v4300_v16, %v4166_v38  ;;  %v5045_v62 = vpop.f32.mrb[123].mxu0 }
0x243e   :  { %v4302_v41 = vmul.f32 -1.442695, %v4167_v63 }
0x2440   :  { %5255 = vpow2.f32 %v4302_v41 }
0x244a   :  { %v5256_v23 = vpop.eup %5255 }
0x244b   :  { %v4173_v17 = vadd.f32 1.0, %v5256_v23 }
0x244d   :  { %5257 = vrcp.f32 %v4173_v17 }
0x2457   :  { %v5258_v28 = vpop.eup %5257 }
0x2458   :  { %4178 = vperm.xlu1 %5106, %v5258_v28  }
0x24d7   :  { %v4179_v9 = vpop.permute.xlu1 %4178 }
0x24d8   :  { %4181 = vst [vmem:[%s6688_s14] sm:$0x3] %v4179_v9 }
0x24d9   :  { %4186 = vsyncpa [#allocation4], 1 }
0x24da   :  { %4187 = vsyncpa [#allocation6], 1 }
0x24db   :  { %4188 = vsyncpa [#allocation9], 1 }
0x24dc   :  { %4189 = vsyncpa [#allocation12], 1 }

</bundles_post_ra>
